<compile_context>
chip_gen: v5e
topology: v5e:2x2
jax: 0.10.0
libtpu: 0.0.40
codegen_flags: <defaults>
</compile_context>

<pallas_src>
import math

import jax
import jax.numpy as jnp
import numpy as np
from jax.experimental import pallas as pl
from jax.experimental.pallas import tpu as pltpu

NUM_EMBEDDINGS = 64
EMBEDDING_DIM = 32
PADDING_IDX = 0


def _round_up(x, m):
    return ((x + m - 1) // m) * m


def _layernorm(h, gamma, beta, eps=1e-5):
    mu = jnp.mean(h, axis=-1, keepdims=True)
    d = h - mu
    var = jnp.mean(d * d, axis=-1, keepdims=True)
    return d * jax.lax.rsqrt(var + eps) * gamma + beta


def transformer_bag_kernel(hflat_ref, hgrp_ref, emb_ref, wstk_ref, vecs_ref,
                           bmask_ref, out_ref):
    f32 = jnp.float32
    bf16 = jnp.bfloat16

    TB, D = out_ref.shape
    NG, R = hgrp_ref.shape          # NG groups of G sequences, R = G*S rows each
    V = emb_ref.shape[0]
    TBS = hflat_ref.shape[0]        # == TB * S == NG * R
    S = TBS // TB

    # --- embedding gather: 2-D bf16 one-hot @ bf16 table on the MXU.
    #     Plain row lookup, so padded tokens pick up row 0 exactly like
    #     nn.Embedding; those positions never reach the pooled output. ---
    h_flat = hflat_ref[...]                                      # (TB*S, 1) int32
    vocab = jax.lax.broadcasted_iota(jnp.int32, (TBS, V), 1)
    onehot = (h_flat == vocab).astype(bf16)                      # exact 0/1
    x = jnp.dot(onehot, emb_ref[...], preferred_element_type=f32)  # (TB*S, D) f32
    xb = x.astype(bf16)

    # --- packed parameters (bf16 weights, f32 biases / LN vectors) ---
    wq = wstk_ref[0, :, :]
    wk = wstk_ref[1, :, :]
    wv = wstk_ref[2, :, :]
    wo = wstk_ref[3, :, :]
    w1 = wstk_ref[4, :, :]
    w2 = wstk_ref[5, :, :]
    bq = vecs_ref[0:1, :]
    bk = vecs_ref[1:2, :]
    bv = vecs_ref[2:3, :]
    bo = vecs_ref[3:4, :]
    b1 = vecs_ref[4:5, :]
    b2 = vecs_ref[5:6, :]
    g1 = vecs_ref[6:7, :]
    be1 = vecs_ref[7:8, :]
    g2 = vecs_ref[8:9, :]
    be2 = vecs_ref[9:10, :]

    # --- Q/K/V projections on the flat (TB*S, D) slab; 1/sqrt(D) folded into
    #     wq/bq at packing time; each output starts at lane offset 0. ---
    q = (jnp.dot(xb, wq, preferred_element_type=f32) + bq).astype(bf16)
    k = (jnp.dot(xb, wk, preferred_element_type=f32) + bk).astype(bf16)
    v = (jnp.dot(xb, wv, preferred_element_type=f32) + bv).astype(bf16)

    # --- grouped block-diagonal attention: G sequences per 128-row tile ---
    qg = q.reshape(NG, R, D)
    kg = k.reshape(NG, R, D)
    vg = v.reshape(NG, R, D)
    key_ok = (hgrp_ref[...] != PADDING_IDX).astype(f32)          # (NG, R)

    scores = jnp.einsum("gqd,gkd->gqk", qg, kg,
                        preferred_element_type=f32)              # (NG, R, R)
    scores = scores + bmask_ref[...][None, :, :]                 # cross-sequence -1e30
    scores = scores + ((f32(1.0) - key_ok) * f32(-1e30))[:, None, :]
    scores = scores - jnp.max(scores, axis=-1, keepdims=True)
    p = jnp.exp(scores)
    p = p * pl.reciprocal(jnp.sum(p, axis=-1, keepdims=True), approx=True)
    ctx = jnp.einsum("gqk,gkd->gqd", p.astype(bf16), vg,
                     preferred_element_type=f32)                 # (NG, R, D)

    # --- output projection + post-norm residual block 1 ---
    attn_out = jnp.dot(ctx.reshape(TBS, D).astype(bf16), wo,
                       preferred_element_type=f32) + bo
    h = _layernorm(x + attn_out, g1, be1)
    hb = h.astype(bf16)

    # --- feed-forward (dim_feedforward == D), ReLU, post-norm block 2 ---
    ff = jnp.maximum(jnp.dot(hb, w1, preferred_element_type=f32) + b1, 0.0)
    ff = jnp.dot(ff.astype(bf16), w2, preferred_element_type=f32) + b2
    y = _layernorm(h + ff, g2, be2)                              # (TB*S, D) f32

    # --- masked mean pooling.  Exact divide for the count (correctness
    #     concern); denom clamped to 1 so all-padding rows added by batch-tile
    #     padding stay finite (real rows always have >= 1 token). ---
    mask3 = (h_flat != PADDING_IDX).astype(f32).reshape(TB, S, 1)
    denom = jnp.maximum(jnp.sum(mask3, axis=1, keepdims=True), f32(1.0))
    wts3 = mask3 / denom                                         # (TB, S, 1)
    out_ref[...] = jnp.sum(y.reshape(TB, S, D) * wts3, axis=1)   # (TB, D)


def transformer_embedding_bag(hashes, _unused, params, *,
                              padding_idx=PADDING_IDX, batch_tile=512):
    """Forward pass matching TransformerEmbeddingBag.forward (dropout=0)."""
    f32 = jnp.float32
    bf16 = jnp.bfloat16
    V, D = params["emb"].shape
    B, S = hashes.shape

    # --- pack parameters once, outside the kernel (bf16 weights, f32 vectors) ---
    scale = jnp.float32(1.0 / math.sqrt(D))
    wstk = jnp.stack([params["wq"] * scale, params["wk"], params["wv"],
                      params["wo"], params["w1"], params["w2"]], 0).astype(bf16)
    vecs = jnp.concatenate(
        [params["bq"] * scale, params["bk"], params["bv"],
         params["bo"], params["b1"], params["b2"],
         params["g1"], params["be1"], params["g2"], params["be2"],
         jnp.zeros((6, D), f32)], axis=0).astype(f32)            # (16, D)
    emb = params["emb"].astype(bf16)                             # (V, D)

    # --- grouping: G sequences of length S share one (up to) 128-row tile ---
    G = max(1, 128 // S)
    R = G * S
    step = 8 * G                                   # keeps TB, TB//G multiples of 8

    TB_full = _round_up(B, G)
    if TB_full <= max(batch_tile, step):
        TB = TB_full                               # single grid step, full-dim blocks
    else:
        TB = max(step, (batch_tile // step) * step)
    B_pad = _round_up(B, TB)
    grid = B_pad // TB

    hashes_p = jnp.pad(hashes.astype(jnp.int32), ((0, B_pad - B), (0, 0)),
                       constant_values=padding_idx)
    h_flat = hashes_p.reshape(B_pad * S, 1)        # for one-hot + pooling mask
    h_grp = hashes_p.reshape(B_pad // G, R)        # for the grouped key mask

    # block-diagonal additive mask: 0 within a sequence, -1e30 across sequences
    seq_id = np.arange(R) // S
    bmask = jnp.asarray(
        np.where(seq_id[:, None] == seq_id[None, :], 0.0, -1e30).astype(np.float32))

    out = pl.pallas_call(
        transformer_bag_kernel,
        out_shape=jax.ShapeDtypeStruct((B_pad, D), f32),
        grid_spec=pltpu.PrefetchScalarGridSpec(
            num_scalar_prefetch=0,
            grid=(grid,),
            in_specs=[
                pl.BlockSpec((TB * S, 1), lambda b: (b, 0)),        # flat hashes
                pl.BlockSpec((TB // G, R), lambda b: (b, 0)),       # grouped hashes
                pl.BlockSpec((V, D), lambda b: (0, 0)),             # emb table (bf16)
                pl.BlockSpec((6, D, D), lambda b: (0, 0, 0)),       # wq/wk/wv/wo/w1/w2
                pl.BlockSpec((16, D), lambda b: (0, 0)),            # biases / LN vecs
                pl.BlockSpec((R, R), lambda b: (0, 0)),             # block-diag mask
            ],
            out_specs=pl.BlockSpec((TB, D), lambda b: (b, 0)),
        ),
        compiler_params=pltpu.CompilerParams(
            dimension_semantics=("parallel",),      # v7x: shards grid across both TCs
            vmem_limit_bytes=48 << 20),
    )(h_flat, h_grp, emb, wstk, vecs, bmask)
    return out[:B]


def init_params(key, num_embeddings=NUM_EMBEDDINGS, embedding_dim=EMBEDDING_DIM):
    D = embedding_dim
    ks = jax.random.split(key, 8)

    def nrm(k, shape, s=0.1):
        return (jax.random.normal(k, shape) * s).astype(jnp.float32)

    emb = nrm(ks[0], (num_embeddings, D), 1.0)
    emb = emb.at[PADDING_IDX].set(0.0)   # nn.Embedding(padding_idx=0) init

    params = {
        "emb": emb,
        # attention projections, stored pre-transposed: y = x @ W + b
        "wq": nrm(ks[1], (D, D)), "wk": nrm(ks[2], (D, D)), "wv": nrm(ks[3], (D, D)),
        "bq": jnp.zeros((1, D), jnp.float32),
        "bk": jnp.zeros((1, D), jnp.float32),
        "bv": jnp.zeros((1, D), jnp.float32),
        "wo": nrm(ks[4], (D, D)), "bo": jnp.zeros((1, D), jnp.float32),
        # feed-forward (dim_feedforward == D)
        "w1": nrm(ks[5], (D, D)), "b1": jnp.zeros((1, D), jnp.float32),
        "w2": nrm(ks[6], (D, D)), "b2": jnp.zeros((1, D), jnp.float32),
        # layer norms
        "g1": jnp.ones((1, D), jnp.float32), "be1": jnp.zeros((1, D), jnp.float32),
        "g2": jnp.ones((1, D), jnp.float32), "be2": jnp.zeros((1, D), jnp.float32),
    }
    return params


def reference_forward(hashes, params, padding_idx=PADDING_IDX):
    """Pure-JAX f32 reference mirroring the PyTorch module math."""
    x = jnp.take(params["emb"], hashes, axis=0).astype(jnp.float32)
    mask = (hashes != padding_idx).astype(jnp.float32)
    denom = mask.sum(-1, keepdims=True)                          # (B,1)
    D = x.shape[-1]

    q = x @ params["wq"] + params["bq"]
    k = x @ params["wk"] + params["bk"]
    v = x @ params["wv"] + params["bv"]
    scores = jnp.einsum("bqd,bkd->bqk", q, k) / math.sqrt(D)
    scores = scores + (1.0 - mask)[:, None, :] * (-1e30)
    attn = jax.nn.softmax(scores, axis=-1)
    ctx = jnp.einsum("bqk,bkd->bqd", attn, v) @ params["wo"] + params["bo"]

    def ln(h, g, b):
        mu = h.mean(-1, keepdims=True)
        var = ((h - mu) ** 2).mean(-1, keepdims=True)
        return (h - mu) / jnp.sqrt(var + 1e-5) * g + b

    h = ln(x + ctx, params["g1"], params["be1"])
    ff = jax.nn.relu(h @ params["w1"] + params["b1"]) @ params["w2"] + params["b2"]
    y = ln(h + ff, params["g2"], params["be2"])
    return (y * mask[:, :, None] / denom[:, :, None]).sum(-2)


if __name__ == "__main__":
    key = jax.random.PRNGKey(0)
    k_param, k_hash, k_dummy, k_hash2 = jax.random.split(key, 4)
    params = init_params(k_param)

    # Tolerance note: the kernel uses bf16 MXU operands with f32 accumulation,
    # so it deviates from the all-f32 reference at the ~1e-3 level.
    RTOL = ATOL = 2e-2

    # --- small smoke test (B=2, S=8), single grid step ---
    B, S = 2, 8
    hashes = jax.random.randint(k_hash, (B, S), 1, NUM_EMBEDDINGS, dtype=jnp.int32)
    hashes = hashes.at[0, -2:].set(PADDING_IDX)
    hashes = hashes.at[1, -3:].set(PADDING_IDX)
    dummy = jax.random.normal(k_dummy, (B, S)).astype(jnp.float32)  # unused arg

    out = jax.block_until_ready(transformer_embedding_bag(hashes, dummy, params))
    ref = jax.block_until_ready(reference_forward(hashes, params))
    np.testing.assert_allclose(np.asarray(out), np.asarray(ref), rtol=RTOL, atol=ATOL)
    assert out.shape == (B, EMBEDDING_DIM) and out.dtype == jnp.float32

    # --- multi-step grid + batch padding: exercises the grouped block-diagonal
    #     masking across several groups and the padded-row handling ---
    B2 = 200
    hashes2 = jax.random.randint(k_hash2, (B2, S), 0, NUM_EMBEDDINGS, dtype=jnp.int32)
    hashes2 = hashes2.at[:, 0].set(jnp.maximum(hashes2[:, 0], 1))  # >=1 real token/row
    out2 = jax.block_until_ready(
        transformer_embedding_bag(hashes2, None, params, batch_tile=128))
    ref2 = jax.block_until_ready(reference_forward(hashes2, params))
    np.testing.assert_allclose(np.asarray(out2), np.asarray(ref2), rtol=RTOL, atol=ATOL)

    print("KERNEL_OK")
</pallas_src>

<mosaic_0001>
module attributes {stable_mosaic.version = 11 : i64} {
  func.func @transformer_bag_kernel(%arg0: i32, %arg1: memref<128x1xi32, #tpu.memory_space<vmem>>, %arg2: memref<1x128xi32, #tpu.memory_space<vmem>>, %arg3: memref<64x32xbf16, #tpu.memory_space<vmem>>, %arg4: memref<6x32x32xbf16, #tpu.memory_space<vmem>>, %arg5: memref<16x32xf32, #tpu.memory_space<vmem>>, %arg6: memref<128x128xf32, #tpu.memory_space<vmem>>, %arg7: memref<16x32xf32, #tpu.memory_space<vmem>>) attributes {dimension_semantics = [#tpu.dimension_semantics<parallel>], iteration_bounds = array<i64: 1>, scalar_prefetch = 0 : i64, scratch_operands = 0 : i64, tpu.core_type = #tpu.core_type<tc>, window_params = [{transform_indices = @transform_0, window_bounds = array<i64: 128, 1>}, {transform_indices = @transform_1, window_bounds = array<i64: 1, 128>}, {pipeline_mode = #tpu.pipeline_mode<synchronous>, transform_indices = @transform_2, window_bounds = array<i64: 64, 32>}, {pipeline_mode = #tpu.pipeline_mode<synchronous>, transform_indices = @transform_3, window_bounds = array<i64: 6, 32, 32>}, {pipeline_mode = #tpu.pipeline_mode<synchronous>, transform_indices = @transform_4, window_bounds = array<i64: 16, 32>}, {pipeline_mode = #tpu.pipeline_mode<synchronous>, transform_indices = @transform_5, window_bounds = array<i64: 128, 128>}, {transform_indices = @transform_6, window_bounds = array<i64: 16, 32>}]} {
    %c0 = arith.constant 0 : index
    %c0_0 = arith.constant 0 : index
    %0 = vector.load %arg1[%c0, %c0_0] : memref<128x1xi32, #tpu.memory_space<vmem>>, vector<128x1xi32>
    %1 = tpu.iota {dimensions = array<i32: 1>} : vector<128x64xi32>
    %2 = vector.broadcast %0 : vector<128x1xi32> to vector<128x64xi32>
    %3 = arith.cmpi eq, %2, %1 : vector<128x64xi32>
    %4 = arith.extui %3 : vector<128x64xi1> to vector<128x64xi32>
    %5 = arith.sitofp %4 : vector<128x64xi32> to vector<128x64xf32>
    %6 = arith.truncf %5 : vector<128x64xf32> to vector<128x64xbf16>
    %c0_1 = arith.constant 0 : index
    %c0_2 = arith.constant 0 : index
    %7 = vector.load %arg3[%c0_1, %c0_2] : memref<64x32xbf16, #tpu.memory_space<vmem>>, vector<64x32xbf16>
    %cst = arith.constant dense<0.000000e+00> : vector<128x32xf32>
    %8 = tpu.matmul %6, %7, %cst {dimension_numbers = #tpu.dot_dimension_numbers<[1], [0], [0], [1], [0, 0, 1, 1], [], []>} : vector<128x64xbf16>, vector<64x32xbf16>, vector<128x32xf32> -> vector<128x32xf32>
    %9 = arith.truncf %8 : vector<128x32xf32> to vector<128x32xbf16>
    %c0_3 = arith.constant 0 : index
    %c0_4 = arith.constant 0 : index
    %c0_5 = arith.constant 0 : index
    %10 = vector.load %arg4[%c0_3, %c0_4, %c0_5] : memref<6x32x32xbf16, #tpu.memory_space<vmem>>, vector<1x32x32xbf16>
    %11 = vector.shape_cast %10 : vector<1x32x32xbf16> to vector<32x32xbf16>
    %c1 = arith.constant 1 : index
    %c0_6 = arith.constant 0 : index
    %c0_7 = arith.constant 0 : index
    %12 = vector.load %arg4[%c1, %c0_6, %c0_7] : memref<6x32x32xbf16, #tpu.memory_space<vmem>>, vector<1x32x32xbf16>
    %13 = vector.shape_cast %12 : vector<1x32x32xbf16> to vector<32x32xbf16>
    %c2 = arith.constant 2 : index
    %c0_8 = arith.constant 0 : index
    %c0_9 = arith.constant 0 : index
    %14 = vector.load %arg4[%c2, %c0_8, %c0_9] : memref<6x32x32xbf16, #tpu.memory_space<vmem>>, vector<1x32x32xbf16>
    %15 = vector.shape_cast %14 : vector<1x32x32xbf16> to vector<32x32xbf16>
    %c3 = arith.constant 3 : index
    %c0_10 = arith.constant 0 : index
    %c0_11 = arith.constant 0 : index
    %16 = vector.load %arg4[%c3, %c0_10, %c0_11] : memref<6x32x32xbf16, #tpu.memory_space<vmem>>, vector<1x32x32xbf16>
    %17 = vector.shape_cast %16 : vector<1x32x32xbf16> to vector<32x32xbf16>
    %c4 = arith.constant 4 : index
    %c0_12 = arith.constant 0 : index
    %c0_13 = arith.constant 0 : index
    %18 = vector.load %arg4[%c4, %c0_12, %c0_13] : memref<6x32x32xbf16, #tpu.memory_space<vmem>>, vector<1x32x32xbf16>
    %19 = vector.shape_cast %18 : vector<1x32x32xbf16> to vector<32x32xbf16>
    %c5 = arith.constant 5 : index
    %c0_14 = arith.constant 0 : index
    %c0_15 = arith.constant 0 : index
    %20 = vector.load %arg4[%c5, %c0_14, %c0_15] : memref<6x32x32xbf16, #tpu.memory_space<vmem>>, vector<1x32x32xbf16>
    %21 = vector.shape_cast %20 : vector<1x32x32xbf16> to vector<32x32xbf16>
    %c0_16 = arith.constant 0 : index
    %c0_17 = arith.constant 0 : index
    %22 = vector.load %arg5[%c0_16, %c0_17] : memref<16x32xf32, #tpu.memory_space<vmem>>, vector<1x32xf32>
    %c1_18 = arith.constant 1 : index
    %c0_19 = arith.constant 0 : index
    %23 = vector.load %arg5[%c1_18, %c0_19] : memref<16x32xf32, #tpu.memory_space<vmem>>, vector<1x32xf32>
    %c2_20 = arith.constant 2 : index
    %c0_21 = arith.constant 0 : index
    %24 = vector.load %arg5[%c2_20, %c0_21] : memref<16x32xf32, #tpu.memory_space<vmem>>, vector<1x32xf32>
    %c3_22 = arith.constant 3 : index
    %c0_23 = arith.constant 0 : index
    %25 = vector.load %arg5[%c3_22, %c0_23] : memref<16x32xf32, #tpu.memory_space<vmem>>, vector<1x32xf32>
    %c4_24 = arith.constant 4 : index
    %c0_25 = arith.constant 0 : index
    %26 = vector.load %arg5[%c4_24, %c0_25] : memref<16x32xf32, #tpu.memory_space<vmem>>, vector<1x32xf32>
    %c5_26 = arith.constant 5 : index
    %c0_27 = arith.constant 0 : index
    %27 = vector.load %arg5[%c5_26, %c0_27] : memref<16x32xf32, #tpu.memory_space<vmem>>, vector<1x32xf32>
    %c6 = arith.constant 6 : index
    %c0_28 = arith.constant 0 : index
    %28 = vector.load %arg5[%c6, %c0_28] : memref<16x32xf32, #tpu.memory_space<vmem>>, vector<1x32xf32>
    %c7 = arith.constant 7 : index
    %c0_29 = arith.constant 0 : index
    %29 = vector.load %arg5[%c7, %c0_29] : memref<16x32xf32, #tpu.memory_space<vmem>>, vector<1x32xf32>
    %c8 = arith.constant 8 : index
    %c0_30 = arith.constant 0 : index
    %30 = vector.load %arg5[%c8, %c0_30] : memref<16x32xf32, #tpu.memory_space<vmem>>, vector<1x32xf32>
    %c9 = arith.constant 9 : index
    %c0_31 = arith.constant 0 : index
    %31 = vector.load %arg5[%c9, %c0_31] : memref<16x32xf32, #tpu.memory_space<vmem>>, vector<1x32xf32>
    %cst_32 = arith.constant dense<0.000000e+00> : vector<128x32xf32>
    %32 = tpu.matmul %9, %11, %cst_32 {dimension_numbers = #tpu.dot_dimension_numbers<[1], [0], [0], [1], [0, 0, 1, 1], [], []>} : vector<128x32xbf16>, vector<32x32xbf16>, vector<128x32xf32> -> vector<128x32xf32>
    %33 = vector.broadcast %22 : vector<1x32xf32> to vector<128x32xf32>
    %34 = arith.addf %32, %33 : vector<128x32xf32>
    %35 = arith.truncf %34 : vector<128x32xf32> to vector<128x32xbf16>
    %cst_33 = arith.constant dense<0.000000e+00> : vector<128x32xf32>
    %36 = tpu.matmul %9, %13, %cst_33 {dimension_numbers = #tpu.dot_dimension_numbers<[1], [0], [0], [1], [0, 0, 1, 1], [], []>} : vector<128x32xbf16>, vector<32x32xbf16>, vector<128x32xf32> -> vector<128x32xf32>
    %37 = vector.broadcast %23 : vector<1x32xf32> to vector<128x32xf32>
    %38 = arith.addf %36, %37 : vector<128x32xf32>
    %39 = arith.truncf %38 : vector<128x32xf32> to vector<128x32xbf16>
    %cst_34 = arith.constant dense<0.000000e+00> : vector<128x32xf32>
    %40 = tpu.matmul %9, %15, %cst_34 {dimension_numbers = #tpu.dot_dimension_numbers<[1], [0], [0], [1], [0, 0, 1, 1], [], []>} : vector<128x32xbf16>, vector<32x32xbf16>, vector<128x32xf32> -> vector<128x32xf32>
    %41 = vector.broadcast %24 : vector<1x32xf32> to vector<128x32xf32>
    %42 = arith.addf %40, %41 : vector<128x32xf32>
    %43 = arith.truncf %42 : vector<128x32xf32> to vector<128x32xbf16>
    %44 = vector.shape_cast %35 : vector<128x32xbf16> to vector<1x128x32xbf16>
    %45 = vector.shape_cast %39 : vector<128x32xbf16> to vector<1x128x32xbf16>
    %46 = vector.shape_cast %43 : vector<128x32xbf16> to vector<1x128x32xbf16>
    %c0_35 = arith.constant 0 : index
    %c0_36 = arith.constant 0 : index
    %47 = vector.load %arg2[%c0_35, %c0_36] : memref<1x128xi32, #tpu.memory_space<vmem>>, vector<1x128xi32>
    %c0_i32 = arith.constant 0 : i32
    %48 = vector.broadcast %c0_i32 : i32 to vector<1x128xi32>
    %49 = arith.cmpi ne, %47, %48 : vector<1x128xi32>
    %50 = arith.extui %49 : vector<1x128xi1> to vector<1x128xi32>
    %51 = arith.sitofp %50 : vector<1x128xi32> to vector<1x128xf32>
    "tpu.trace_start"() <{level = 10 : i32, message = "gqd,gkd->gqk"}> : () -> ()
    %cst_37 = arith.constant dense<0.000000e+00> : vector<1x128x128xf32>
    %52 = tpu.matmul %44, %45, %cst_37 {dimension_numbers = #tpu.dot_dimension_numbers<[2], [2], [1], [1], [0, 0, 0, 1, 1, 1], [0], [0]>} : vector<1x128x32xbf16>, vector<1x128x32xbf16>, vector<1x128x128xf32> -> vector<1x128x128xf32>
    "tpu.trace_stop"() : () -> ()
    %c0_38 = arith.constant 0 : index
    %c0_39 = arith.constant 0 : index
    %53 = vector.load %arg6[%c0_38, %c0_39] : memref<128x128xf32, #tpu.memory_space<vmem>>, vector<128x128xf32>
    %54 = vector.shape_cast %53 : vector<128x128xf32> to vector<1x128x128xf32>
    %55 = arith.addf %52, %54 : vector<1x128x128xf32>
    %cst_40 = arith.constant 1.000000e+00 : f32
    %56 = vector.broadcast %cst_40 : f32 to vector<1x128xf32>
    %57 = arith.subf %56, %51 : vector<1x128xf32>
    %cst_41 = arith.constant -1.000000e+30 : f32
    %58 = vector.broadcast %cst_41 : f32 to vector<1x128xf32>
    %59 = arith.mulf %57, %58 : vector<1x128xf32>
    %60 = vector.shape_cast %59 : vector<1x128xf32> to vector<1x1x128xf32>
    %61 = vector.broadcast %60 : vector<1x1x128xf32> to vector<1x128x128xf32>
    %62 = arith.addf %55, %61 : vector<1x128x128xf32>
    %cst_42 = arith.constant dense<0xFF800000> : vector<1x128xf32>
    %63 = vector.multi_reduction <maximumf>, %62, %cst_42 [2] : vector<1x128x128xf32> to vector<1x128xf32>
    %64 = vector.shape_cast %63 : vector<1x128xf32> to vector<1x128x1xf32>
    %65 = vector.broadcast %64 : vector<1x128x1xf32> to vector<1x128x128xf32>
    %66 = arith.subf %62, %65 : vector<1x128x128xf32>
    %67 = math.exp %66 : vector<1x128x128xf32>
    %cst_43 = arith.constant dense<0.000000e+00> : vector<1x128xf32>
    %68 = vector.multi_reduction <add>, %67, %cst_43 [2] : vector<1x128x128xf32> to vector<1x128xf32>
    %69 = vector.shape_cast %68 : vector<1x128xf32> to vector<1x128x1xf32>
    %70 = tpu.reciprocal %69 {approx = true} : vector<1x128x1xf32> -> vector<1x128x1xf32>
    %71 = vector.broadcast %70 : vector<1x128x1xf32> to vector<1x128x128xf32>
    %72 = arith.mulf %67, %71 : vector<1x128x128xf32>
    %73 = arith.truncf %72 : vector<1x128x128xf32> to vector<1x128x128xbf16>
    "tpu.trace_start"() <{level = 10 : i32, message = "gqk,gkd->gqd"}> : () -> ()
    %cst_44 = arith.constant dense<0.000000e+00> : vector<1x128x32xf32>
    %74 = tpu.matmul %73, %46, %cst_44 {dimension_numbers = #tpu.dot_dimension_numbers<[2], [1], [1], [2], [0, 0, 0, 1, 1, 2], [0], [0]>} : vector<1x128x128xbf16>, vector<1x128x32xbf16>, vector<1x128x32xf32> -> vector<1x128x32xf32>
    "tpu.trace_stop"() : () -> ()
    %75 = vector.shape_cast %74 : vector<1x128x32xf32> to vector<128x32xf32>
    %76 = arith.truncf %75 : vector<128x32xf32> to vector<128x32xbf16>
    %cst_45 = arith.constant dense<0.000000e+00> : vector<128x32xf32>
    %77 = tpu.matmul %76, %17, %cst_45 {dimension_numbers = #tpu.dot_dimension_numbers<[1], [0], [0], [1], [0, 0, 1, 1], [], []>} : vector<128x32xbf16>, vector<32x32xbf16>, vector<128x32xf32> -> vector<128x32xf32>
    %78 = vector.broadcast %25 : vector<1x32xf32> to vector<128x32xf32>
    %79 = arith.addf %77, %78 : vector<128x32xf32>
    %80 = arith.addf %8, %79 : vector<128x32xf32>
    %cst_46 = arith.constant dense<0.000000e+00> : vector<128xf32>
    %81 = vector.multi_reduction <add>, %80, %cst_46 [1] : vector<128x32xf32> to vector<128xf32>
    %82 = vector.shape_cast %81 : vector<128xf32> to vector<128x1xf32>
    %cst_47 = arith.constant 3.200000e+01 : f32
    %83 = vector.broadcast %cst_47 : f32 to vector<128x1xf32>
    %84 = arith.divf %82, %83 : vector<128x1xf32>
    %85 = vector.broadcast %84 : vector<128x1xf32> to vector<128x32xf32>
    %86 = arith.subf %80, %85 : vector<128x32xf32>
    %87 = arith.mulf %86, %86 : vector<128x32xf32>
    %cst_48 = arith.constant dense<0.000000e+00> : vector<128xf32>
    %88 = vector.multi_reduction <add>, %87, %cst_48 [1] : vector<128x32xf32> to vector<128xf32>
    %89 = vector.shape_cast %88 : vector<128xf32> to vector<128x1xf32>
    %cst_49 = arith.constant 3.200000e+01 : f32
    %90 = vector.broadcast %cst_49 : f32 to vector<128x1xf32>
    %91 = arith.divf %89, %90 : vector<128x1xf32>
    %cst_50 = arith.constant 9.99999974E-6 : f32
    %92 = vector.broadcast %cst_50 : f32 to vector<128x1xf32>
    %93 = arith.addf %91, %92 : vector<128x1xf32>
    %94 = math.rsqrt %93 : vector<128x1xf32>
    %95 = vector.broadcast %94 : vector<128x1xf32> to vector<128x32xf32>
    %96 = arith.mulf %86, %95 : vector<128x32xf32>
    %97 = vector.broadcast %28 : vector<1x32xf32> to vector<128x32xf32>
    %98 = arith.mulf %96, %97 : vector<128x32xf32>
    %99 = vector.broadcast %29 : vector<1x32xf32> to vector<128x32xf32>
    %100 = arith.addf %98, %99 : vector<128x32xf32>
    %101 = arith.truncf %100 : vector<128x32xf32> to vector<128x32xbf16>
    %cst_51 = arith.constant dense<0.000000e+00> : vector<128x32xf32>
    %102 = tpu.matmul %101, %19, %cst_51 {dimension_numbers = #tpu.dot_dimension_numbers<[1], [0], [0], [1], [0, 0, 1, 1], [], []>} : vector<128x32xbf16>, vector<32x32xbf16>, vector<128x32xf32> -> vector<128x32xf32>
    %103 = vector.broadcast %26 : vector<1x32xf32> to vector<128x32xf32>
    %104 = arith.addf %102, %103 : vector<128x32xf32>
    %cst_52 = arith.constant 0.000000e+00 : f32
    %105 = vector.broadcast %cst_52 : f32 to vector<128x32xf32>
    %106 = arith.maximumf %104, %105 : vector<128x32xf32>
    %107 = arith.truncf %106 : vector<128x32xf32> to vector<128x32xbf16>
    %cst_53 = arith.constant dense<0.000000e+00> : vector<128x32xf32>
    %108 = tpu.matmul %107, %21, %cst_53 {dimension_numbers = #tpu.dot_dimension_numbers<[1], [0], [0], [1], [0, 0, 1, 1], [], []>} : vector<128x32xbf16>, vector<32x32xbf16>, vector<128x32xf32> -> vector<128x32xf32>
    %109 = vector.broadcast %27 : vector<1x32xf32> to vector<128x32xf32>
    %110 = arith.addf %108, %109 : vector<128x32xf32>
    %111 = arith.addf %100, %110 : vector<128x32xf32>
    %cst_54 = arith.constant dense<0.000000e+00> : vector<128xf32>
    %112 = vector.multi_reduction <add>, %111, %cst_54 [1] : vector<128x32xf32> to vector<128xf32>
    %113 = vector.shape_cast %112 : vector<128xf32> to vector<128x1xf32>
    %cst_55 = arith.constant 3.200000e+01 : f32
    %114 = vector.broadcast %cst_55 : f32 to vector<128x1xf32>
    %115 = arith.divf %113, %114 : vector<128x1xf32>
    %116 = vector.broadcast %115 : vector<128x1xf32> to vector<128x32xf32>
    %117 = arith.subf %111, %116 : vector<128x32xf32>
    %118 = arith.mulf %117, %117 : vector<128x32xf32>
    %cst_56 = arith.constant dense<0.000000e+00> : vector<128xf32>
    %119 = vector.multi_reduction <add>, %118, %cst_56 [1] : vector<128x32xf32> to vector<128xf32>
    %120 = vector.shape_cast %119 : vector<128xf32> to vector<128x1xf32>
    %cst_57 = arith.constant 3.200000e+01 : f32
    %121 = vector.broadcast %cst_57 : f32 to vector<128x1xf32>
    %122 = arith.divf %120, %121 : vector<128x1xf32>
    %cst_58 = arith.constant 9.99999974E-6 : f32
    %123 = vector.broadcast %cst_58 : f32 to vector<128x1xf32>
    %124 = arith.addf %122, %123 : vector<128x1xf32>
    %125 = math.rsqrt %124 : vector<128x1xf32>
    %126 = vector.broadcast %125 : vector<128x1xf32> to vector<128x32xf32>
    %127 = arith.mulf %117, %126 : vector<128x32xf32>
    %128 = vector.broadcast %30 : vector<1x32xf32> to vector<128x32xf32>
    %129 = arith.mulf %127, %128 : vector<128x32xf32>
    %130 = vector.broadcast %31 : vector<1x32xf32> to vector<128x32xf32>
    %131 = arith.addf %129, %130 : vector<128x32xf32>
    %c0_i32_59 = arith.constant 0 : i32
    %132 = vector.broadcast %c0_i32_59 : i32 to vector<128x1xi32>
    %133 = arith.cmpi ne, %0, %132 : vector<128x1xi32>
    %134 = arith.extui %133 : vector<128x1xi1> to vector<128x1xi32>
    %135 = arith.sitofp %134 : vector<128x1xi32> to vector<128x1xf32>
    %136 = vector.shape_cast %135 : vector<128x1xf32> to vector<16x8x1xf32>
    %cst_60 = arith.constant dense<0.000000e+00> : vector<16x1xf32>
    %137 = vector.multi_reduction <add>, %136, %cst_60 [1] : vector<16x8x1xf32> to vector<16x1xf32>
    %138 = vector.shape_cast %137 : vector<16x1xf32> to vector<16x1x1xf32>
    %cst_61 = arith.constant 1.000000e+00 : f32
    %139 = vector.broadcast %cst_61 : f32 to vector<16x1x1xf32>
    %140 = arith.maximumf %138, %139 : vector<16x1x1xf32>
    %141 = vector.broadcast %140 : vector<16x1x1xf32> to vector<16x8x1xf32>
    %142 = arith.divf %136, %141 : vector<16x8x1xf32>
    %143 = vector.shape_cast %131 : vector<128x32xf32> to vector<16x8x32xf32>
    %144 = vector.broadcast %142 : vector<16x8x1xf32> to vector<16x8x32xf32>
    %145 = arith.mulf %143, %144 : vector<16x8x32xf32>
    %cst_62 = arith.constant dense<0.000000e+00> : vector<16x32xf32>
    %146 = vector.multi_reduction <add>, %145, %cst_62 [1] : vector<16x8x32xf32> to vector<16x32xf32>
    %c0_63 = arith.constant 0 : index
    %c0_64 = arith.constant 0 : index
    %147 = vector.load %arg7[%c0_63, %c0_64] : memref<16x32xf32, #tpu.memory_space<vmem>>, vector<16x32xf32>
    tpu.vector_store %arg7[%c0_63, %c0_64], %146 {strides = array<i32>} : memref<16x32xf32, #tpu.memory_space<vmem>>, vector<16x32xf32>,
    return
  }
  func.func @transform_0(%arg0: i32) -> (i32, i32) {
    %c0_i32 = arith.constant 0 : i32
    %c0_i32_0 = arith.constant 0 : i32
    return %arg0, %c0_i32 : i32, i32
  }
  func.func @transform_1(%arg0: i32) -> (i32, i32) {
    %c0_i32 = arith.constant 0 : i32
    %c0_i32_0 = arith.constant 0 : i32
    return %arg0, %c0_i32 : i32, i32
  }
  func.func @transform_2(%arg0: i32) -> (i32, i32) {
    %c0_i32 = arith.constant 0 : i32
    %c0_i32_0 = arith.constant 0 : i32
    %c0_i32_1 = arith.constant 0 : i32
    return %c0_i32, %c0_i32_0 : i32, i32
  }
  func.func @transform_3(%arg0: i32) -> (i32, i32, i32) {
    %c0_i32 = arith.constant 0 : i32
    %c0_i32_0 = arith.constant 0 : i32
    %c0_i32_1 = arith.constant 0 : i32
    %c0_i32_2 = arith.constant 0 : i32
    return %c0_i32, %c0_i32_0, %c0_i32_1 : i32, i32, i32
  }
  func.func @transform_4(%arg0: i32) -> (i32, i32) {
    %c0_i32 = arith.constant 0 : i32
    %c0_i32_0 = arith.constant 0 : i32
    %c0_i32_1 = arith.constant 0 : i32
    return %c0_i32, %c0_i32_0 : i32, i32
  }
  func.func @transform_5(%arg0: i32) -> (i32, i32) {
    %c0_i32 = arith.constant 0 : i32
    %c0_i32_0 = arith.constant 0 : i32
    %c0_i32_1 = arith.constant 0 : i32
    return %c0_i32, %c0_i32_0 : i32, i32
  }
  func.func @transform_6(%arg0: i32) -> (i32, i32) {
    %c0_i32 = arith.constant 0 : i32
    %c0_i32_0 = arith.constant 0 : i32
    return %arg0, %c0_i32 : i32, i32
  }
}

</mosaic_0001>

<bundles_post_ra>
// kernel: tpu_custom_call.1
= control target key start
LH: loop header
LB: loop body
LE: loop exit
PB: predicated region body
PF: predicated region fallthrough
CT: control target
= control target key end

     0   :  { %11 = vsyncpa [#allocation3], 0  ;;  %s5220_s0 = inlined_call_operand.vmem [shape: s32[128,1], index: 0, kind: input, shape index: {}]   ;;  %s5221_s1 = inlined_call_operand.vmem [shape: s32[1,128], index: 1, kind: input, shape index: {}]   ;;  %s5222_s2 = inlined_call_operand.vmem [shape: bf16[64,32], index: 2, kind: input, shape index: {}]   ;;  %s5223_s3 = inlined_call_operand.hbm [shape: bf16[6,32,32], index: 3, kind: input, shape index: {}]   ;;  %s5224_s4 = inlined_call_operand.vmem [shape: f32[16,32], index: 4, kind: input, shape index: {}]   ;;  %s5225_s5 = inlined_call_operand.vmem [shape: f32[128,128], index: 5, kind: input, shape index: {}]   ;;  %s5226_s6 = inlined_call_operand.hbm [shape: f32[16,32], index: 6, kind: output, shape index: {}]  }
   0x1   :  { %12 = vsyncpa [#allocation4], 0  ;;  %s23_s23 = sshll.u32 %s5223_s3, 4  ;;  %s3327_s24 = smov [#allocation2]   ;;  %s24_s23 = int_to_ptr.hbm [resolvable:$true] %s23_s23 }
   0x2   :  { %s25_s25 = sshll.u32 %s3327_s24, 4  ;;  %s3328_s26 = smov 64   ;;  %s26_s25 = int_to_ptr.vmem [resolvable:$true] %s25_s25 }
   0x3   :  { %s3329_s27 = smov 4  }
   0x4   :  { %31 = dma.hbm_to_vmem [thread:$0]  %s24_s23, 1536, %s26_s25, [#allocation3], %s3328_s26, %s3328_s26, %s3329_s27  }
   0x5   :  { %3323 = dma.done.wait [#allocation3], 1536  }
   0x6   :  { %3324 = vsyncadd [#allocation3], 4294965760  ;;  %v3330_v0 = vmov 0   ;;  %v43_v1 = vld [vmem:[%s5220_s0 + $0x10] sm:$0xff]  ;;  %v41_v2 = vld [vmem:[%s5220_s0] sm:$0xff]  ;;  %vm2255_vm1 = vcmask 7168   ;;  %v57_v56 = vlaneseq }
   0x7   :  { %3091 = vset.pattern.permute.xlu1 %v3330_v0  ;;  %3090 = vset.pattern.permute.xlu0 %v3330_v0  ;;  %v45_v3 = vld [vmem:[%s5220_s0 + $0x20] sm:$0xff]  ;;  %vm2207_vm0 = vcmp.ne.s32.totalorder %v41_v2, 0  ;;  %v5227_v4 = vmov 0.0   ;;  %v44_v7 = vld [vmem:[%s5220_s0 + $0x18] sm:$0xff]  ;;  %v42_v9 = vld [vmem:[%s5220_s0 + $0x8] sm:$0xff]  ;;  %vm195_vm15 = vcmask 523264  }
   0x8   :  { %3092 = vset.pattern.permute.xlu2 %v3330_v0  ;;  %66 = vperm.xlu1 %3091, %v43_v1   ;;  %v3384_v5 = vsel %vm2207_vm0, 1.0, %v5227_v4  ;;  %vm2210_vm2 = vcmp.ne.s32.totalorder %v44_v7, 0  ;;  %v48_v10 = vld [vmem:[%s5220_s0 + $0x38] sm:$0xff]  ;;  %v46_v14 = vld [vmem:[%s5220_s0 + $0x28] sm:$0xff]  ;;  %v47_v20 = vld [vmem:[%s5220_s0 + $0x30] sm:$0xff]  ;;  %v3491_v58 = vand.u32 127, %v57_v56 }
   0x9   :  { %60 = vperm.xlu0 %3090, %v41_v2   ;;  %72 = vperm.xlu2 %3092, %v45_v3   ;;  %v2256_v6 = vsel %vm2255_vm1, %v3384_v5, 0.0  ;;  %v3398_v11 = vsel %vm2210_vm2, 1.0, %v5227_v4  ;;  %vm2214_vm3 = vcmp.ne.s32.totalorder %v48_v10, 0  ;;  %v49_v22 = vld [vmem:[%s5220_s0 + $0x40] sm:$0xff]  ;;  %v51_v24 = vld [vmem:[%s5220_s0 + $0x50] sm:$0xff]  ;;  %v50_v25 = vld [vmem:[%s5220_s0 + $0x48] sm:$0xff] }
   0xa   :  { %v2257_v8 = vrot.slane %v2256_v6, 4  ;;  %v3402_v13 = vsel %vm2255_vm1, %v3398_v11, 0.0  ;;  %v3408_v15 = vsel %vm2214_vm3, 1.0, %v5227_v4  ;;  %vm2217_vm4 = vcmp.ne.s32.totalorder %v51_v24, 0  ;;  %v52_v27 = vld [vmem:[%s5220_s0 + $0x58] sm:$0xff]  ;;  %v54_v34 = vld [vmem:[%s5220_s0 + $0x68] sm:$0xff] }
   0xb   :  { %5236 = vst [vmem:[#allocation8_spill] sm:$0xff] %v3408_v15  ;;  %v3412_v17 = vsel %vm2255_vm1, %v3408_v15, 0.0  ;;  %v3427_v26 = vsel %vm2217_vm4, 1.0, %v5227_v4  ;;  %vm2212_vm5 = vcmp.ne.s32.totalorder %v46_v14, 0  ;;  %vm2220_vm8 = vcmp.ne.s32.totalorder %v54_v34, 0  ;;  %v53_v37 = vld [vmem:[%s5220_s0 + $0x60] sm:$0xff] }
   0xc   :  { %v2258_v12 = vadd.f32 %v2257_v8, %v2256_v6  ;;  %5237 = vst [vmem:[#allocation9_spill] sm:$0xff] %v3412_v17  ;;  %v3434_v28 = vsel %vm2255_vm1, %v3427_v26, 0.0  ;;  %v3437_v31 = vsel %vm2212_vm5, 1.0, %v5227_v4  ;;  %v3450_v39 = vsel %vm2220_vm8, 1.0, %v5227_v4  ;;  %v55_v40 = vld [vmem:[%s5220_s0 + $0x70] sm:$0xff]  ;;  %v3056_v44 = vld [vmem:[%s5222_s2 + $0x18] sm:$0xff] }
   0xd   :  { %v3444_v36 = vsel %vm2255_vm1, %v3437_v31, 0.0  ;;  %5238 = vst [vmem:[#allocation10_spill] sm:$0xff] %v3450_v39  ;;  %v3457_v43 = vsel %vm2255_vm1, %v3450_v39, 0.0  ;;  %224 = vmatpush.bf16.msra.mxu0 %v3056_v44  ;;  %v56_v48 = vld [vmem:[%s5220_s0 + $0x78] sm:$0xff]  ;;  %vm2221_vm12 = vcmp.ne.s32.totalorder %v55_v40, 0  ;;  %v3055_v53 = vld [vmem:[%s5222_s2 + $0x10] sm:$0xff] }
   0xe   :  { %v2259_v16 = vrot.slane %v2258_v12, 2  ;;  %vm2222_vm11 = vcmp.ne.s32.totalorder %v56_v48, 0  ;;  %v3476_v51 = vsel %vm2221_vm12, 1.0, %v5227_v4  ;;  %v3054_v54 = vld [vmem:[%s5222_s2 + $0x8] sm:$0xff]  ;;  %v3053_v55 = vld [vmem:[%s5222_s2] sm:$0xff]  ;;  %s2879_s11 = sshll.u32 %s5226_s6, 4  ;;  %s2880_s11 = int_to_ptr.hbm [resolvable:$true] %s2879_s11 }
   0xf   :  { %v3469_v49 = vsel %vm2222_vm11, 1.0, %v5227_v4  ;;  %5242 = vst [vmem:[#allocation14_spill] sm:$0xff] %v3476_v51  ;;  %v3480_v52 = vsel %vm2255_vm1, %v3476_v51, 0.0  ;;  %s3334_s12 = smov 128   ;;  %s3335_s13 = smov 8  }
  0x10   :  { %69 = vperm.xlu1 %3091, %v44_v7   ;;  %v2260_v18 = vadd.f32 %v2259_v16, %v2258_v12  ;;  %5240 = vst [vmem:[#allocation12_spill] sm:$0xff] %v3469_v49  ;;  %v3473_v50 = vsel %vm2255_vm1, %v3469_v49, 0.0 }
  0x11   :  { %63 = vperm.xlu0 %3090, %v42_v9   ;;  %75 = vperm.xlu2 %3092, %v46_v14   ;;  %5241 = vst [vmem:[#allocation13_spill] sm:$0xff] %v3473_v50 }
  0x12   :  { %v2261_v19 = vrot.slane %v2260_v18, 1  ;;  %5243 = vst [vmem:[#allocation15_spill] sm:$0xff] %v3480_v52  ;;  %225 = vmatpush.bf16.msra.mxu0 %v3055_v53 }
  0x14   :  { %v2262_v21 = vadd.f32 %v2261_v19, %v2260_v18 }
  0x16   :  { %v2368_v23 = vmax.f32 %v2262_v21, 1.0  ;;  %226 = vmatpush.bf16.msra.mxu0 %v3054_v54 }
  0x18   :  { %81 = vperm.xlu1 %3091, %v48_v10   ;;  %3103 = vrcp.f32 %v2368_v23  ;;  %vm2389_vm6 = vweird.f32 %v2368_v23  ;;  %v2393_v32 = vand.u32 2147483647, %v2368_v23  ;;  %v2395_v33 = vand.u32 2147483648, %v2368_v23 }
  0x19   :  { %78 = vperm.xlu0 %3090, %v47_v20   ;;  %84 = vperm.xlu2 %3092, %v49_v22  }
  0x1a   :  { %v2396_v41 = vor.u32 1.1754944e-38, %v2395_v33  ;;  %vm2394_vm10 = vcmp.eq.f32.partialorder %v2393_v32, 8.507059e+37  ;;  %227 = vmatpush.bf16.msra.mxu0 %v3053_v55 }
  0x1e   :  { %v3104_v29 = vpop.eup %3103 }
  0x1f   :  { %v2385_v30 = vmul.f32 %v3104_v29, %v2368_v23  ;;  %vm2390_vm7 = vweird.f32 %v3104_v29 }
  0x20   :  { %90 = vperm.xlu1 %3091, %v51_v24   ;;  %vm2391_vm9 = vmor %vm2389_vm6, %vm2390_vm7 }
  0x21   :  { %87 = vperm.xlu0 %3090, %v50_v25   ;;  %93 = vperm.xlu2 %3092, %v52_v27   ;;  %v2386_v35 = vsub.f32 1.0, %v2385_v30 }
  0x23   :  { %v2387_v38 = vmul.f32 %v3104_v29, %v2386_v35 }
  0x25   :  { %v2388_v42 = vadd.f32 %v3104_v29, %v2387_v38  ;;  %v3062_v38 = vld [vmem:[#allocation2 + $0x28] sm:$0xff] }
  0x26   :  { %516 = vmatpush.bf16.msra.mxu3 %v3062_v38 }
  0x27   :  { %v2392_v45 = vsel %vm2391_vm9, %v3104_v29, %v2388_v42  ;;  %v3061_v42 = vld [vmem:[#allocation2 + $0x20] sm:$0xff] }
  0x28   :  { %99 = vperm.xlu1 %3091, %v54_v34   ;;  %v2397_v46 = vsel %vm2394_vm10, %v2396_v41, %v2392_v45  ;;  %v3057_v41 = vld [vmem:[#allocation2] sm:$0xff] }
  0x29   :  { %96 = vperm.xlu0 %3090, %v53_v37   ;;  %102 = vperm.xlu2 %3092, %v55_v40   ;;  %v3463_v47 = vmul.f32 %v3384_v5, %v2397_v46  ;;  %v3058_v37 = vld [vmem:[#allocation2 + $0x8] sm:$0xff] }
  0x2a   :  { %360 = vmatpush.bf16.msrb.mxu0 %v3058_v37  ;;  %3069 = vmatpush.bf16.msra.mxu1 %v3058_v37 }
  0x2b   :  { %5239 = vst [vmem:[#allocation11_spill] sm:$0xff] %v3463_v47  ;;  %3070 = vmatpush.bf16.msra.mxu2 %v3058_v37  ;;  %517 = vmatpush.bf16.msra.mxu3 %v3061_v42 }
  0x2e   :  { %361 = vmatpush.bf16.msrb.mxu0 %v3057_v41  ;;  %3071 = vmatpush.bf16.msra.mxu1 %v3057_v41 }
  0x2f   :  { %3072 = vmatpush.bf16.msra.mxu2 %v3057_v41 }
  0x31   :  { %105 = vperm.xlu0 %3090, %v56_v48  }
  0x63   :  { %v73_v3 = vpop.permute.xlu2 %72 }
  0x64   :  { %vm111_vm3 = vcmp.eq.s32.totalorder %v73_v3, %v3491_v58 }
  0x65   :  { %v2896_v7 = vsel %vm111_vm3, 1.0, %v5227_v4 }
  0x6b   :  { %v76_v6 = vpop.permute.xlu2 %75 }
  0x6c   :  { %vm112_vm4 = vcmp.eq.s32.totalorder %v76_v6, %v3491_v58 }
  0x6d   :  { %v2897_v8 = vsel %vm112_vm4, 1.0, %v5227_v4 }
  0x6e   :  { %v157_v9 = vpack.c.bf16 %v2897_v8, %v2896_v7  ;;  %v3059_v8 = vld [vmem:[#allocation2 + $0x10] sm:$0xff] }
  0x73   :  { %v85_v20 = vpop.permute.xlu2 %84 }
  0x74   :  { %vm115_vm7 = vcmp.eq.s32.totalorder %v85_v20, %v3491_v58 }
  0x75   :  { %v2900_v21 = vsel %vm115_vm7, 1.0, %v5227_v4 }
  0x7a   :  { %v67_v60 = vpop.permute.xlu1 %66 }
  0x7b   :  { %v61_v57 = vpop.permute.xlu0 %60  ;;  %vm109_vm0 = vcmp.eq.s32.totalorder %v67_v60, %v3491_v58  ;;  %v94_v24 = vpop.permute.xlu2 %93 }
  0x7c   :  { %vm107_vm13 = vcmp.eq.s32.totalorder %v61_v57, %v3491_v58  ;;  %v2894_v1 = vsel %vm109_vm0, 1.0, %v5227_v4  ;;  %vm118_vm9 = vcmp.eq.s32.totalorder %v94_v24, %v3491_v58  ;;  %vm329_vm0 = vcmask 261120  }
  0x7d   :  { %v2892_v61 = vsel %vm107_vm13, 1.0, %v5227_v4  ;;  %v2903_v27 = vsel %vm118_vm9, 1.0, %v5227_v4 }
  0x82   :  { %v70_v0 = vpop.permute.xlu1 %69 }
  0x83   :  { %v64_v59 = vpop.permute.xlu0 %63  ;;  %vm110_vm2 = vcmp.eq.s32.totalorder %v70_v0, %v3491_v58  ;;  %v103_v45 = vpop.permute.xlu2 %102 }
  0x84   :  { %vm108_vm14 = vcmp.eq.s32.totalorder %v64_v59, %v3491_v58  ;;  %v2895_v2 = vsel %vm110_vm2, 1.0, %v5227_v4 }
  0x85   :  { %v2893_v62 = vsel %vm108_vm14, 1.0, %v5227_v4  ;;  %v156_v5 = vpack.c.bf16 %v2895_v2, %v2894_v1  ;;  %vm121_vm14 = vcmp.eq.s32.totalorder %v103_v45, %v3491_v58  ;;  %v3060_v2 = vld [vmem:[#allocation2 + $0x18] sm:$0xff] }
  0x86   :  { %v155_v63 = vpack.c.bf16 %v2893_v62, %v2892_v61  ;;  %v2906_v48 = vsel %vm121_vm14, 1.0, %v5227_v4  ;;  %438 = vmatpush.bf16.msrb.mxu2 %v3060_v2 }
  0x88   :  { %2924 = vmatmul.msk.bf16.vlgmr.msra.gmra.mxu0 %vm195_vm15, %v155_v63 }
  0x8a   :  { %v82_v10 = vpop.permute.xlu1 %81  ;;  %439 = vmatpush.bf16.msrb.mxu2 %v3059_v8 }
  0x8b   :  { %v79_v12 = vpop.permute.xlu0 %78  ;;  %vm114_vm5 = vcmp.eq.s32.totalorder %v82_v10, %v3491_v58 }
  0x8c   :  { %vm113_vm6 = vcmp.eq.s32.totalorder %v79_v12, %v3491_v58  ;;  %v2899_v14 = vsel %vm114_vm5, 1.0, %v5227_v4 }
  0x8d   :  { %v2898_v16 = vsel %vm113_vm6, 1.0, %v5227_v4 }
  0x8e   :  { %v158_v18 = vpack.c.bf16 %v2899_v14, %v2898_v16 }
  0x92   :  { %v91_v25 = vpop.permute.xlu1 %90 }
  0x93   :  { %v88_v19 = vpop.permute.xlu0 %87  ;;  %vm117_vm10 = vcmp.eq.s32.totalorder %v91_v25, %v3491_v58 }
  0x94   :  { %vm116_vm8 = vcmp.eq.s32.totalorder %v88_v19, %v3491_v58  ;;  %v2902_v29 = vsel %vm117_vm10, 1.0, %v5227_v4 }
  0x95   :  { %v2901_v22 = vsel %vm116_vm8, 1.0, %v5227_v4  ;;  %v160_v30 = vpack.c.bf16 %v2903_v27, %v2902_v29 }
  0x96   :  { %v159_v23 = vpack.c.bf16 %v2901_v22, %v2900_v21 }
  0x98   :  { %2925 = vmatmul.msk.bf16.gmra.mxu0 %vm195_vm15, %v156_v5 }
  0x9a   :  { %v100_v32 = vpop.permute.xlu1 %99 }
  0x9b   :  { %v97_v33 = vpop.permute.xlu0 %96  ;;  %vm120_vm11 = vcmp.eq.s32.totalorder %v100_v32, %v3491_v58 }
  0x9c   :  { %vm119_vm12 = vcmp.eq.s32.totalorder %v97_v33, %v3491_v58  ;;  %v2905_v34 = vsel %vm120_vm11, 1.0, %v5227_v4 }
  0x9d   :  { %v2904_v35 = vsel %vm119_vm12, 1.0, %v5227_v4 }
  0x9e   :  { %v161_v40 = vpack.c.bf16 %v2905_v34, %v2904_v35 }
  0xa3   :  { %v106_v44 = vpop.permute.xlu0 %105 }
  0xa4   :  { %vm122_vm13 = vcmp.eq.s32.totalorder %v106_v44, %v3491_v58 }
  0xa5   :  { %v2907_v46 = vsel %vm122_vm13, 1.0, %v5227_v4 }
  0xa6   :  { %v162_v53 = vpack.c.bf16 %v2907_v46, %v2906_v48  ;;  %v3094_v48 = vld [vmem:[%s5224_s4 + $0x2] ss:$0 sm:$0xff] }
  0xa8   :  { %2926 = vmatmul.msk.bf16.gmra.mxu0 %vm195_vm15, %v157_v9 }
  0xb8   :  { %2927 = vmatmul.msk.bf16.gmra.mxu0 %vm195_vm15, %v158_v18 }
  0xc8   :  { %2928 = vmatmul.msk.bf16.gmra.mxu0 %vm195_vm15, %v159_v23 }
  0xd8   :  { %2929 = vmatmul.msk.bf16.gmra.mxu0 %vm195_vm15, %v160_v30 }
  0xe8   :  { %2930 = vmatmul.msk.bf16.gmra.mxu0 %vm195_vm15, %v161_v40 }
  0xf8   :  { %2931 = vmatmul.msk.bf16.gmra.mxu0 %vm195_vm15, %v162_v53 }
 0x105   :  { %v3533_v54 = vpop.f32.mrf.mxu0 }
 0x10d   :  { %v3535_v55 = vpop.f32.mrf.mxu0 }
 0x10e   :  { %v269_v56 = vpack.c.bf16 %v3535_v55, %v3533_v54 }
 0x110   :  { %2940 = vmatmul.msk.bf16.vlgmr.msrb.gmra.mxu0 %vm329_vm0, %v269_v56  ;;  %2972 = vmatmul.msk.bf16.vlgmr.msra.gmra.mxu3 %vm329_vm0, %v269_v56 }
 0x115   :  { %v3541_v57 = vpop.f32.mrf.mxu0 }
 0x11d   :  { %v3543_v58 = vpop.f32.mrf.mxu0 }
 0x11e   :  { %v270_v59 = vpack.c.bf16 %v3543_v58, %v3541_v57 }
 0x120   :  { %2941 = vmatmul.msk.bf16.vlgmr.msra.gmra.mxu1 %vm329_vm0, %v270_v59  ;;  %2973 = vmatmul.msk.bf16.gmra.mxu3 %vm329_vm0, %v270_v59 }
 0x125   :  { %v3549_v60 = vpop.f32.mrf.mxu0 }
 0x12d   :  { %v3551_v61 = vpop.f32.mrf.mxu0 }
 0x12e   :  { %v271_v62 = vpack.c.bf16 %v3551_v61, %v3549_v60 }
 0x130   :  { %2942 = vmatmul.msk.bf16.gmra.mxu1 %vm329_vm0, %v271_v62  ;;  %2974 = vmatmul.msk.bf16.gmra.mxu3 %vm329_vm0, %v271_v62 }
 0x135   :  { %v3557_v63 = vpop.f32.mrf.mxu0 }
 0x13d   :  { %v3559_v0 = vpop.f32.mrf.mxu0 }
 0x13e   :  { %v272_v1 = vpack.c.bf16 %v3559_v0, %v3557_v63 }
 0x140   :  { %2943 = vmatmul.msk.bf16.gmra.mxu1 %vm329_vm0, %v272_v1  ;;  %2975 = vmatmul.msk.bf16.gmra.mxu3 %vm329_vm0, %v272_v1 }
 0x145   :  { %v3565_v3 = vpop.f32.mrf.mxu0 }
 0x14d   :  { %v3567_v5 = vpop.f32.mrf.mxu0 }
 0x14e   :  { %v273_v6 = vpack.c.bf16 %v3567_v5, %v3565_v3 }
 0x150   :  { %2944 = vmatmul.msk.bf16.gmra.mxu1 %vm329_vm0, %v273_v6  ;;  %2976 = vmatmul.msk.bf16.gmra.mxu3 %vm329_vm0, %v273_v6 }
 0x155   :  { %v3573_v7 = vpop.f32.mrf.mxu0 }
 0x15d   :  { %v3575_v9 = vpop.f32.mrf.mxu0 }
 0x15e   :  { %v274_v10 = vpack.c.bf16 %v3575_v9, %v3573_v7 }
 0x160   :  { %2945 = vmatmul.msk.bf16.vlgmr.msra.gmra.mxu2 %vm329_vm0, %v274_v10  ;;  %2977 = vmatmul.msk.bf16.gmra.mxu3 %vm329_vm0, %v274_v10 }
 0x165   :  { %v3581_v12 = vpop.f32.mrf.mxu0 }
 0x16d   :  { %v3583_v14 = vpop.f32.mrf.mxu0 }
 0x16e   :  { %v275_v16 = vpack.c.bf16 %v3583_v14, %v3581_v12 }
 0x170   :  { %2946 = vmatmul.msk.bf16.gmra.mxu2 %vm329_vm0, %v275_v16  ;;  %2978 = vmatmul.msk.bf16.gmra.mxu3 %vm329_vm0, %v275_v16 }
 0x175   :  { %v3589_v18 = vpop.f32.mrf.mxu0 }
 0x17d   :  { %v3591_v19 = vpop.f32.mrf.mxu0 }
 0x17e   :  { %v276_v20 = vpack.c.bf16 %v3591_v19, %v3589_v18 }
 0x180   :  { %2947 = vmatmul.msk.bf16.gmra.mxu2 %vm329_vm0, %v276_v20  ;;  %2979 = vmatmul.msk.bf16.gmra.mxu3 %vm329_vm0, %v276_v20 }
 0x190   :  { %2956 = vmatmul.msk.bf16.vlgmr.msrb.gmra.mxu2 %vm329_vm0, %v269_v56 }
 0x193   :  { %v3598_v21 = vpop.f32.mrf.mxu3 }
 0x19b   :  { %v3600_v22 = vpop.f32.mrf.mxu3 }
 0x1a0   :  { %2957 = vmatmul.msk.bf16.gmra.mxu2 %vm329_vm0, %v270_v59 }
 0x1a3   :  { %v3603_v23 = vpop.f32.mrf.mxu3 }
 0x1ab   :  { %v3605_v24 = vpop.f32.mrf.mxu3 }
 0x1b0   :  { %2958 = vmatmul.msk.bf16.gmra.mxu2 %vm329_vm0, %v271_v62 }
 0x1b3   :  { %v529_v25 = vpop.f32.mrf.mxu3 }
 0x1bb   :  { %v531_v27 = vpop.f32.mrf.mxu3 }
 0x1c0   :  { %2959 = vmatmul.msk.bf16.gmra.mxu2 %vm329_vm0, %v272_v1 }
 0x1c3   :  { %v534_v29 = vpop.f32.mrf.mxu3 }
 0x1cb   :  { %v536_v30 = vpop.f32.mrf.mxu3 }
 0x1d0   :  { %2960 = vmatmul.msk.bf16.gmra.mxu2 %vm329_vm0, %v273_v6 }
 0x1d3   :  { %v539_v32 = vpop.f32.mrf.mxu3 }
 0x1db   :  { %v541_v33 = vpop.f32.mrf.mxu3 }
 0x1dc   :  { %v542_v50 = vadd.f32 %v3094_v48, %v541_v33 }
 0x1e0   :  { %2961 = vmatmul.msk.bf16.gmra.mxu2 %vm329_vm0, %v274_v10 }
 0x1e3   :  { %v3611_v34 = vpop.f32.mrf.mxu2  ;;  %v544_v35 = vpop.f32.mrf.mxu3 }
 0x1e4   :  { %v545_v4 = vadd.f32 %v3094_v48, %v544_v35 }
 0x1eb   :  { %v3613_v37 = vpop.f32.mrf.mxu2  ;;  %v546_v38 = vpop.f32.mrf.mxu3 }
 0x1ec   :  { %v547_v8 = vadd.f32 %v3094_v48, %v546_v38 }
 0x1ee   :  { %v570_v52 = vpack.c.bf16 %v547_v8, %v547_v8 }
 0x1f0   :  { %2962 = vmatmul.msk.bf16.gmra.mxu2 %vm329_vm0, %v275_v16 }
 0x1f3   :  { %v3616_v40 = vpop.f32.mrf.mxu2  ;;  %v549_v41 = vpop.f32.mrf.mxu3 }
 0x1f4   :  { %v550_v1 = vadd.f32 %v3094_v48, %v549_v41  ;;  %v537_v41 = vadd.f32 %v3094_v48, %v536_v30 }
 0x1fb   :  { %v3618_v42 = vpop.f32.mrf.mxu2  ;;  %v551_v44 = vpop.f32.mrf.mxu3 }
 0x1fc   :  { %v552_v56 = vadd.f32 %v3094_v48, %v551_v44  ;;  %v540_v44 = vadd.f32 %v3094_v48, %v539_v32 }
 0x1fe   :  { %v572_v10 = vpack.c.bf16 %v552_v56, %v552_v56  ;;  %v535_v56 = vadd.f32 %v3094_v48, %v534_v29 }
 0x200   :  { %2963 = vmatmul.msk.bf16.gmra.mxu2 %vm329_vm0, %v276_v20  ;;  %v571_v20 = vpack.c.bf16 %v550_v1, %v550_v1  ;;  %v1030_v15 = vunpack.c.l.b16 %v572_v10  ;;  %v532_v1 = vadd.f32 %v3094_v48, %v531_v27  ;;  %v522_v27 = vadd.f32 %v3094_v48, %v3600_v22 }
 0x202   :  { %v1029_v47 = vunpack.c.l.b16 %v571_v20 }
 0x203   :  { %v3621_v45 = vpop.f32.mrf.mxu2  ;;  %v554_v46 = vpop.f32.mrf.mxu3 }
 0x204   :  { %v555_v53 = vadd.f32 %v3094_v48, %v554_v46  ;;  %v569_v46 = vpack.c.bf16 %v545_v4, %v545_v4  ;;  %v1039_v38 = vpack.c.b16 %v1030_v15, %v1029_v47  ;;  %v527_v4 = vadd.f32 %v3094_v48, %v3605_v24 }
 0x205   :  { %v525_v15 = vadd.f32 %v3094_v48, %v3603_v23  ;;  %v560_v24 = vpack.c.bf16 %v522_v27, %v522_v27 }
 0x206   :  { %v573_v2 = vpack.c.bf16 %v555_v53, %v555_v53  ;;  %v568_v53 = vpack.c.bf16 %v542_v50, %v542_v50  ;;  %v1027_v35 = vunpack.c.l.b16 %v569_v46  ;;  %v562_v30 = vpack.c.bf16 %v527_v4, %v527_v4 }
 0x207   :  { %v561_v46 = vpack.c.bf16 %v525_v15, %v525_v15 }
 0x208   :  { %v1031_v49 = vunpack.c.l.b16 %v573_v2  ;;  %v566_v2 = vpack.c.bf16 %v537_v41, %v537_v41  ;;  %v1026_v33 = vunpack.c.l.b16 %v568_v53  ;;  %v1020_v53 = vunpack.c.l.b16 %v562_v30 }
 0x209   :  { %v1019_v23 = vunpack.c.l.b16 %v561_v46 }
 0x20a   :  { %v1024_v50 = vunpack.c.l.b16 %v566_v2 }
 0x20b   :  { %v3626_v59 = vpop.f32.mrf.mxu2  ;;  %v556_v62 = vpop.f32.mrf.mxu3 }
 0x20c   :  { %v557_v6 = vadd.f32 %v3094_v48, %v556_v62  ;;  %v1028_v62 = vunpack.c.l.b16 %v570_v52 }
 0x20e   :  { %v574_v16 = vpack.c.bf16 %v557_v6, %v557_v6  ;;  %v567_v6 = vpack.c.bf16 %v540_v44, %v540_v44  ;;  %v1038_v8 = vpack.c.b16 %v1028_v62, %v1027_v35 }
 0x210   :  { %v1032_v51 = vunpack.c.l.b16 %v574_v16  ;;  %v1025_v32 = vunpack.c.l.b16 %v567_v6  ;;  %v1034_v6 = vpack.c.b16 %v1020_v53, %v1019_v23 }
 0x212   :  { %v1040_v17 = vpack.c.b16 %v1032_v51, %v1031_v49  ;;  %v530_v49 = vadd.f32 %v3094_v48, %v529_v25  ;;  %v565_v51 = vpack.c.bf16 %v535_v56, %v535_v56  ;;  %v1037_v52 = vpack.c.b16 %v1026_v33, %v1025_v32 }
 0x213   :  { %v3628_v39 = vpop.f32.mrf.mxu2  ;;  %v520_v25 = vadd.f32 %v3094_v48, %v3598_v21  ;;  %v1018_v56 = vunpack.c.l.b16 %v560_v24 }
 0x214   :  { %1049 = vmatpush.bf16.msra.mxu2 %v1040_v17  ;;  %v564_v17 = vpack.c.bf16 %v532_v1, %v532_v1  ;;  %v563_v47 = vpack.c.bf16 %v530_v49, %v530_v49  ;;  %v1023_v29 = vunpack.c.l.b16 %v565_v51  ;;  %v3643_v49 = vld [vmem:[%s5224_s4 + $0x1] ss:$0 sm:$0xff] }
 0x216   :  { %v1022_v16 = vunpack.c.l.b16 %v564_v17  ;;  %v1036_v20 = vpack.c.b16 %v1024_v50, %v1023_v29  ;;  %v1021_v41 = vunpack.c.l.b16 %v563_v47 }
 0x218   :  { %1050 = vmatpush.bf16.msra.mxu2 %v1039_v38  ;;  %v1035_v62 = vpack.c.b16 %v1022_v16, %v1021_v41  ;;  %v559_v38 = vpack.c.bf16 %v520_v25, %v520_v25 }
 0x21a   :  { %v1017_v22 = vunpack.c.l.b16 %v559_v38 }
 0x21b   :  { %v3630_v10 = vpop.f32.mrf.mxu2 }
 0x21c   :  { %1051 = vmatpush.bf16.msra.mxu2 %v1038_v8  ;;  %v1033_v1 = vpack.c.b16 %v1018_v56, %v1017_v22 }
 0x220   :  { %1052 = vmatpush.bf16.msra.mxu2 %v1037_v52 }
 0x223   :  { %v3635_v44 = vpop.f32.mrf.mxu2 }
 0x224   :  { %1053 = vmatpush.bf16.msra.mxu2 %v1036_v20 }
 0x228   :  { %1054 = vmatpush.bf16.msra.mxu2 %v1035_v62 }
 0x22b   :  { %v3638_v35 = vpop.f32.mrf.mxu2 }
 0x22c   :  { %1055 = vmatpush.bf16.msra.mxu2 %v1034_v6 }
 0x230   :  { %1056 = vmatpush.bf16.msra.mxu2 %v1033_v1 }
 0x233   :  { %v451_v2 = vpop.f32.mrf.mxu2 }
 0x23b   :  { %v453_v33 = vpop.f32.mrf.mxu2 }
 0x243   :  { %v456_v21 = vpop.f32.mrf.mxu2 }
 0x24b   :  { %v458_v48 = vpop.f32.mrf.mxu2 }
 0x253   :  { %v461_v8 = vpop.f32.mrf.mxu2 }
 0x254   :  { %v462_v51 = vadd.f32 %v3643_v49, %v461_v8 }
 0x256   :  { %v489_v4 = vpack.c.bf16 %v462_v51, %v462_v51 }
 0x258   :  { %v659_v52 = vunpack.c.l.b16 %v489_v4 }
 0x25b   :  { %v463_v32 = vpop.f32.mrf.mxu2 }
 0x25c   :  { %v464_v17 = vadd.f32 %v3643_v49, %v463_v32 }
 0x25e   :  { %v490_v50 = vpack.c.bf16 %v464_v17, %v464_v17 }
 0x260   :  { %v660_v15 = vunpack.c.l.b16 %v490_v50 }
 0x262   :  { %v671_v47 = vpack.c.b16 %v660_v15, %v659_v52 }
 0x263   :  { %v466_v29 = vpop.f32.mrf.mxu2 }
 0x264   :  { %v467_v4 = vadd.f32 %v3643_v49, %v466_v29 }
 0x266   :  { %v491_v15 = vpack.c.bf16 %v467_v4, %v467_v4  ;;  %v363_v4 = vpop.f32.mrf.mxu0 }
 0x26b   :  { %v468_v27 = vpop.f32.mrf.mxu2 }
 0x26c   :  { %v469_v8 = vadd.f32 %v3643_v49, %v468_v27  ;;  %v459_v27 = vadd.f32 %v3643_v49, %v458_v48 }
 0x26e   :  { %v492_v50 = vpack.c.bf16 %v469_v8, %v469_v8  ;;  %v488_v29 = vpack.c.bf16 %v459_v27, %v459_v27  ;;  %v3674_v27 = vld [vmem:[%s5224_s4] ss:$0 sm:$0xff] }
 0x273   :  { %v471_v30 = vpop.f32.mrf.mxu2 }
 0x274   :  { %v472_v62 = vadd.f32 %v3643_v49, %v471_v30  ;;  %v662_v30 = vunpack.c.l.b16 %v492_v50 }
 0x276   :  { %v493_v22 = vpack.c.bf16 %v472_v62, %v472_v62  ;;  %v658_v62 = vunpack.c.l.b16 %v488_v29 }
 0x278   :  { %v663_v17 = vunpack.c.l.b16 %v493_v22 }
 0x27b   :  { %v473_v16 = vpop.f32.mrf.mxu2 }
 0x27c   :  { %v474_v41 = vadd.f32 %v3643_v49, %v473_v16 }
 0x27e   :  { %v494_v23 = vpack.c.bf16 %v474_v41, %v474_v41  ;;  %v457_v41 = vadd.f32 %v3643_v49, %v456_v21 }
 0x280   :  { %v664_v51 = vunpack.c.l.b16 %v494_v23  ;;  %v452_v23 = vadd.f32 %v3643_v49, %v451_v2 }
 0x282   :  { %v673_v52 = vpack.c.b16 %v664_v51, %v663_v17  ;;  %v485_v22 = vpack.c.bf16 %v452_v23, %v452_v23  ;;  %v444_v17 = vadd.f32 %v3643_v49, %v3630_v10 }
 0x283   :  { %v476_v20 = vpop.f32.mrf.mxu2 }
 0x284   :  { %v477_v25 = vadd.f32 %v3643_v49, %v476_v20  ;;  %v718_v16 = vsel %vm329_vm0, %v673_v52, 0  ;;  %v661_v20 = vunpack.c.l.b16 %v491_v15  ;;  %v442_v15 = vadd.f32 %v3643_v49, %v3628_v39 }
 0x285   :  { %v401_v39 = vadd.f32 %v3674_v27, %v3626_v59 }
 0x286   :  { %v495_v24 = vpack.c.bf16 %v477_v25, %v477_v25  ;;  %v672_v25 = vpack.c.b16 %v662_v30, %v661_v20  ;;  %v481_v20 = vpack.c.bf16 %v442_v15, %v442_v15 }
 0x287   :  { %v418_v23 = vpack.c.bf16 %v401_v39, %v401_v39 }
 0x288   :  { %v665_v56 = vunpack.c.l.b16 %v495_v24  ;;  %v487_v24 = vpack.c.bf16 %v457_v41, %v457_v41 }
 0x28b   :  { %v478_v46 = vpop.f32.mrf.mxu2 }
 0x28c   :  { %v479_v53 = vadd.f32 %v3643_v49, %v478_v46  ;;  %v715_v46 = vsel %vm329_vm0, %v672_v25, 0  ;;  %v365_v25 = vpop.f32.mrf.mxu0 }
 0x28d   :  { %v366_v41 = vadd.f32 %v3674_v27, %v365_v25 }
 0x28e   :  { %v496_v38 = vpack.c.bf16 %v479_v53, %v479_v53  ;;  %v454_v53 = vadd.f32 %v3643_v49, %v453_v33  ;;  %v447_v33 = vadd.f32 %v3643_v49, %v3635_v44 }
 0x290   :  { %v666_v6 = vunpack.c.l.b16 %v496_v38  ;;  %v712_v38 = vsel %vm329_vm0, %v671_v47, 0  ;;  %v655_v47 = vunpack.c.l.b16 %v485_v22  ;;  %v483_v2 = vpack.c.bf16 %v447_v33, %v447_v33 }
 0x292   :  { %v674_v1 = vpack.c.b16 %v666_v6, %v665_v56  ;;  %v657_v56 = vunpack.c.l.b16 %v487_v24  ;;  %v486_v6 = vpack.c.bf16 %v454_v53, %v454_v53  ;;  %v653_v30 = vunpack.c.l.b16 %v483_v2 }
 0x293   :  { %v364_v24 = vadd.f32 %v3674_v27, %v363_v4  ;;  %v399_v53 = vadd.f32 %v3674_v27, %v3621_v45 }
 0x294   :  { %v721_v32 = vsel %vm329_vm0, %v674_v1, 0  ;;  %v670_v48 = vpack.c.b16 %v658_v62, %v657_v56  ;;  %v449_v1 = vadd.f32 %v3643_v49, %v3638_v35  ;;  %v656_v8 = vunpack.c.l.b16 %v486_v6  ;;  %v368_v35 = vpop.f32.mrf.mxu1 }
 0x295   :  { %723 = vmatpush.bf16.xpose.msrb.mxu1 %v721_v32  ;;  %3073 = vmatpush.bf16.xpose.msrb.mxu3 %v721_v32  ;;  %v651_v49 = vunpack.c.l.b16 %v481_v20  ;;  %v403_v56 = vpack.c.bf16 %v364_v24, %v364_v24  ;;  %v417_v6 = vpack.c.bf16 %v399_v53, %v399_v53 }
 0x296   :  { %v709_v21 = vsel %vm329_vm0, %v670_v48, 0  ;;  %v484_v51 = vpack.c.bf16 %v449_v1, %v449_v1  ;;  %v669_v32 = vpack.c.b16 %v656_v8, %v655_v47  ;;  %v626_v1 = vunpack.c.l.b16 %v418_v23 }
 0x297   :  { %v611_v8 = vunpack.c.l.b16 %v403_v56  ;;  %v625_v59 = vunpack.c.l.b16 %v417_v6 }
 0x298   :  { %v654_v50 = vunpack.c.l.b16 %v484_v51  ;;  %v706_v52 = vsel %vm329_vm0, %v669_v32, 0  ;;  %v369_v51 = vadd.f32 %v3674_v27, %v368_v35 }
 0x299   :  { %v634_v47 = vpack.c.b16 %v626_v1, %v625_v59 }
 0x29a   :  { %v668_v44 = vpack.c.b16 %v654_v50, %v653_v30  ;;  %v405_v2 = vpack.c.bf16 %v369_v51, %v369_v51 }
 0x29c   :  { %v370_v29 = vpop.f32.mrf.mxu1  ;;  %v613_v50 = vunpack.c.l.b16 %v405_v2  ;;  %v396_v2 = vadd.f32 %v3674_v27, %v3618_v42 }
 0x29d   :  { %724 = vmatpush.bf16.xpose.msrb.mxu1 %v718_v16  ;;  %3074 = vmatpush.bf16.xpose.msrb.mxu3 %v718_v16  ;;  %v482_v16 = vpack.c.bf16 %v444_v17, %v444_v17  ;;  %v371_v45 = vadd.f32 %v3674_v27, %v370_v29 }
 0x29f   :  { %v652_v10 = vunpack.c.l.b16 %v482_v16  ;;  %v406_v32 = vpack.c.bf16 %v371_v45, %v371_v45 }
 0x2a1   :  { %v667_v62 = vpack.c.b16 %v652_v10, %v651_v49  ;;  %v614_v17 = vunpack.c.l.b16 %v406_v32 }
 0x2a3   :  { %v700_v48 = vsel %vm329_vm0, %v667_v62, 0 }
 0x2a5   :  { %725 = vmatpush.bf16.xpose.msrb.mxu1 %v715_v46  ;;  %3075 = vmatpush.bf16.xpose.msrb.mxu3 %v715_v46  ;;  %v703_v46 = vsel %vm329_vm0, %v668_v44, 0 }
 0x2ad   :  { %726 = vmatpush.bf16.xpose.msrb.mxu1 %v712_v38  ;;  %3076 = vmatpush.bf16.xpose.msrb.mxu3 %v712_v38  ;;  %v404_v38 = vpack.c.bf16 %v366_v41, %v366_v41 }
 0x2af   :  { %v612_v22 = vunpack.c.l.b16 %v404_v38 }
 0x2b1   :  { %v627_v33 = vpack.c.b16 %v612_v22, %v611_v8 }
 0x2b5   :  { %727 = vmatpush.bf16.xpose.msrb.mxu1 %v709_v21  ;;  %3077 = vmatpush.bf16.xpose.msrb.mxu3 %v709_v21  ;;  %v373_v21 = vpop.f32.mrf.mxu1 }
 0x2b6   :  { %v374_v16 = vadd.f32 %v3674_v27, %v373_v21  ;;  %v391_v21 = vadd.f32 %v3674_v27, %v3613_v37 }
 0x2b8   :  { %v407_v20 = vpack.c.bf16 %v374_v16, %v374_v16  ;;  %v5244_v16 = vmov 0.0  }
 0x2bd   :  { %728 = vmatpush.bf16.xpose.msrb.mxu1 %v706_v52  ;;  %3078 = vmatpush.bf16.xpose.msrb.mxu3 %v706_v52  ;;  %v375_v4 = vpop.f32.mrf.mxu1  ;;  %v628_v52 = vpack.c.b16 %v614_v17, %v613_v50  ;;  %v394_v17 = vadd.f32 %v3674_v27, %v3616_v40  ;;  %v416_v50 = vpack.c.bf16 %v396_v2, %v396_v2  ;;  %v579_v40 = vld [vmem:[%s5225_s5] sm:$0xff]  ;;  %v586_v2 = vld [vmem:[%s5225_s5 + $0x38] sm:$0xff] }
 0x2be   :  { %v376_v30 = vadd.f32 %v3674_v27, %v375_v4 }
 0x2c0   :  { %v408_v44 = vpack.c.bf16 %v376_v30, %v376_v30 }
 0x2c2   :  { %v616_v25 = vunpack.c.l.b16 %v408_v44 }
 0x2c5   :  { %729 = vmatpush.bf16.xpose.msrb.mxu1 %v703_v46  ;;  %3079 = vmatpush.bf16.xpose.msrb.mxu3 %v703_v46  ;;  %v378_v15 = vpop.f32.mrf.mxu1  ;;  %v615_v46 = vunpack.c.l.b16 %v407_v20 }
 0x2c6   :  { %v379_v39 = vadd.f32 %v3674_v27, %v378_v15  ;;  %v624_v15 = vunpack.c.l.b16 %v416_v50 }
 0x2c7   :  { %v629_v41 = vpack.c.b16 %v616_v25, %v615_v46 }
 0x2c8   :  { %v409_v24 = vpack.c.bf16 %v379_v39, %v379_v39 }
 0x2ca   :  { %v617_v62 = vunpack.c.l.b16 %v409_v24 }
 0x2cd   :  { %730 = vmatpush.bf16.xpose.msrb.mxu1 %v700_v48  ;;  %3080 = vmatpush.bf16.xpose.msrb.mxu3 %v700_v48  ;;  %v380_v10 = vpop.f32.mrf.mxu1 }
 0x2ce   :  { %v381_v35 = vadd.f32 %v3674_v27, %v380_v10 }
 0x2d0   :  { %v410_v29 = vpack.c.bf16 %v381_v35, %v381_v35 }
 0x2d2   :  { %v618_v53 = vunpack.c.l.b16 %v410_v29  ;;  %v581_v29 = vld [vmem:[%s5225_s5 + $0x10] sm:$0xff] }
 0x2d4   :  { %2981 = vmatmul.msk.bf16.vlgmr.msrb.gmra.mxu1 %vm329_vm0, %v627_v33  ;;  %2988 = vmatmul.msk.bf16.vlgmr.msrb.gmra.mxu3 %vm329_vm0, %v634_v47  ;;  %v630_v38 = vpack.c.b16 %v618_v53, %v617_v62  ;;  %v389_v33 = vadd.f32 %v3674_v27, %v3611_v34  ;;  %v414_v47 = vpack.c.bf16 %v391_v21, %v391_v21  ;;  %v575_v34 = vld [vmem:[%s5221_s1] sm:$0x1] }
 0x2d5   :  { %v383_v49 = vpop.f32.mrf.mxu1  ;;  %vm576_vm15 = vcmp.ne.s32.totalorder %v575_v34, 0 }
 0x2d6   :  { %v384_v6 = vadd.f32 %v3674_v27, %v383_v49  ;;  %v413_v45 = vpack.c.bf16 %v389_v33, %v389_v33  ;;  %v622_v51 = vunpack.c.l.b16 %v414_v47  ;;  %v2980_v44 = vsel %vm576_vm15, 1.0, %v5244_v16 }
 0x2d7   :  { %v772_v20 = vsub.f32 1.0, %v2980_v44 }
 0x2d8   :  { %v411_v22 = vpack.c.bf16 %v384_v6, %v384_v6  ;;  %v621_v32 = vunpack.c.l.b16 %v413_v45  ;;  %v585_v45 = vld [vmem:[%s5225_s5 + $0x30] sm:$0xff] }
 0x2d9   :  { %v773_v25 = vmul.f32 -1e+30, %v772_v20 }
 0x2da   :  { %v619_v8 = vunpack.c.l.b16 %v411_v22  ;;  %v632_v4 = vpack.c.b16 %v622_v51, %v621_v32 }
 0x2db   :  { %v3715_v42 = vperm.slane %v773_v25, 0 }
 0x2dd   :  { %v385_v23 = vpop.f32.mrf.mxu1 }
 0x2de   :  { %v386_v56 = vadd.f32 %v3674_v27, %v385_v23 }
 0x2e0   :  { %v412_v48 = vpack.c.bf16 %v386_v56, %v386_v56 }
 0x2e2   :  { %v620_v1 = vunpack.c.l.b16 %v412_v48  ;;  %v583_v48 = vld [vmem:[%s5225_s5 + $0x20] sm:$0xff] }
 0x2e4   :  { %2982 = vmatmul.msk.bf16.gmra.mxu1 %vm329_vm0, %v628_v52  ;;  %v631_v59 = vpack.c.b16 %v620_v1, %v619_v8  ;;  %v415_v52 = vpack.c.bf16 %v394_v17, %v394_v17 }
 0x2e6   :  { %v623_v37 = vunpack.c.l.b16 %v415_v52 }
 0x2e8   :  { %v633_v30 = vpack.c.b16 %v624_v15, %v623_v37  ;;  %v587_v15 = vld [vmem:[%s5225_s5 + $0x40] sm:$0xff] }
 0x2f4   :  { %2983 = vmatmul.msk.bf16.gmra.mxu1 %vm329_vm0, %v629_v41  ;;  %v580_v41 = vld [vmem:[%s5225_s5 + $0x8] sm:$0xff] }
 0x304   :  { %2984 = vmatmul.msk.bf16.gmra.mxu1 %vm329_vm0, %v630_v38  ;;  %v582_v38 = vld [vmem:[%s5225_s5 + $0x18] sm:$0xff] }
 0x314   :  { %2985 = vmatmul.msk.bf16.gmra.mxu1 %vm329_vm0, %v631_v59  ;;  %v584_v59 = vld [vmem:[%s5225_s5 + $0x28] sm:$0xff] }
 0x324   :  { %2986 = vmatmul.msk.bf16.gmra.mxu1 %vm329_vm0, %v632_v4 }
 0x334   :  { %2987 = vmatmul.msk.bf16.gmra.mxu1 %vm329_vm0, %v633_v30 }
 0x351   :  { %v732_v27 = vpop.f32.mrf.mxu1 }
 0x352   :  { %v733_v10 = vadd.f32 %v732_v27, %v579_v40 }
 0x354   :  { %v777_v46 = vadd.f32 %v3715_v42, %v733_v10 }
 0x356   :  { %793 = vmax.xlane.f32.xlu1 %v777_v46 }
 0x359   :  { %v734_v35 = vpop.f32.mrf.mxu1 }
 0x35a   :  { %v735_v39 = vadd.f32 %v734_v35, %v580_v41  ;;  %v588_v35 = vld [vmem:[%s5225_s5 + $0x48] sm:$0xff] }
 0x35c   :  { %v778_v49 = vadd.f32 %v3715_v42, %v735_v39 }
 0x35e   :  { %795 = vmax.xlane.f32.xlu2 %v778_v49 }
 0x361   :  { %v737_v24 = vpop.f32.mrf.mxu1 }
 0x362   :  { %v738_v53 = vadd.f32 %v737_v24, %v581_v29 }
 0x364   :  { %v779_v62 = vadd.f32 %v3715_v42, %v738_v53 }
 0x366   :  { %797 = vmax.xlane.f32.xlu0 %v779_v62 }
 0x369   :  { %v739_v23 = vpop.f32.mrf.mxu1 }
 0x36a   :  { %v740_v56 = vadd.f32 %v739_v23, %v582_v38 }
 0x36c   :  { %v780_v6 = vadd.f32 %v3715_v42, %v740_v56 }
 0x36e   :  { %799 = vmax.xlane.f32.xlu2 %v780_v6 }
 0x371   :  { %v742_v22 = vpop.f32.mrf.mxu1 }
 0x372   :  { %v743_v1 = vadd.f32 %v742_v22, %v583_v48 }
 0x374   :  { %v3734_v8 = vadd.f32 %v3715_v42, %v743_v1 }
 0x376   :  { %801 = vmax.xlane.f32.xlu1 %v3734_v8 }
 0x379   :  { %v744_v21 = vpop.f32.mrf.mxu1 }
 0x37a   :  { %v745_v33 = vadd.f32 %v744_v21, %v584_v59 }
 0x37c   :  { %v3741_v47 = vadd.f32 %v3715_v42, %v745_v33  ;;  %v590_v33 = vld [vmem:[%s5225_s5 + $0x58] sm:$0xff] }
 0x37e   :  { %803 = vmax.xlane.f32.xlu2 %v3741_v47 }
 0x381   :  { %v747_v51 = vpop.f32.mrf.mxu1 }
 0x382   :  { %v748_v32 = vadd.f32 %v747_v51, %v585_v45 }
 0x384   :  { %v3748_v4 = vadd.f32 %v3715_v42, %v748_v32 }
 0x386   :  { %805 = vmax.xlane.f32.xlu0 %v3748_v4 }
 0x389   :  { %v749_v17 = vpop.f32.mrf.mxu1 }
 0x38a   :  { %v750_v50 = vadd.f32 %v749_v17, %v586_v2 }
 0x38c   :  { %v3755_v52 = vadd.f32 %v3715_v42, %v750_v50 }
 0x38e   :  { %807 = vmax.xlane.f32.xlu1 %v3755_v52 }
 0x391   :  { %v752_v37 = vpop.f32.mrf.mxu1 }
 0x392   :  { %v753_v30 = vadd.f32 %v752_v37, %v587_v15  ;;  %v591_v15 = vld [vmem:[%s5225_s5 + $0x60] sm:$0xff] }
 0x394   :  { %v3762_v34 = vadd.f32 %v3715_v42, %v753_v30 }
 0x396   :  { %809 = vmax.xlane.f32.xlu1 %v3762_v34 }
 0x399   :  { %v754_v25 = vpop.f32.mrf.mxu1 }
 0x39a   :  { %v755_v24 = vadd.f32 %v754_v25, %v588_v35 }
 0x3a1   :  { %v757_v29 = vpop.f32.mrf.mxu1 }
 0x3a9   :  { %v759_v22 = vpop.f32.mrf.mxu1 }
 0x3aa   :  { %v760_v51 = vadd.f32 %v759_v22, %v590_v33 }
 0x3ac   :  { %v3793_v17 = vadd.f32 %v3715_v42, %v760_v51 }
 0x3b1   :  { %v762_v2 = vpop.f32.mrf.mxu1 }
 0x3b2   :  { %v763_v30 = vadd.f32 %v762_v2, %v591_v15 }
 0x3c9   :  { %v794_v44 = vpop.xlane.xlu1 %793 }
 0x3ca   :  { %v825_v20 = vsub.f32 %v777_v46, %v794_v44  ;;  %v3772_v46 = vadd.f32 %v3715_v42, %v755_v24 }
 0x3cc   :  { %v841_v40 = vmul.f32 1.442695, %v825_v20 }
 0x3ce   :  { %3105 = vpow2.f32 %v841_v40  ;;  %v592_v40 = vld [vmem:[%s5225_s5 + $0x68] sm:$0xff] }
 0x3d1   :  { %v796_v27 = vpop.xlane.xlu2 %795 }
 0x3d2   :  { %v826_v10 = vsub.f32 %v778_v49, %v796_v27  ;;  %v589_v49 = vld [vmem:[%s5225_s5 + $0x50] sm:$0xff]  ;;  %v764_v27 = vpop.f32.mrf.mxu1 }
 0x3d3   :  { %v758_v48 = vadd.f32 %v757_v29, %v589_v49  ;;  %v765_v35 = vadd.f32 %v764_v27, %v592_v40  ;;  %v767_v29 = vpop.f32.mrf.mxu3 }
 0x3d4   :  { %v3765_v41 = vpop.eup %3105  ;;  %v843_v39 = vmul.f32 1.442695, %v826_v10 }
 0x3d5   :  { %873 = vadd.xlane.f32.xlu2 %v3765_v41  ;;  %v3815_v24 = vadd.f32 %v3715_v42, %v765_v35 }
 0x3d6   :  { %3107 = vpow2.f32 %v843_v39 }
 0x3d9   :  { %v798_v53 = vpop.xlane.xlu0 %797 }
 0x3da   :  { %v827_v38 = vsub.f32 %v779_v62, %v798_v53  ;;  %v3782_v62 = vadd.f32 %v3715_v42, %v758_v48 }
 0x3db   :  { %v769_v33 = vpop.f32.mrf.mxu3 }
 0x3dc   :  { %v3774_v23 = vpop.eup %3107  ;;  %v845_v56 = vmul.f32 1.442695, %v827_v38  ;;  %v593_v38 = vld [vmem:[%s5225_s5 + $0x70] sm:$0xff] }
 0x3dd   :  { %875 = vadd.xlane.f32.xlu0 %v3774_v23  ;;  %811 = vmax.xlane.f32.xlu2 %v3772_v46 }
 0x3de   :  { %3109 = vpow2.f32 %v845_v56  ;;  %v768_v56 = vadd.f32 %v767_v29, %v593_v38 }
 0x3e1   :  { %v800_v1 = vpop.xlane.xlu2 %799 }
 0x3e2   :  { %v828_v59 = vsub.f32 %v780_v6, %v800_v1 }
 0x3e4   :  { %v3784_v21 = vpop.eup %3109  ;;  %v847_v45 = vmul.f32 1.442695, %v828_v59  ;;  %v594_v59 = vld [vmem:[%s5225_s5 + $0x78] sm:$0xff] }
 0x3e5   :  { %877 = vadd.xlane.f32.xlu0 %v3784_v21  ;;  %813 = vmax.xlane.f32.xlu2 %v3782_v62  ;;  %v770_v51 = vadd.f32 %v769_v33, %v594_v59 }
 0x3e6   :  { %3111 = vpow2.f32 %v847_v45 }
 0x3e7   :  { %v3837_v2 = vadd.f32 %v3715_v42, %v770_v51 }
 0x3e9   :  { %v802_v32 = vpop.xlane.xlu1 %801 }
 0x3ea   :  { %v829_v6 = vsub.f32 %v3734_v8, %v802_v32  ;;  %v3804_v8 = vadd.f32 %v3715_v42, %v763_v30 }
 0x3ec   :  { %v3795_v50 = vpop.eup %3111  ;;  %v849_v37 = vmul.f32 1.442695, %v829_v6 }
 0x3ed   :  { %815 = vmax.xlane.f32.xlu0 %v3793_v17  ;;  %879 = vadd.xlane.f32.xlu1 %v3795_v50 }
 0x3ee   :  { %3113 = vpow2.f32 %v849_v37 }
 0x3f1   :  { %v804_v44 = vpop.xlane.xlu2 %803 }
 0x3f2   :  { %v830_v20 = vsub.f32 %v3741_v47, %v804_v44 }
 0x3f4   :  { %v3806_v25 = vpop.eup %3113  ;;  %v851_v10 = vmul.f32 1.442695, %v830_v20 }
 0x3f5   :  { %817 = vmax.xlane.f32.xlu0 %v3804_v8  ;;  %881 = vadd.xlane.f32.xlu1 %v3806_v25 }
 0x3f6   :  { %3115 = vpow2.f32 %v851_v10 }
 0x3f9   :  { %v806_v39 = vpop.xlane.xlu0 %805 }
 0x3fa   :  { %v831_v47 = vsub.f32 %v3748_v4, %v806_v39  ;;  %v3826_v4 = vadd.f32 %v3715_v42, %v768_v56 }
 0x3fc   :  { %v3817_v53 = vpop.eup %3115  ;;  %v853_v49 = vmul.f32 1.442695, %v831_v47 }
 0x3fd   :  { %883 = vadd.xlane.f32.xlu2 %v3817_v53  ;;  %819 = vmax.xlane.f32.xlu1 %v3815_v24 }
 0x3fe   :  { %3117 = vpow2.f32 %v853_v49 }
 0x401   :  { %v808_v48 = vpop.xlane.xlu1 %807 }
 0x402   :  { %v832_v22 = vsub.f32 %v3755_v52, %v808_v48 }
 0x404   :  { %v3828_v1 = vpop.eup %3117  ;;  %v855_v45 = vmul.f32 1.442695, %v832_v22 }
 0x405   :  { %885 = vadd.xlane.f32.xlu2 %v3828_v1  ;;  %821 = vmax.xlane.f32.xlu1 %v3826_v4 }
 0x406   :  { %3119 = vpow2.f32 %v855_v45 }
 0x409   :  { %v810_v32 = vpop.xlane.xlu1 %809 }
 0x40a   :  { %v833_v52 = vsub.f32 %v3762_v34, %v810_v32 }
 0x40c   :  { %v3839_v6 = vpop.eup %3119  ;;  %v857_v15 = vmul.f32 1.442695, %v833_v52 }
 0x40d   :  { %887 = vadd.xlane.f32.xlu0 %v3839_v6  ;;  %823 = vmax.xlane.f32.xlu2 %v3837_v2 }
 0x40e   :  { %3121 = vpow2.f32 %v857_v15 }
 0x414   :  { %v3843_v37 = vpop.eup %3121 }
 0x415   :  { %889 = vadd.xlane.f32.xlu0 %v3843_v37 }
 0x448   :  { %v874_v30 = vpop.xlane.xlu2 %873 }
 0x449   :  { %3123 = vrcp.f32 %v874_v30 }
 0x44f   :  { %v3124_v34 = vpop.eup %3123 }
 0x450   :  { %v876_v44 = vpop.xlane.xlu0 %875  ;;  %v812_v20 = vpop.xlane.xlu2 %811  ;;  %v921_v27 = vmul.f32 %v3124_v34, %v3765_v41 }
 0x451   :  { %3125 = vrcp.f32 %v876_v44  ;;  %v834_v42 = vsub.f32 %v3772_v46, %v812_v20 }
 0x452   :  { %v937_v35 = vpack.c.bf16 %v921_v27, %v921_v27 }
 0x453   :  { %v859_v40 = vmul.f32 1.442695, %v834_v42 }
 0x454   :  { %v969_v22 = vunpack.c.l.b16 %v937_v35 }
 0x455   :  { %3127 = vpow2.f32 %v859_v40 }
 0x457   :  { %v3126_v10 = vpop.eup %3125 }
 0x458   :  { %v922_v39 = vmul.f32 %v3126_v10, %v3774_v23  ;;  %v878_v29 = vpop.xlane.xlu0 %877  ;;  %v814_v47 = vpop.xlane.xlu2 %813 }
 0x459   :  { %v835_v38 = vsub.f32 %v3782_v62, %v814_v47  ;;  %3129 = vrcp.f32 %v878_v29 }
 0x45a   :  { %v938_v49 = vpack.c.bf16 %v922_v39, %v922_v39 }
 0x45b   :  { %v3850_v56 = vpop.eup %3127  ;;  %v861_v48 = vmul.f32 1.442695, %v835_v38 }
 0x45c   :  { %v970_v59 = vunpack.c.l.b16 %v938_v49  ;;  %891 = vadd.xlane.f32.xlu1 %v3850_v56 }
 0x45d   :  { %3131 = vpow2.f32 %v861_v48 }
 0x45e   :  { %v985_v41 = vpack.c.b16 %v970_v59, %v969_v22 }
 0x45f   :  { %v3130_v45 = vpop.eup %3129 }
 0x460   :  { %v816_v46 = vpop.xlane.xlu0 %815  ;;  %1057 = vmatmul.bf16.vlgmr.msra.gmra.mxu2 %v985_v41  ;;  %v880_v33 = vpop.xlane.xlu1 %879  ;;  %v923_v32 = vmul.f32 %v3130_v45, %v3784_v21 }
 0x461   :  { %v836_v23 = vsub.f32 %v3793_v17, %v816_v46  ;;  %3133 = vrcp.f32 %v880_v33 }
 0x462   :  { %v939_v20 = vpack.c.bf16 %v923_v32, %v923_v32 }
 0x463   :  { %v3854_v51 = vpop.eup %3131  ;;  %v863_v62 = vmul.f32 1.442695, %v836_v23 }
 0x464   :  { %893 = vadd.xlane.f32.xlu2 %v3854_v51  ;;  %v971_v27 = vunpack.c.l.b16 %v939_v20 }
 0x465   :  { %3135 = vpow2.f32 %v863_v62 }
 0x467   :  { %v3134_v52 = vpop.eup %3133 }
 0x468   :  { %v818_v15 = vpop.xlane.xlu0 %817  ;;  %v882_v30 = vpop.xlane.xlu1 %881  ;;  %v924_v44 = vmul.f32 %v3134_v52, %v3795_v50 }
 0x469   :  { %v837_v34 = vsub.f32 %v3804_v8, %v818_v15  ;;  %3137 = vrcp.f32 %v882_v30 }
 0x46a   :  { %v940_v42 = vpack.c.bf16 %v924_v44, %v924_v44 }
 0x46b   :  { %v3860_v40 = vpop.eup %3135  ;;  %v865_v17 = vmul.f32 1.442695, %v837_v34 }
 0x46c   :  { %895 = vadd.xlane.f32.xlu0 %v3860_v40  ;;  %v972_v10 = vunpack.c.l.b16 %v940_v42 }
 0x46d   :  { %3139 = vpow2.f32 %v865_v17 }
 0x46e   :  { %v986_v21 = vpack.c.b16 %v972_v10, %v971_v27 }
 0x46f   :  { %v3138_v29 = vpop.eup %3137 }
 0x470   :  { %v884_v35 = vpop.xlane.xlu2 %883  ;;  %1062 = vmatmul.bf16.gmra.mxu2 %v986_v21  ;;  %v820_v39 = vpop.xlane.xlu1 %819  ;;  %v925_v38 = vmul.f32 %v3138_v29, %v3806_v25 }
 0x471   :  { %3141 = vrcp.f32 %v884_v35  ;;  %v838_v50 = vsub.f32 %v3815_v24, %v820_v39  ;;  %v3064_v35 = vld [vmem:[#allocation2 + $0x38] sm:$0xff]  ;;  %v3063_v39 = vld [vmem:[#allocation2 + $0x30] sm:$0xff] }
 0x472   :  { %v941_v41 = vpack.c.bf16 %v925_v38, %v925_v38  ;;  %1149 = vmatpush.bf16.msra.mxu3 %v3064_v35 }
 0x473   :  { %v3864_v47 = vpop.eup %3139  ;;  %v867_v8 = vmul.f32 1.442695, %v838_v50 }
 0x474   :  { %897 = vadd.xlane.f32.xlu1 %v3864_v47  ;;  %v973_v23 = vunpack.c.l.b16 %v941_v41 }
 0x475   :  { %3143 = vpow2.f32 %v867_v8 }
 0x476   :  { %1150 = vmatpush.bf16.msra.mxu3 %v3063_v39 }
 0x477   :  { %v3142_v49 = vpop.eup %3141 }
 0x478   :  { %v886_v48 = vpop.xlane.xlu2 %885  ;;  %v822_v22 = vpop.xlane.xlu1 %821  ;;  %v926_v59 = vmul.f32 %v3142_v49, %v3817_v53 }
 0x479   :  { %v839_v46 = vsub.f32 %v3826_v4, %v822_v22  ;;  %3145 = vrcp.f32 %v886_v48 }
 0x47a   :  { %v942_v33 = vpack.c.bf16 %v926_v59, %v926_v59 }
 0x47b   :  { %v3870_v45 = vpop.eup %3143  ;;  %v869_v24 = vmul.f32 1.442695, %v839_v46 }
 0x47c   :  { %899 = vadd.xlane.f32.xlu2 %v3870_v45  ;;  %v974_v62 = vunpack.c.l.b16 %v942_v33 }
 0x47d   :  { %3147 = vpow2.f32 %v869_v24 }
 0x47e   :  { %v987_v25 = vpack.c.b16 %v974_v62, %v973_v23 }
 0x47f   :  { %v3146_v15 = vpop.eup %3145 }
 0x480   :  { %v888_v32 = vpop.xlane.xlu0 %887  ;;  %1067 = vmatmul.bf16.gmra.mxu2 %v987_v25  ;;  %v824_v52 = vpop.xlane.xlu2 %823  ;;  %v927_v44 = vmul.f32 %v3146_v15, %v3828_v1 }
 0x481   :  { %3149 = vrcp.f32 %v888_v32  ;;  %v840_v53 = vsub.f32 %v3837_v2, %v824_v52 }
 0x482   :  { %v943_v42 = vpack.c.bf16 %v927_v44, %v927_v44 }
 0x483   :  { %v3874_v30 = vpop.eup %3147  ;;  %v871_v4 = vmul.f32 1.442695, %v840_v53 }
 0x484   :  { %901 = vadd.xlane.f32.xlu0 %v3874_v30  ;;  %v975_v10 = vunpack.c.l.b16 %v943_v42 }
 0x485   :  { %3151 = vpow2.f32 %v871_v4 }
 0x487   :  { %v3150_v20 = vpop.eup %3149 }
 0x488   :  { %v928_v34 = vmul.f32 %v3150_v20, %v3839_v6  ;;  %v890_v29 = vpop.xlane.xlu0 %889 }
 0x489   :  { %3153 = vrcp.f32 %v890_v29 }
 0x48a   :  { %v944_v17 = vpack.c.bf16 %v928_v34, %v928_v34 }
 0x48b   :  { %v3879_v27 = vpop.eup %3151 }
 0x48c   :  { %903 = vadd.xlane.f32.xlu1 %v3879_v27  ;;  %v976_v21 = vunpack.c.l.b16 %v944_v17 }
 0x48e   :  { %v988_v2 = vpack.c.b16 %v976_v21, %v975_v10 }
 0x48f   :  { %v3154_v50 = vpop.eup %3153 }
 0x490   :  { %1072 = vmatmul.bf16.gmra.mxu2 %v988_v2  ;;  %v929_v6 = vmul.f32 %v3154_v50, %v3843_v37 }
 0x492   :  { %v945_v48 = vpack.c.bf16 %v929_v6, %v929_v6 }
 0x494   :  { %v977_v59 = vunpack.c.l.b16 %v945_v48 }
 0x4cf   :  { %v892_v1 = vpop.xlane.xlu1 %891 }
 0x4d0   :  { %3155 = vrcp.f32 %v892_v1 }
 0x4d6   :  { %v3156_v8 = vpop.eup %3155 }
 0x4d7   :  { %v894_v38 = vpop.xlane.xlu2 %893  ;;  %v930_v49 = vmul.f32 %v3156_v8, %v3850_v56 }
 0x4d8   :  { %3157 = vrcp.f32 %v894_v38 }
 0x4d9   :  { %v946_v22 = vpack.c.bf16 %v930_v49, %v930_v49 }
 0x4db   :  { %v978_v41 = vunpack.c.l.b16 %v946_v22 }
 0x4dd   :  { %v989_v46 = vpack.c.b16 %v978_v41, %v977_v59 }
 0x4de   :  { %v3158_v24 = vpop.eup %3157 }
 0x4df   :  { %v896_v33 = vpop.xlane.xlu0 %895  ;;  %1077 = vmatmul.bf16.gmra.mxu2 %v989_v46  ;;  %v931_v62 = vmul.f32 %v3158_v24, %v3854_v51 }
 0x4e0   :  { %3159 = vrcp.f32 %v896_v33 }
 0x4e1   :  { %v947_v52 = vpack.c.bf16 %v931_v62, %v931_v62 }
 0x4e3   :  { %v1058_v23 = vpop.f32.mrf.mxu2  ;;  %v979_v53 = vunpack.c.l.b16 %v947_v52 }
 0x4e6   :  { %v3160_v25 = vpop.eup %3159 }
 0x4e7   :  { %v898_v32 = vpop.xlane.xlu1 %897  ;;  %v932_v37 = vmul.f32 %v3160_v25, %v3860_v40 }
 0x4e8   :  { %3161 = vrcp.f32 %v898_v32 }
 0x4e9   :  { %v948_v15 = vpack.c.bf16 %v932_v37, %v932_v37 }
 0x4eb   :  { %v1060_v56 = vpop.f32.mrf.mxu2  ;;  %v980_v4 = vunpack.c.l.b16 %v948_v15 }
 0x4ec   :  { %v1098_v44 = vpack.c.bf16 %v1060_v56, %v1058_v23 }
 0x4ed   :  { %v990_v20 = vpack.c.b16 %v980_v4, %v979_v53 }
 0x4ee   :  { %2997 = vmatmul.msk.bf16.vlgmr.msra.gmra.mxu3 %vm329_vm0, %v1098_v44  ;;  %v3162_v42 = vpop.eup %3161 }
 0x4ef   :  { %v900_v34 = vpop.xlane.xlu2 %899  ;;  %1082 = vmatmul.bf16.gmra.mxu2 %v990_v20  ;;  %v933_v51 = vmul.f32 %v3162_v42, %v3864_v47 }
 0x4f0   :  { %3163 = vrcp.f32 %v900_v34 }
 0x4f1   :  { %v949_v2 = vpack.c.bf16 %v933_v51, %v933_v51 }
 0x4f3   :  { %v1063_v17 = vpop.f32.mrf.mxu2  ;;  %v981_v29 = vunpack.c.l.b16 %v949_v2 }
 0x4f6   :  { %v3164_v10 = vpop.eup %3163 }
 0x4f7   :  { %v902_v21 = vpop.xlane.xlu0 %901  ;;  %v934_v40 = vmul.f32 %v3164_v10, %v3870_v45 }
 0x4f8   :  { %3165 = vrcp.f32 %v902_v21 }
 0x4f9   :  { %v950_v35 = vpack.c.bf16 %v934_v40, %v934_v40 }
 0x4fb   :  { %v1065_v39 = vpop.f32.mrf.mxu2  ;;  %v982_v1 = vunpack.c.l.b16 %v950_v35 }
 0x4fc   :  { %v1099_v50 = vpack.c.bf16 %v1065_v39, %v1063_v17 }
 0x4fd   :  { %v991_v6 = vpack.c.b16 %v982_v1, %v981_v29 }
 0x4fe   :  { %2998 = vmatmul.msk.bf16.gmra.mxu3 %vm329_vm0, %v1099_v50  ;;  %v3166_v38 = vpop.eup %3165 }
 0x4ff   :  { %1087 = vmatmul.bf16.gmra.mxu2 %v991_v6  ;;  %v904_v8 = vpop.xlane.xlu1 %903  ;;  %v935_v47 = vmul.f32 %v3166_v38, %v3874_v30 }
 0x500   :  { %3167 = vrcp.f32 %v904_v8 }
 0x501   :  { %v951_v22 = vpack.c.bf16 %v935_v47, %v935_v47 }
 0x503   :  { %v1068_v49 = vpop.f32.mrf.mxu2  ;;  %v983_v46 = vunpack.c.l.b16 %v951_v22 }
 0x506   :  { %v3168_v48 = vpop.eup %3167 }
 0x507   :  { %v936_v45 = vmul.f32 %v3168_v48, %v3879_v27  ;;  %v3898_v27 = vld [vmem:[%s5224_s4 + $0x3] ss:$0 sm:$0xff] }
 0x509   :  { %v952_v59 = vpack.c.bf16 %v936_v45, %v936_v45 }
 0x50b   :  { %v1070_v41 = vpop.f32.mrf.mxu2  ;;  %v984_v33 = vunpack.c.l.b16 %v952_v59 }
 0x50c   :  { %v1100_v24 = vpack.c.bf16 %v1070_v41, %v1068_v49 }
 0x50d   :  { %v992_v23 = vpack.c.b16 %v984_v33, %v983_v46 }
 0x50e   :  { %2999 = vmatmul.msk.bf16.gmra.mxu3 %vm329_vm0, %v1100_v24 }
 0x50f   :  { %1092 = vmatmul.bf16.gmra.mxu2 %v992_v23  ;;  %v3332_v23 = vmov 32.0  }
 0x510   :  { %3169 = vrcp.f32 %v3332_v23 }
 0x513   :  { %v1073_v62 = vpop.f32.mrf.mxu2 }
 0x51b   :  { %v1075_v25 = vpop.f32.mrf.mxu2 }
 0x51c   :  { %v1101_v32 = vpack.c.bf16 %v1075_v25, %v1073_v62 }
 0x51e   :  { %3000 = vmatmul.msk.bf16.gmra.mxu3 %vm329_vm0, %v1101_v32 }
 0x562   :  { %v1078_v37 = vpop.f32.mrf.mxu2 }
 0x56a   :  { %v1080_v30 = vpop.f32.mrf.mxu2 }
 0x56b   :  { %v1102_v52 = vpack.c.bf16 %v1080_v30, %v1078_v37 }
 0x56d   :  { %3001 = vmatmul.msk.bf16.gmra.mxu3 %vm329_vm0, %v1102_v52 }
 0x571   :  { %v1152_v15 = vpop.f32.mrf.mxu3 }
 0x572   :  { %v1153_v56 = vadd.f32 %v3898_v27, %v1152_v15  ;;  %v1083_v53 = vpop.f32.mrf.mxu2 }
 0x574   :  { %v1192_v4 = vadd.f32 %v1153_v56, %v3533_v54 }
 0x576   :  { %v1208_v44 = vsel %vm329_vm0, %v1192_v4, 0.0 }
 0x577   :  { %1209 = vadd.xlane.f32.xlu2 %v1208_v44 }
 0x579   :  { %v1154_v20 = vpop.f32.mrf.mxu3 }
 0x57a   :  { %v1155_v34 = vadd.f32 %v3898_v27, %v1154_v20  ;;  %v1085_v42 = vpop.f32.mrf.mxu2 }
 0x57b   :  { %v1103_v17 = vpack.c.bf16 %v1085_v42, %v1083_v53 }
 0x57c   :  { %v1193_v51 = vadd.f32 %v1155_v34, %v3535_v55 }
 0x57d   :  { %3002 = vmatmul.msk.bf16.gmra.mxu3 %vm329_vm0, %v1103_v17 }
 0x57e   :  { %v1211_v10 = vsel %vm329_vm0, %v1193_v51, 0.0 }
 0x57f   :  { %1212 = vadd.xlane.f32.xlu0 %v1211_v10 }
 0x581   :  { %v1157_v21 = vpop.f32.mrf.mxu3 }
 0x582   :  { %v1158_v40 = vadd.f32 %v3898_v27, %v1157_v21  ;;  %v1088_v2 = vpop.f32.mrf.mxu2 }
 0x584   :  { %v1194_v54 = vadd.f32 %v1158_v40, %v3541_v57 }
 0x586   :  { %v1214_v35 = vsel %vm329_vm0, %v1194_v54, 0.0 }
 0x587   :  { %1215 = vadd.xlane.f32.xlu1 %v1214_v35 }
 0x589   :  { %v1159_v39 = vpop.f32.mrf.mxu3 }
 0x58a   :  { %v1160_v29 = vadd.f32 %v3898_v27, %v1159_v39  ;;  %v1090_v1 = vpop.f32.mrf.mxu2 }
 0x58b   :  { %v1104_v50 = vpack.c.bf16 %v1090_v1, %v1088_v2 }
 0x58c   :  { %v3912_v55 = vadd.f32 %v1160_v29, %v3543_v58 }
 0x58d   :  { %3003 = vmatmul.msk.bf16.gmra.mxu3 %vm329_vm0, %v1104_v50 }
 0x58e   :  { %v1217_v6 = vsel %vm329_vm0, %v3912_v55, 0.0 }
 0x58f   :  { %1218 = vadd.xlane.f32.xlu2 %v1217_v6 }
 0x591   :  { %v1162_v8 = vpop.f32.mrf.mxu3 }
 0x592   :  { %v1163_v57 = vadd.f32 %v3898_v27, %v1162_v8  ;;  %v1093_v38 = vpop.f32.mrf.mxu2 }
 0x594   :  { %v3919_v49 = vadd.f32 %v1163_v57, %v3549_v60 }
 0x596   :  { %v1220_v47 = vsel %vm329_vm0, %v3919_v49, 0.0 }
 0x597   :  { %1221 = vadd.xlane.f32.xlu0 %v1220_v47 }
 0x599   :  { %v1164_v48 = vpop.f32.mrf.mxu3 }
 0x59a   :  { %v1165_v58 = vadd.f32 %v3898_v27, %v1164_v48  ;;  %v1095_v45 = vpop.f32.mrf.mxu2 }
 0x59b   :  { %v1105_v22 = vpack.c.bf16 %v1095_v45, %v1093_v38 }
 0x59c   :  { %v3925_v59 = vadd.f32 %v1165_v58, %v3551_v61  ;;  %v3170_v61 = vpop.eup %3169 }
 0x59d   :  { %3004 = vmatmul.msk.bf16.gmra.mxu3 %vm329_vm0, %v1105_v22  ;;  %v1257_v62 = vmul.f32 32.0, %v3170_v61  ;;  %vm1261_vm2 = vweird.f32 %v3170_v61 }
 0x59e   :  { %v1223_v41 = vsel %vm329_vm0, %v3925_v59, 0.0 }
 0x59f   :  { %1224 = vadd.xlane.f32.xlu1 %v1223_v41  ;;  %v1258_v25 = vsub.f32 1.0, %v1257_v62 }
 0x5a1   :  { %v1167_v60 = vpop.f32.mrf.mxu3  ;;  %v1259_v32 = vmul.f32 %v3170_v61, %v1258_v25 }
 0x5a2   :  { %v1168_v46 = vadd.f32 %v3898_v27, %v1167_v60 }
 0x5a3   :  { %v1260_v37 = vadd.f32 %v3170_v61, %v1259_v32 }
 0x5a4   :  { %v3932_v33 = vadd.f32 %v1168_v46, %v3557_v63 }
 0x5a5   :  { %v3936_v52 = vsel %vm1261_vm2, %v3170_v61, %v1260_v37 }
 0x5a6   :  { %v1226_v24 = vsel %vm329_vm0, %v3932_v33, 0.0 }
 0x5a7   :  { %1227 = vadd.xlane.f32.xlu1 %v1226_v24 }
 0x5a9   :  { %v1169_v30 = vpop.f32.mrf.mxu3 }
 0x5aa   :  { %v1170_v20 = vadd.f32 %v3898_v27, %v1169_v30 }
 0x5ac   :  { %v3949_v21 = vadd.f32 %v1170_v20, %v3559_v0 }
 0x5ae   :  { %v1229_v35 = vsel %vm329_vm0, %v3949_v21, 0.0 }
 0x5ea   :  { %v1210_v15 = vpop.xlane.xlu2 %1209 }
 0x5eb   :  { %v1263_v56 = vmul.f32 %v3936_v52, %v1210_v15 }
 0x5ed   :  { %v3939_v63 = vsub.f32 %v1192_v4, %v1263_v56 }
 0x5ef   :  { %v1295_v53 = vmul.f32 %v3939_v63, %v3939_v63 }
 0x5f0   :  { %v1172_v44 = vpop.f32.mrf.mxu3 }
 0x5f1   :  { %v1311_v34 = vsel %vm329_vm0, %v1295_v53, 0.0  ;;  %v1173_v2 = vadd.f32 %v3898_v27, %v1172_v44 }
 0x5f2   :  { %1312 = vadd.xlane.f32.xlu2 %v1311_v34  ;;  %v1213_v42 = vpop.xlane.xlu0 %1212 }
 0x5f3   :  { %v1264_v17 = vmul.f32 %v3936_v52, %v1213_v42  ;;  %v3961_v0 = vadd.f32 %v1173_v2, %v3565_v3 }
 0x5f5   :  { %v3946_v10 = vsub.f32 %v1193_v51, %v1264_v17  ;;  %v1232_v57 = vsel %vm329_vm0, %v3961_v0, 0.0 }
 0x5f7   :  { %v1296_v4 = vmul.f32 %v3946_v10, %v3946_v10 }
 0x5f8   :  { %v1174_v40 = vpop.f32.mrf.mxu3 }
 0x5f9   :  { %v1314_v39 = vsel %vm329_vm0, %v1296_v4, 0.0  ;;  %v1175_v8 = vadd.f32 %v3898_v27, %v1174_v40 }
 0x5fa   :  { %1230 = vadd.xlane.f32.xlu2 %v1229_v35  ;;  %1315 = vadd.xlane.f32.xlu0 %v1314_v39  ;;  %v1216_v29 = vpop.xlane.xlu1 %1215 }
 0x5fb   :  { %v1265_v51 = vmul.f32 %v3936_v52, %v1216_v29  ;;  %v3974_v3 = vadd.f32 %v1175_v8, %v3567_v5  ;;  %v3065_v8 = vld [vmem:[#allocation2 + $0x40] sm:$0xff] }
 0x5fd   :  { %v3958_v1 = vsub.f32 %v1194_v54, %v1265_v51  ;;  %v1235_v60 = vsel %vm329_vm0, %v3974_v3, 0.0 }
 0x5ff   :  { %v1297_v50 = vmul.f32 %v3958_v1, %v3958_v1 }
 0x600   :  { %v1177_v6 = vpop.f32.mrf.mxu3 }
 0x601   :  { %v1317_v38 = vsel %vm329_vm0, %v1297_v50, 0.0  ;;  %v1178_v22 = vadd.f32 %v3898_v27, %v1177_v6  ;;  %v3066_v50 = vld [vmem:[#allocation2 + $0x48] sm:$0xff] }
 0x602   :  { %v1219_v47 = vpop.xlane.xlu2 %1218  ;;  %1233 = vadd.xlane.f32.xlu2 %v1232_v57  ;;  %1318 = vadd.xlane.f32.xlu0 %v1317_v38  ;;  %v3265_v38 = vld [vmem:[%s5220_s0 + $0x8] sm:$0xff] }
 0x603   :  { %v1266_v54 = vmul.f32 %v3936_v52, %v1219_v47  ;;  %v3987_v5 = vadd.f32 %v1178_v22, %v3573_v7  ;;  %1652 = vmatpush.bf16.msra.mxu0 %v3066_v50  ;;  %vm2208_vm3 = vcmp.ne.s32.totalorder %v3265_v38, 0 }
 0x605   :  { %v3971_v48 = vsub.f32 %v3912_v55, %v1266_v54  ;;  %v1238_v25 = vsel %vm329_vm0, %v3987_v5, 0.0 }
 0x607   :  { %v1298_v58 = vmul.f32 %v3971_v48, %v3971_v48  ;;  %1653 = vmatpush.bf16.msra.mxu0 %v3065_v8 }
 0x608   :  { %v1179_v45 = vpop.f32.mrf.mxu3 }
 0x609   :  { %v1320_v41 = vsel %vm329_vm0, %v1298_v58, 0.0  ;;  %v1180_v61 = vadd.f32 %v3898_v27, %v1179_v45  ;;  %v3266_v45 = vld [vmem:[%s5220_s0 + $0x10] sm:$0xff] }
 0x60a   :  { %1321 = vadd.xlane.f32.xlu1 %v1320_v41  ;;  %v1222_v46 = vpop.xlane.xlu0 %1221  ;;  %1236 = vadd.xlane.f32.xlu0 %v1235_v60  ;;  %vm2209_vm4 = vcmp.ne.s32.totalorder %v3266_v45, 0  ;;  %v4042_v41 = vsel %vm2208_vm3, 1.0, %v5244_v16 }
 0x60b   :  { %v1267_v55 = vmul.f32 %v3936_v52, %v1222_v46  ;;  %v4000_v7 = vadd.f32 %v1180_v61, %v3575_v9 }
 0x60d   :  { %v3984_v24 = vsub.f32 %v3919_v49, %v1267_v55  ;;  %v1241_v53 = vsel %vm329_vm0, %v4000_v7, 0.0 }
 0x60f   :  { %v1299_v23 = vmul.f32 %v3984_v24, %v3984_v24 }
 0x610   :  { %v1182_v32 = vpop.f32.mrf.mxu3 }
 0x611   :  { %v1323_v62 = vsel %vm329_vm0, %v1299_v23, 0.0  ;;  %v1183_v56 = vadd.f32 %v3898_v27, %v1182_v32  ;;  %v4048_v23 = vsel %vm2209_vm4, 1.0, %v5244_v16 }
 0x612   :  { %1324 = vadd.xlane.f32.xlu1 %v1323_v62  ;;  %1239 = vadd.xlane.f32.xlu0 %v1238_v25  ;;  %v1225_v37 = vpop.xlane.xlu1 %1224  ;;  %v2263_v62 = vsel %vm2255_vm1, %v4042_v41, 0.0 }
 0x613   :  { %v1268_v49 = vmul.f32 %v3936_v52, %v1225_v37  ;;  %v4013_v9 = vadd.f32 %v1183_v56, %v3581_v12  ;;  %v2270_v37 = vsel %vm2255_vm1, %v4048_v23, 0.0  ;;  %v2264_v56 = vrot.slane %v2263_v62, 4 }
 0x615   :  { %v3997_v30 = vsub.f32 %v3925_v59, %v1268_v49  ;;  %v1244_v40 = vsel %vm329_vm0, %v4013_v9, 0.0 }
 0x617   :  { %v1300_v15 = vmul.f32 %v3997_v30, %v3997_v30 }
 0x618   :  { %v1184_v59 = vpop.f32.mrf.mxu3 }
 0x619   :  { %v1326_v44 = vsel %vm329_vm0, %v1300_v15, 0.0  ;;  %v1185_v4 = vadd.f32 %v3898_v27, %v1184_v59  ;;  %v2271_v59 = vrot.slane %v2270_v37, 4 }
 0x61a   :  { %1242 = vadd.xlane.f32.xlu1 %v1241_v53  ;;  %1327 = vadd.xlane.f32.xlu2 %v1326_v44  ;;  %v1228_v20 = vpop.xlane.xlu1 %1227 }
 0x61b   :  { %v1269_v34 = vmul.f32 %v3936_v52, %v1228_v20  ;;  %v4022_v35 = vadd.f32 %v1185_v4, %v3583_v14  ;;  %v2272_v38 = vadd.f32 %v2271_v59, %v2270_v37 }
 0x61d   :  { %v4010_v42 = vsub.f32 %v3932_v33, %v1269_v34  ;;  %v1247_v12 = vsel %vm329_vm0, %v4022_v35, 0.0 }
 0x61f   :  { %v1301_v17 = vmul.f32 %v4010_v42, %v4010_v42 }
 0x620   :  { %v1187_v33 = vpop.f32.mrf.mxu3 }
 0x621   :  { %v1329_v2 = vsel %vm329_vm0, %v1301_v17, 0.0  ;;  %v1188_v39 = vadd.f32 %v3898_v27, %v1187_v33 }
 0x622   :  { %1245 = vadd.xlane.f32.xlu1 %v1244_v40  ;;  %1330 = vadd.xlane.f32.xlu2 %v1329_v2  ;;  %v3267_v40 = vld [vmem:[%s5220_s0 + $0x20] sm:$0xff] }
 0x623   :  { %v4028_v29 = vadd.f32 %v1188_v39, %v3589_v18  ;;  %vm2211_vm5 = vcmp.ne.s32.totalorder %v3267_v40, 0 }
 0x624   :  { %v4071_v50 = vsel %vm2211_vm5, 1.0, %v5244_v16 }
 0x625   :  { %v1250_v51 = vsel %vm329_vm0, %v4028_v29, 0.0 }
 0x628   :  { %v1189_v2 = vpop.f32.mrf.mxu3 }
 0x62a   :  { %1248 = vadd.xlane.f32.xlu2 %v1247_v12  ;;  %v2265_v12 = vadd.f32 %v2264_v56, %v2263_v62 }
 0x632   :  { %1251 = vadd.xlane.f32.xlu2 %v1250_v51 }
 0x665   :  { %v1313_v6 = vpop.xlane.xlu2 %1312 }
 0x666   :  { %v1359_v14 = vmul.f32 %v1313_v6, %v3936_v52  ;;  %v1190_v6 = vadd.f32 %v3898_v27, %v1189_v2  ;;  %v2284_v27 = vsel %vm2255_vm1, %v4071_v50, 0.0 }
 0x668   :  { %v1375_v57 = vadd.f32 1e-05, %v1359_v14 }
 0x66a   :  { %3171 = vrsqrt.f32 %v1375_v57  ;;  %vm1397_vm7 = vweird.f32 %v1375_v57 }
 0x66d   :  { %v1231_v18 = vpop.xlane.xlu2 %1230  ;;  %v1316_v47 = vpop.xlane.xlu0 %1315 }
 0x66e   :  { %v1270_v54 = vmul.f32 %v3936_v52, %v1231_v18  ;;  %v1360_v58 = vmul.f32 %v1316_v47, %v3936_v52 }
 0x670   :  { %v3172_v22 = vpop.eup %3171  ;;  %v4045_v60 = vsub.f32 %v3949_v21, %v1270_v54  ;;  %v1376_v46 = vadd.f32 1e-05, %v1360_v58  ;;  %v2266_v58 = vrot.slane %v2265_v12, 2 }
 0x671   :  { %v1392_v55 = vmul.f32 %v3172_v22, %v1375_v57  ;;  %vm1398_vm6 = vweird.f32 %v3172_v22 }
 0x672   :  { %3173 = vrsqrt.f32 %v1376_v46  ;;  %v1302_v61 = vmul.f32 %v4045_v60, %v4045_v60  ;;  %vm4074_vm8 = vmor %vm1397_vm7, %vm1398_vm6  ;;  %vm1407_vm10 = vweird.f32 %v1376_v46 }
 0x673   :  { %v1393_v25 = vmul.f32 %v3172_v22, %v1392_v55 }
 0x674   :  { %v1332_v32 = vsel %vm329_vm0, %v1302_v61, 0.0 }
 0x675   :  { %v1394_v21 = vmul.f32 0.5, %v1393_v25  ;;  %v1234_v49 = vpop.xlane.xlu2 %1233  ;;  %1333 = vadd.xlane.f32.xlu0 %v1332_v32  ;;  %v1319_v15 = vpop.xlane.xlu0 %1318 }
 0x676   :  { %v1271_v53 = vmul.f32 %v3936_v52, %v1234_v49  ;;  %v1361_v44 = vmul.f32 %v1319_v15, %v3936_v52  ;;  %v2273_v49 = vrot.slane %v2272_v38, 2 }
 0x677   :  { %v1395_v20 = vsub.f32 1.5, %v1394_v21  ;;  %v4099_v21 = vadd.f32 %v1190_v6, %v3591_v19 }
 0x678   :  { %v3174_v34 = vpop.eup %3173  ;;  %v4060_v17 = vsub.f32 %v3961_v0, %v1271_v53  ;;  %v4062_v4 = vadd.f32 1e-05, %v1361_v44  ;;  %v2267_v53 = vadd.f32 %v2266_v58, %v2265_v12  ;;  %v3268_v44 = vld [vmem:[%s5220_s0 + $0x40] sm:$0xff] }
 0x679   :  { %v1396_v33 = vmul.f32 %v3172_v22, %v1395_v20  ;;  %v1402_v39 = vmul.f32 %v3174_v34, %v1376_v46  ;;  %vm1408_vm9 = vweird.f32 %v3174_v34  ;;  %vm2215_vm12 = vcmp.ne.s32.totalorder %v3268_v44, 0  ;;  %v4113_v46 = vld [vmem:[%s5224_s4 + $0x7] ss:$0 sm:$0xff] }
 0x67a   :  { %3175 = vrsqrt.f32 %v4062_v4  ;;  %v1303_v51 = vmul.f32 %v4060_v17, %v4060_v17  ;;  %vm1409_vm11 = vmor %vm1407_vm10, %vm1408_vm9  ;;  %v1253_v2 = vsel %vm329_vm0, %v4099_v21, 0.0  ;;  %vm1417_vm2 = vweird.f32 %v4062_v4 }
 0x67b   :  { %v1403_v0 = vmul.f32 %v3174_v34, %v1402_v39  ;;  %v1400_v18 = vsel %vm4074_vm8, %v3172_v22, %v1396_v33  ;;  %v4090_v22 = vld [vmem:[%s5224_s4 + $0x6] ss:$0 sm:$0xff]  ;;  %v4120_v39 = vadd.f32 %v2273_v49, %v2272_v38  ;;  %v2268_v38 = vrot.slane %v2267_v53, 1 }
 0x67c   :  { %v1335_v8 = vsel %vm329_vm0, %v1303_v51, 0.0  ;;  %v1551_v25 = vmul.f32 %v1400_v18, %v3939_v63 }
 0x67d   :  { %v1404_v47 = vmul.f32 0.5, %v1403_v0  ;;  %1336 = vadd.xlane.f32.xlu0 %v1335_v8  ;;  %v1237_v54 = vpop.xlane.xlu0 %1236  ;;  %v1322_v57 = vpop.xlane.xlu1 %1321  ;;  %v2275_v44 = vrot.slane %v4120_v39, 1 }
 0x67e   :  { %v1272_v45 = vmul.f32 %v3936_v52, %v1237_v54  ;;  %v1362_v55 = vmul.f32 %v1322_v57, %v3936_v52  ;;  %v1568_v59 = vmul.f32 %v4090_v22, %v1551_v25 }
 0x67f   :  { %v1405_v61 = vsub.f32 1.5, %v1404_v47  ;;  %v4133_v47 = vsel %vm2215_vm12, 1.0, %v5244_v16 }
 0x680   :  { %v4085_v62 = vpop.eup %3175  ;;  %v4094_v32 = vsub.f32 %v3974_v3, %v1272_v45  ;;  %v4096_v37 = vadd.f32 1e-05, %v1362_v55  ;;  %v2285_v3 = vrot.slane %v2284_v27, 4  ;;  %v4136_v58 = vadd.f32 %v4113_v46, %v1568_v59 }
 0x681   :  { %v1406_v15 = vmul.f32 %v3174_v34, %v1405_v61  ;;  %v1412_v56 = vmul.f32 %v4085_v62, %v4062_v4  ;;  %vm1418_vm15 = vweird.f32 %v4085_v62 }
 0x682   :  { %3177 = vrsqrt.f32 %v4096_v37  ;;  %v1304_v63 = vmul.f32 %v4094_v32, %v4094_v32  ;;  %v2286_v18 = vadd.f32 %v2285_v3, %v2284_v27  ;;  %vm4170_vm4 = vmor %vm1417_vm2, %vm1418_vm15  ;;  %vm1427_vm7 = vweird.f32 %v4096_v37 }
 0x683   :  { %v1410_v19 = vsel %vm1409_vm11, %v3174_v34, %v1406_v15  ;;  %v1413_v20 = vmul.f32 %v4085_v62, %v1412_v56  ;;  %v3269_v34 = vld [vmem:[%s5220_s0 + $0x30] sm:$0xff]  ;;  %v2312_v15 = vsel %vm2255_vm1, %v4133_v47, 0.0 }
 0x684   :  { %v1552_v40 = vmul.f32 %v1410_v19, %v3946_v10  ;;  %v1338_v33 = vsel %vm329_vm0, %v1304_v63, 0.0  ;;  %vm2213_vm13 = vcmp.ne.s32.totalorder %v3269_v34, 0  ;;  %v3270_v10 = vld [vmem:[%s5220_s0 + $0x48] sm:$0xff]  ;;  %v2313_v4 = vrot.slane %v2312_v15, 4 }
 0x685   :  { %v1414_v12 = vmul.f32 0.5, %v1413_v20  ;;  %1254 = vadd.xlane.f32.xlu0 %v1253_v2  ;;  %1339 = vadd.xlane.f32.xlu1 %v1338_v33  ;;  %v1240_v51 = vpop.xlane.xlu0 %1239  ;;  %v1325_v0 = vpop.xlane.xlu1 %1324  ;;  %vm2216_vm14 = vcmp.ne.s32.totalorder %v3270_v10, 0  ;;  %v4161_v63 = vsel %vm2213_vm13, 1.0, %v5244_v16  ;;  %v3271_v20 = vld [vmem:[%s5220_s0 + $0x60] sm:$0xff]  ;;  %v3272_v2 = vld [vmem:[%s5220_s0 + $0x58] sm:$0xff]  ;;  %v2287_v10 = vrot.slane %v2286_v18, 2 }
 0x686   :  { %v1569_v6 = vmul.f32 %v4090_v22, %v1552_v40  ;;  %v1273_v14 = vmul.f32 %v3936_v52, %v1240_v51  ;;  %v1363_v8 = vmul.f32 %v1325_v0, %v3936_v52  ;;  %v4147_v25 = vsel %vm2216_vm14, 1.0, %v5244_v16 }
 0x687   :  { %v1415_v54 = vsub.f32 1.5, %v1414_v12  ;;  %v2319_v19 = vsel %vm2255_vm1, %v4147_v25, 0.0  ;;  %vm2219_vm3 = vcmp.ne.s32.totalorder %v3271_v20, 0  ;;  %vm2218_vm5 = vcmp.ne.s32.totalorder %v3272_v2, 0 }
 0x688   :  { %v3178_v57 = vpop.eup %3177  ;;  %v4139_v45 = vadd.f32 %v4113_v46, %v1569_v6  ;;  %v4142_v55 = vsub.f32 %v3987_v5, %v1273_v14  ;;  %v4144_v61 = vadd.f32 1e-05, %v1363_v8  ;;  %v2269_v0 = vadd.f32 %v2268_v38, %v2267_v53 }
 0x689   :  { %v1416_v27 = vmul.f32 %v4085_v62, %v1415_v54  ;;  %v1422_v49 = vmul.f32 %v3178_v57, %v4096_v37  ;;  %v2320_v8 = vrot.slane %v2319_v19, 4  ;;  %v4186_v54 = vsel %vm2219_vm3, 1.0, %v5244_v16 }
 0x68a   :  { %3179 = vrsqrt.f32 %v4144_v61  ;;  %v1601_v5 = vpack.c.bf16 %v4139_v45, %v4136_v58  ;;  %v1305_v56 = vmul.f32 %v4142_v55, %v4142_v55  ;;  %vm1428_vm6 = vweird.f32 %v3178_v57 }
 0x68b   :  { %v1423_v3 = vmul.f32 %v3178_v57, %v1422_v49  ;;  %v1420_v33 = vsel %vm4170_vm4, %v4085_v62, %v1416_v27  ;;  %v4191_v62 = vsel %vm2218_vm5, 1.0, %v5244_v16  ;;  %v4202_v59 = vmax.f32 %v2269_v0, 1.0  ;;  %vm1429_vm8 = vmor %vm1427_vm7, %vm1428_vm6 }
 0x68c   :  { %3013 = vmatmul.msk.bf16.vlgmr.msra.gmra.mxu0 %vm329_vm0, %v1601_v5  ;;  %v1341_v40 = vsel %vm329_vm0, %v1305_v56, 0.0  ;;  %v1553_v27 = vmul.f32 %v1420_v33, %v3958_v1  ;;  %v2314_v56 = vadd.f32 %v2313_v4, %v2312_v15  ;;  %v2321_v1 = vadd.f32 %v2320_v8, %v2319_v19 }
 0x68d   :  { %v1424_v34 = vmul.f32 0.5, %v1423_v3  ;;  %1342 = vadd.xlane.f32.xlu1 %v1341_v40  ;;  %v1328_v12 = vpop.xlane.xlu2 %1327  ;;  %v1243_v51 = vpop.xlane.xlu1 %1242  ;;  %v2288_v40 = vadd.f32 %v2287_v10, %v2286_v18  ;;  %v2340_v37 = vsel %vm2255_vm1, %v4186_v54, 0.0  ;;  %vm1437_vm9 = vweird.f32 %v4144_v61 }
 0x68e   :  { %v1364_v6 = vmul.f32 %v1328_v12, %v3936_v52  ;;  %v1274_v14 = vmul.f32 %v3936_v52, %v1243_v51  ;;  %v1570_v33 = vmul.f32 %v4090_v22, %v1553_v27  ;;  %v2315_v12 = vrot.slane %v2314_v56, 2 }
 0x68f   :  { %v1425_v49 = vsub.f32 1.5, %v1424_v34  ;;  %v2298_v34 = vsel %vm2255_vm1, %v4161_v63, 0.0  ;;  %v2289_v0 = vrot.slane %v2288_v40, 1  ;;  %v2322_v8 = vrot.slane %v2321_v1, 2 }
 0x690   :  { %v4188_v5 = vpop.eup %3179  ;;  %v4194_v53 = vadd.f32 1e-05, %v1364_v6  ;;  %v4197_v38 = vsub.f32 %v4000_v7, %v1274_v14  ;;  %v2333_v7 = vsel %vm2255_vm1, %v4191_v62, 0.0  ;;  %vm2404_vm14 = vweird.f32 %v4202_v59 }
 0x691   :  { %v1426_v3 = vmul.f32 %v3178_v57, %v1425_v49  ;;  %v1432_v20 = vmul.f32 %v4188_v5, %v4144_v61  ;;  %v2334_v10 = vrot.slane %v2333_v7, 4  ;;  %v2341_v49 = vrot.slane %v2340_v37, 4 }
 0x692   :  { %3181 = vrsqrt.f32 %v4194_v53  ;;  %v1306_v16 = vmul.f32 %v4197_v38, %v4197_v38  ;;  %vm1438_vm1 = vweird.f32 %v4188_v5  ;;  %vm1447_vm12 = vweird.f32 %v4194_v53 }
 0x693   :  { %v1430_v15 = vsel %vm1429_vm8, %v3178_v57, %v1426_v3  ;;  %v1433_v4 = vmul.f32 %v4188_v5, %v1432_v20  ;;  %3183 = vrcp.f32 %v4202_v59  ;;  %vm4240_vm10 = vmor %vm1437_vm9, %vm1438_vm1 }
 0x694   :  { %v1554_v2 = vmul.f32 %v1430_v15, %v3971_v48  ;;  %v1344_v18 = vsel %vm329_vm0, %v1306_v16, 0.0  ;;  %v2276_v48 = vadd.f32 %v2275_v44, %v4120_v39  ;;  %v4227_v16 = vadd.f32 %v4113_v46, %v1570_v33 }
 0x695   :  { %v1434_v19 = vmul.f32 0.5, %v1433_v4  ;;  %v4217_v51 = vpop.xlane.xlu2 %1330  ;;  %1345 = vadd.xlane.f32.xlu2 %v1344_v18  ;;  %v1246_v57 = vpop.xlane.xlu1 %1245  ;;  %v2316_v4 = vadd.f32 %v2315_v12, %v2314_v56  ;;  %v2290_v44 = vadd.f32 %v2289_v0, %v2288_v40  ;;  %v2335_v18 = vadd.f32 %v2334_v10, %v2333_v7 }
 0x696   :  { %v1275_v6 = vmul.f32 %v3936_v52, %v1246_v57  ;;  %v1571_v14 = vmul.f32 %v4090_v22, %v1554_v2  ;;  %v2323_v33 = vadd.f32 %v2322_v8, %v2321_v1  ;;  %v2342_v57 = vadd.f32 %v2341_v49, %v2340_v37 }
 0x697   :  { %v1435_v27 = vsub.f32 1.5, %v1434_v19  ;;  %v2299_v56 = vrot.slane %v2298_v34, 4  ;;  %v4246_v7 = vmax.f32 %v2276_v48, 1.0  ;;  %v2317_v0 = vrot.slane %v2316_v4, 1 }
 0x698   :  { %v3182_v3 = vpop.eup %3181  ;;  %v4224_v20 = vsub.f32 %v4013_v9, %v1275_v6  ;;  %v4230_v15 = vadd.f32 %v4113_v46, %v1571_v14  ;;  %v4253_v14 = vmax.f32 %v2290_v44, 1.0  ;;  %v2336_v8 = vrot.slane %v2335_v18, 2 }
 0x699   :  { %v1436_v2 = vmul.f32 %v4188_v5, %v1435_v27  ;;  %v1442_v39 = vmul.f32 %v3182_v3, %v4194_v53  ;;  %v4251_v61 = vpop.eup %3183  ;;  %v2324_v27 = vrot.slane %v2323_v33, 1  ;;  %vm1448_vm11 = vweird.f32 %v3182_v3 }
 0x69a   :  { %v1602_v19 = vpack.c.bf16 %v4230_v15, %v4227_v16  ;;  %v1307_v9 = vmul.f32 %v4224_v20, %v4224_v20  ;;  %v2300_v48 = vadd.f32 %v2299_v56, %v2298_v34  ;;  %3185 = vrcp.f32 %v4246_v7  ;;  %vm1449_vm13 = vmor %vm1447_vm12, %vm1448_vm11 }
 0x69b   :  { %v1443_v6 = vmul.f32 %v3182_v3, %v1442_v39  ;;  %v1440_v1 = vsel %vm4240_vm10, %v4188_v5, %v1436_v2  ;;  %v2343_v39 = vrot.slane %v2342_v57, 2  ;;  %v2318_v5 = vadd.f32 %v2317_v0, %v2316_v4 }
 0x69c   :  { %3014 = vmatmul.msk.bf16.gmra.mxu0 %vm329_vm0, %v1602_v19  ;;  %v1347_v40 = vsel %vm329_vm0, %v1307_v9, 0.0  ;;  %v1555_v9 = vmul.f32 %v1440_v1, %v3984_v24  ;;  %3187 = vrcp.f32 %v4253_v14  ;;  %v2337_v44 = vadd.f32 %v2336_v8, %v2335_v18 }
 0x69d   :  { %v1444_v37 = vmul.f32 0.5, %v1443_v6  ;;  %v1249_v10 = vpop.xlane.xlu2 %1248  ;;  %1348 = vadd.xlane.f32.xlu0 %v1347_v40  ;;  %v2325_v40 = vadd.f32 %v2324_v27, %v2323_v33  ;;  %v2344_v34 = vadd.f32 %v2343_v39, %v2342_v57  ;;  %v2400_v4 = vmul.f32 %v4251_v61, %v4202_v59 }
 0x69e   :  { %v1276_v49 = vmul.f32 %v3936_v52, %v1249_v10  ;;  %v1572_v1 = vmul.f32 %v4090_v22, %v1555_v9  ;;  %v2301_v53 = vrot.slane %v2300_v48, 2  ;;  %v4270_v0 = vmax.f32 %v2318_v5, 1.0 }
 0x69f   :  { %v1445_v19 = vsub.f32 1.5, %v1444_v37  ;;  %v2338_v37 = vrot.slane %v2337_v44, 1  ;;  %v2345_v57 = vrot.slane %v2344_v34, 1  ;;  %vm2405_vm15 = vweird.f32 %v4251_v61 }
 0x6a0   :  { %v4258_v12 = vsub.f32 %v4022_v35, %v1276_v49  ;;  %v4284_v27 = vadd.f32 %v4113_v46, %v1572_v1  ;;  %v2302_v9 = vadd.f32 %v2301_v53, %v2300_v48  ;;  %3189 = vrcp.f32 %v4270_v0  ;;  %vm4315_vm2 = vmor %vm2404_vm14, %vm2405_vm15 }
 0x6a1   :  { %v1446_v2 = vmul.f32 %v3182_v3, %v1445_v19  ;;  %v2401_v19 = vsub.f32 1.0, %v2400_v4  ;;  %vm2419_vm3 = vweird.f32 %v4246_v7  ;;  %vm2449_vm6 = vweird.f32 %v4253_v14 }
 0x6a2   :  { %v1308_v6 = vmul.f32 %v4258_v12, %v4258_v12  ;;  %vm2509_vm11 = vweird.f32 %v4270_v0 }
 0x6a3   :  { %v1450_v56 = vsel %vm1449_vm13, %v3182_v3, %v1446_v2  ;;  %v4274_v3 = vpop.eup %3185  ;;  %v2339_v2 = vadd.f32 %v2338_v37, %v2337_v44 }
 0x6a4   :  { %v1556_v24 = vmul.f32 %v1450_v56, %v3997_v30  ;;  %v1350_v35 = vsel %vm329_vm0, %v1308_v6, 0.0  ;;  %v4276_v30 = vmax.f32 %v2325_v40, 1.0  ;;  %v4278_v8 = vpop.eup %3187  ;;  %v2415_v5 = vmul.f32 %v4274_v3, %v4246_v7 }
 0x6a5   :  { %1351 = vadd.xlane.f32.xlu1 %v1350_v35  ;;  %v1252_v18 = vpop.xlane.xlu2 %1251  ;;  %v2445_v40 = vmul.f32 %v4278_v8, %v4253_v14  ;;  %v2346_v56 = vadd.f32 %v2345_v57, %v2344_v34  ;;  %v2303_v35 = vrot.slane %v2302_v9, 1  ;;  %v4302_v1 = vmax.f32 %v2339_v2, 1.0 }
 0x6a6   :  { %v1277_v10 = vmul.f32 %v3936_v52, %v1252_v18  ;;  %v1573_v33 = vmul.f32 %v4090_v22, %v1556_v24  ;;  %3191 = vrcp.f32 %v4276_v30  ;;  %v2402_v24 = vmul.f32 %v4251_v61, %v2401_v19  ;;  %v4306_v4 = vpop.eup %3189 }
 0x6a7   :  { %v2416_v44 = vsub.f32 1.0, %v2415_v5  ;;  %v2446_v53 = vsub.f32 1.0, %v2445_v40  ;;  %v4308_v18 = vmax.f32 %v2346_v56, 1.0  ;;  %v2410_v34 = vand.u32 2147483648, %v4202_v59 }
 0x6a8   :  { %v4281_v49 = vsub.f32 %v4028_v29, %v1277_v10  ;;  %v4287_v39 = vadd.f32 %v4113_v46, %v1573_v33  ;;  %v2403_v37 = vadd.f32 %v4251_v61, %v2402_v24  ;;  %v2408_v10 = vand.u32 2147483647, %v4202_v59 }
 0x6a9   :  { %v2417_v19 = vmul.f32 %v4274_v3, %v2416_v44  ;;  %v2304_v5 = vadd.f32 %v2303_v35, %v2302_v9  ;;  %3193 = vrcp.f32 %v4302_v1  ;;  %v2505_v2 = vmul.f32 %v4306_v4, %v4270_v0 }
 0x6aa   :  { %v1603_v6 = vpack.c.bf16 %v4287_v39, %v4284_v27  ;;  %v1309_v29 = vmul.f32 %v4281_v49, %v4281_v49  ;;  %3195 = vrcp.f32 %v4308_v18  ;;  %v2411_v59 = vor.u32 1.1754944e-38, %v2410_v34 }
 0x6ab   :  { %vm2420_vm4 = vweird.f32 %v4274_v3  ;;  %vm2409_vm5 = vcmp.eq.f32.partialorder %v2408_v10, 8.507059e+37  ;;  %v2423_v40 = vand.u32 2147483647, %v4246_v7  ;;  %v2425_v56 = vand.u32 2147483648, %v4246_v7 }
 0x6ac   :  { %3015 = vmatmul.msk.bf16.gmra.mxu0 %vm329_vm0, %v1603_v6  ;;  %v1353_v48 = vsel %vm329_vm0, %v1309_v29, 0.0  ;;  %v4313_v33 = vpop.eup %3191  ;;  %v2447_v6 = vmul.f32 %v4278_v8, %v2446_v53  ;;  %v2407_v29 = vsel %vm4315_vm2, %v4251_v61, %v2403_v37  ;;  %vm2450_vm7 = vweird.f32 %v4278_v8  ;;  %vm4341_vm8 = vmor %vm2419_vm3, %vm2420_vm4 }
 0x6ad   :  { %1354 = vadd.xlane.f32.xlu2 %v1353_v48  ;;  %v2520_v9 = vmul.f32 %v4313_v33, %v4276_v30  ;;  %v2418_v48 = vadd.f32 %v4274_v3, %v2417_v19  ;;  %v4337_v24 = vmax.f32 %v2304_v5, 1.0  ;;  %v2506_v35 = vsub.f32 1.0, %v2505_v2  ;;  %vm4350_vm1 = vmor %vm2449_vm6, %vm2450_vm7 }
 0x6ae   :  { %v2448_v44 = vadd.f32 %v4278_v8, %v2447_v6  ;;  %v2453_v53 = vand.u32 2147483647, %v4253_v14  ;;  %v2455_v34 = vand.u32 2147483648, %v4253_v14  ;;  %v2412_v37 = vsel %vm2409_vm5, %v2411_v59, %v2407_v29 }
 0x6af   :  { %v4348_v10 = vpop.eup %3193  ;;  %v2521_v19 = vsub.f32 1.0, %v2520_v9  ;;  %vm2424_vm9 = vcmp.eq.f32.partialorder %v2423_v40, 8.507059e+37  ;;  %v2426_v7 = vor.u32 1.1754944e-38, %v2425_v56  ;;  %v2422_v2 = vsel %vm4341_vm8, %v4274_v3, %v2418_v48 }
 0x6b0   :  { %v4354_v5 = vpop.eup %3195  ;;  %3197 = vrcp.f32 %v4337_v24  ;;  %v2413_v14 = vmul.f32 %v4042_v41, %v2412_v37  ;;  %v2507_v6 = vmul.f32 %v4306_v4, %v2506_v35  ;;  %v2452_v59 = vsel %vm4350_vm1, %v4278_v8, %v2448_v44 }
 0x6b1   :  { %vm2454_vm10 = vcmp.eq.f32.partialorder %v2453_v53, 8.507059e+37  ;;  %v2456_v29 = vor.u32 1.1754944e-38, %v2455_v34  ;;  %v2550_v9 = vmul.f32 %v4348_v10, %v4302_v1  ;;  %vm2510_vm12 = vweird.f32 %v4306_v4 }
 0x6b2   :  { %v2522_v3 = vmul.f32 %v4313_v33, %v2521_v19  ;;  %v2565_v41 = vmul.f32 %v4354_v5, %v4308_v18  ;;  %v2427_v40 = vsel %vm2424_vm9, %v2426_v7, %v2422_v2  ;;  %v2515_v56 = vand.u32 2147483648, %v4270_v0  ;;  %vm4377_vm15 = vmor %vm2509_vm11, %vm2510_vm12 }
 0x6b3   :  { %v2508_v8 = vadd.f32 %v4306_v4, %v2507_v6  ;;  %v2513_v48 = vand.u32 2147483647, %v4270_v0  ;;  %vm2524_vm13 = vweird.f32 %v4276_v30  ;;  %vm2525_vm14 = vweird.f32 %v4313_v33 }
 0x6b4   :  { %v2457_v35 = vsel %vm2454_vm10, %v2456_v29, %v2452_v59  ;;  %v2530_v44 = vand.u32 2147483648, %v4276_v30  ;;  %v2551_v53 = vsub.f32 1.0, %v2550_v9  ;;  %v2523_v37 = vadd.f32 %v4313_v33, %v2522_v3  ;;  %vm4387_vm2 = vmor %vm2524_vm13, %vm2525_vm14 }
 0x6b5   :  { %v2528_v57 = vand.u32 2147483647, %v4276_v30  ;;  %v2566_v19 = vsub.f32 1.0, %v2565_v41  ;;  %v2428_v0 = vmul.f32 %v4048_v23, %v2427_v40  ;;  %v2516_v7 = vor.u32 1.1754944e-38, %v2515_v56 }
 0x6b6   :  { %v4382_v34 = vpop.eup %3197  ;;  %v2512_v6 = vsel %vm4377_vm15, %v4306_v4, %v2508_v8  ;;  %vm2514_vm3 = vcmp.eq.f32.partialorder %v2513_v48, 8.507059e+37  ;;  %v2531_v59 = vor.u32 1.1754944e-38, %v2530_v44  ;;  %v2552_v29 = vmul.f32 %v4348_v10, %v2551_v53 }
 0x6b7   :  { %v2475_v30 = vmul.f32 %v4382_v34, %v4337_v24  ;;  %v2527_v23 = vsel %vm4387_vm2, %v4313_v33, %v2523_v37  ;;  %vm2529_vm4 = vcmp.eq.f32.partialorder %v2528_v57, 8.507059e+37  ;;  %v2567_v9 = vmul.f32 %v4354_v5, %v2566_v19 }
 0x6b8   :  { %vm2554_vm5 = vweird.f32 %v4302_v1  ;;  %vm2555_vm6 = vweird.f32 %v4348_v10  ;;  %v2558_v4 = vand.u32 2147483647, %v4302_v1  ;;  %v2560_v3 = vand.u32 2147483648, %v4302_v1 }
 0x6b9   :  { %vm2569_vm7 = vweird.f32 %v4308_v18  ;;  %vm2570_vm8 = vweird.f32 %v4354_v5  ;;  %v2532_v41 = vsel %vm2529_vm4, %v2531_v59, %v2527_v23  ;;  %v2553_v33 = vadd.f32 %v4348_v10, %v2552_v29  ;;  %vm4410_vm1 = vmor %vm2554_vm5, %vm2555_vm6 }
 0x6ba   :  { %v2575_v40 = vand.u32 2147483648, %v4308_v18  ;;  %v2476_v56 = vsub.f32 1.0, %v2475_v30  ;;  %v2568_v48 = vadd.f32 %v4354_v5, %v2567_v9  ;;  %vm4417_vm9 = vmor %vm2569_vm7, %vm2570_vm8  ;;  %v2533_v44 = vmul.f32 %v4147_v25, %v2532_v41 }
 0x6bb   :  { %v2561_v53 = vor.u32 1.1754944e-38, %v2560_v3  ;;  %v2557_v37 = vsel %vm4410_vm1, %v4348_v10, %v2553_v33  ;;  %vm2559_vm10 = vcmp.eq.f32.partialorder %v2558_v4, 8.507059e+37  ;;  %vm2479_vm12 = vweird.f32 %v4337_v24 }
 0x6bc   :  { %v2576_v57 = vor.u32 1.1754944e-38, %v2575_v40  ;;  %v2477_v19 = vmul.f32 %v4382_v34, %v2476_v56  ;;  %vm2480_vm13 = vweird.f32 %v4382_v34  ;;  %v2485_v10 = vand.u32 2147483648, %v4337_v24 }
 0x6bd   :  { %v2562_v25 = vsel %vm2559_vm10, %v2561_v53, %v2557_v37  ;;  %vm2481_vm14 = vmor %vm2479_vm12, %vm2480_vm13  ;;  %v2348_v40 = vrot.slane %v3457_v43, 4 }
 0x6be   :  { %2631 = vperm.xlu1 %3091, %v2413_v14   ;;  %v2458_v14 = vmul.f32 %v4071_v50, %v2457_v35  ;;  %v2517_v50 = vsel %vm2514_vm3, %v2516_v7, %v2512_v6  ;;  %v2573_v35 = vand.u32 2147483647, %v4308_v18  ;;  %v1365_v18 = vmul.f32 %v4217_v51, %v3936_v52 }
 0x6bf   :  { %v2518_v1 = vmul.f32 %v4133_v47, %v2517_v50  ;;  %v2572_v47 = vsel %vm4417_vm9, %v4354_v5, %v2568_v48  ;;  %v2478_v2 = vadd.f32 %v4382_v34, %v2477_v19  ;;  %v2483_v51 = vand.u32 2147483647, %v4337_v24 }
 0x6c0   :  { %vm2574_vm11 = vcmp.eq.f32.partialorder %v2573_v35, 8.507059e+37  ;;  %v2563_v5 = vmul.f32 %v4191_v62, %v2562_v25  ;;  %v2486_v59 = vor.u32 1.1754944e-38, %v2485_v10  ;;  %v2292_v50 = vrot.slane %v3444_v36, 4 }
 0x6c1   :  { %v2577_v7 = vsel %vm2574_vm11, %v2576_v57, %v2572_v47  ;;  %v2482_v30 = vsel %vm2481_vm14, %v4382_v34, %v2478_v2  ;;  %vm2484_vm15 = vcmp.eq.f32.partialorder %v2483_v51, 8.507059e+37  ;;  %v2327_v62 = vrot.slane %v3434_v28, 4 }
 0x6c2   :  { %v2578_v6 = vmul.f32 %v4186_v54, %v2577_v7  ;;  %v2487_v23 = vsel %vm2484_vm15, %v2486_v59, %v2482_v30  ;;  %v2293_v54 = vadd.f32 %v2292_v50, %v3444_v36 }
 0x6c3   :  { %v2488_v24 = vmul.f32 %v4161_v63, %v2487_v23  ;;  %v2328_v34 = vadd.f32 %v2327_v62, %v3434_v28  ;;  %v2349_v63 = vadd.f32 %v2348_v40, %v3457_v43  ;;  %v3068_v23 = vld [vmem:[#allocation2 + $0x58] sm:$0xff]  ;;  %v3067_v62 = vld [vmem:[#allocation2 + $0x50] sm:$0xff] }
 0x6c4   :  { %v2294_v33 = vrot.slane %v2293_v54, 2  ;;  %1762 = vmatpush.bf16.msra.mxu1 %v3068_v23 }
 0x6c5   :  { %2636 = vperm.xlu2 %3092, %v2428_v0   ;;  %v2278_v0 = vrot.slane %v3402_v13, 4  ;;  %v2329_v48 = vrot.slane %v2328_v34, 2  ;;  %v2350_v36 = vrot.slane %v2349_v63, 2 }
 0x6c6   :  { %2646 = vperm.xlu1 %3091, %v2458_v14   ;;  %v1381_v14 = vadd.f32 1e-05, %v1365_v18  ;;  %v2295_v35 = vadd.f32 %v2294_v33, %v2293_v54 }
 0x6c7   :  { %v2279_v29 = vadd.f32 %v2278_v0, %v3402_v13  ;;  %v2351_v25 = vadd.f32 %v2350_v36, %v2349_v63 }
 0x6c8   :  { %3199 = vrsqrt.f32 %v1381_v14  ;;  %v2296_v53 = vrot.slane %v2295_v35, 1  ;;  %vm1457_vm3 = vweird.f32 %v1381_v14  ;;  %1763 = vmatpush.bf16.msra.mxu1 %v3067_v62 }
 0x6c9   :  { %v2280_v9 = vrot.slane %v2279_v29, 2  ;;  %v2352_v7 = vrot.slane %v2351_v25, 1 }
 0x6ca   :  { %v2297_v18 = vadd.f32 %v2296_v53, %v2295_v35 }
 0x6cb   :  { %v2281_v3 = vadd.f32 %v2280_v9, %v2279_v29  ;;  %v2353_v9 = vadd.f32 %v2352_v7, %v2351_v25 }
 0x6cc   :  { %v4452_v0 = vmax.f32 %v2297_v18, 1.0 }
 0x6cd   :  { %2666 = vperm.xlu2 %3092, %v2518_v1   ;;  %v2282_v13 = vrot.slane %v2281_v3, 1  ;;  %v4464_v54 = vmax.f32 %v2353_v9, 1.0 }
 0x6ce   :  { %2671 = vperm.xlu1 %3091, %v2533_v44   ;;  %v3200_v4 = vpop.eup %3199  ;;  %v2330_v44 = vadd.f32 %v2329_v48, %v2328_v34  ;;  %vm2464_vm12 = vweird.f32 %v4452_v0  ;;  %v2468_v62 = vand.u32 2147483647, %v4452_v0 }
 0x6cf   :  { %v1452_v41 = vmul.f32 %v3200_v4, %v1381_v14  ;;  %v2283_v8 = vadd.f32 %v2282_v13, %v2281_v3  ;;  %vm1458_vm2 = vweird.f32 %v3200_v4 }
 0x6d0   :  { %v2331_v28 = vrot.slane %v2330_v44, 1  ;;  %vm1459_vm4 = vmor %vm1457_vm3, %vm1458_vm2  ;;  %vm2469_vm3 = vcmp.eq.f32.partialorder %v2468_v62, 8.507059e+37 }
 0x6d1   :  { %v1453_v56 = vmul.f32 %v3200_v4, %v1452_v41  ;;  %v4448_v61 = vmax.f32 %v2283_v8, 1.0 }
 0x6d2   :  { %v2332_v43 = vadd.f32 %v2331_v28, %v2330_v44 }
 0x6d3   :  { %v1454_v1 = vmul.f32 0.5, %v1453_v56  ;;  %3201 = vrcp.f32 %v4448_v61  ;;  %v2440_v48 = vand.u32 2147483648, %v4448_v61  ;;  %vm2434_vm6 = vweird.f32 %v4448_v61 }
 0x6d4   :  { %v4455_v29 = vmax.f32 %v2332_v43, 1.0  ;;  %v2438_v36 = vand.u32 2147483647, %v4448_v61 }
 0x6d5   :  { %2681 = vperm.xlu2 %3092, %v2563_v5   ;;  %v1455_v57 = vsub.f32 1.5, %v1454_v1 }
 0x6d6   :  { %2686 = vperm.xlu1 %3091, %v2578_v6   ;;  %vm2439_vm10 = vcmp.eq.f32.partialorder %v2438_v36, 8.507059e+37 }
 0x6d7   :  { %v1456_v10 = vmul.f32 %v3200_v4, %v1455_v57 }
 0x6d9   :  { %v3202_v51 = vpop.eup %3201  ;;  %v1460_v5 = vsel %vm1459_vm4, %v3200_v4, %v1456_v10 }
 0x6da   :  { %v1557_v50 = vmul.f32 %v1460_v5, %v4010_v42  ;;  %v2430_v14 = vmul.f32 %v3202_v51, %v4448_v61  ;;  %vm2435_vm7 = vweird.f32 %v3202_v51 }
 0x6db   :  { %vm2436_vm8 = vmor %vm2434_vm6, %vm2435_vm7 }
 0x6dc   :  { %v2431_v3 = vsub.f32 1.0, %v2430_v14  ;;  %v1574_v33 = vmul.f32 %v4090_v22, %v1557_v50 }
 0x6dd   :  { %2656 = vperm.xlu2 %3092, %v2488_v24  }
 0x6de   :  { %v2432_v40 = vmul.f32 %v3202_v51, %v2431_v3 }
 0x6e0   :  { %v2433_v63 = vadd.f32 %v3202_v51, %v2432_v40 }
 0x6e2   :  { %v2437_v28 = vsel %vm2436_vm8, %v3202_v51, %v2433_v63 }
 0x6e8   :  { %v1334_v37 = vpop.xlane.xlu0 %1333 }
 0x6e9   :  { %v1366_v19 = vmul.f32 %v1334_v37, %v3936_v52  ;;  %v2441_v37 = vor.u32 1.1754944e-38, %v2440_v48 }
 0x6eb   :  { %v1382_v47 = vadd.f32 1e-05, %v1366_v19  ;;  %v2442_v43 = vsel %vm2439_vm10, %v2441_v37, %v2437_v28 }
 0x6ed   :  { %3203 = vrsqrt.f32 %v1382_v47  ;;  %vm1467_vm1 = vweird.f32 %v1382_v47 }
 0x6ee   :  { %3205 = vrcp.f32 %v4452_v0 }
 0x6f0   :  { %v1337_v2 = vpop.xlane.xlu0 %1336 }
 0x6f1   :  { %v1367_v6 = vmul.f32 %v1337_v2, %v3936_v52  ;;  %v4491_v2 = vmul.f32 %v3398_v11, %v2442_v43 }
 0x6f3   :  { %v3204_v59 = vpop.eup %3203  ;;  %v4458_v30 = vadd.f32 1e-05, %v1367_v6  ;;  %v4495_v6 = vadd.f32 %v4113_v46, %v1574_v33 }
 0x6f4   :  { %v1462_v24 = vmul.f32 %v3204_v59, %v1382_v47  ;;  %v4467_v42 = vpop.eup %3205  ;;  %vm1468_vm5 = vweird.f32 %v3204_v59 }
 0x6f5   :  { %3207 = vrsqrt.f32 %v4458_v30  ;;  %vm1469_vm9 = vmor %vm1467_vm1, %vm1468_vm5  ;;  %v2460_v61 = vmul.f32 %v4467_v42, %v4452_v0  ;;  %vm2465_vm13 = vweird.f32 %v4467_v42  ;;  %vm1477_vm15 = vweird.f32 %v4458_v30 }
 0x6f6   :  { %v1463_v4 = vmul.f32 %v3204_v59, %v1462_v24  ;;  %3209 = vrcp.f32 %v4455_v29  ;;  %vm4508_vm14 = vmor %vm2464_vm12, %vm2465_vm13  ;;  %vm2539_vm5 = vweird.f32 %v4455_v29 }
 0x6f8   :  { %v1464_v41 = vmul.f32 0.5, %v1463_v4  ;;  %v1255_v13 = vpop.xlane.xlu0 %1254  ;;  %v1340_v34 = vpop.xlane.xlu1 %1339 }
 0x6f9   :  { %v1278_v56 = vmul.f32 %v3936_v52, %v1255_v13  ;;  %v1368_v8 = vmul.f32 %v1340_v34, %v3936_v52 }
 0x6fa   :  { %v1465_v35 = vsub.f32 1.5, %v1464_v41 }
 0x6fb   :  { %v3208_v1 = vpop.eup %3207  ;;  %v4474_v44 = vsub.f32 %v4099_v21, %v1278_v56  ;;  %v4476_v53 = vadd.f32 1e-05, %v1368_v8 }
 0x6fc   :  { %v1466_v57 = vmul.f32 %v3204_v59, %v1465_v35  ;;  %v1472_v19 = vmul.f32 %v3208_v1, %v4458_v30  ;;  %v4480_v18 = vpop.eup %3209  ;;  %vm1478_vm11 = vweird.f32 %v3208_v1 }
 0x6fd   :  { %3211 = vrsqrt.f32 %v4476_v53  ;;  %v1310_v21 = vmul.f32 %v4474_v44, %v4474_v44  ;;  %vm1479_vm2 = vmor %vm1477_vm15, %vm1478_vm11  ;;  %v2535_v48 = vmul.f32 %v4480_v18, %v4455_v29  ;;  %vm2540_vm6 = vweird.f32 %v4480_v18 }
 0x6fe   :  { %v1470_v25 = vsel %vm1469_vm9, %v3204_v59, %v1466_v57  ;;  %v1473_v10 = vmul.f32 %v3208_v1, %v1472_v19  ;;  %3213 = vrcp.f32 %v4464_v54  ;;  %v2461_v59 = vsub.f32 1.0, %v2460_v61  ;;  %vm4551_vm8 = vmor %vm2539_vm5, %vm2540_vm6 }
 0x6ff   :  { %v1558_v47 = vmul.f32 %v1470_v25, %v4045_v60  ;;  %v1356_v7 = vsel %vm329_vm0, %v1310_v21, 0.0  ;;  %v2470_v60 = vand.u32 2147483648, %v4452_v0  ;;  %v2536_v19 = vsub.f32 1.0, %v2535_v48 }
 0x700   :  { %v1474_v51 = vmul.f32 0.5, %v1473_v10  ;;  %1357 = vadd.xlane.f32.xlu0 %v1356_v7  ;;  %v1343_v5 = vpop.xlane.xlu1 %1342  ;;  %v2462_v11 = vmul.f32 %v4467_v42, %v2461_v59  ;;  %v2543_v61 = vand.u32 2147483647, %v4455_v29  ;;  %vm1487_vm7 = vweird.f32 %v4476_v53 }
 0x701   :  { %v1369_v23 = vmul.f32 %v1343_v5, %v3936_v52  ;;  %v1575_v9 = vmul.f32 %v4090_v22, %v1558_v47  ;;  %v2471_v41 = vor.u32 1.1754944e-38, %v2470_v60  ;;  %vm2584_vm11 = vweird.f32 %v4464_v54 }
 0x702   :  { %v1475_v50 = vsub.f32 1.5, %v1474_v51  ;;  %v2463_v33 = vadd.f32 %v4467_v42, %v2462_v11  ;;  %vm2544_vm9 = vcmp.eq.f32.partialorder %v2543_v61, 8.507059e+37 }
 0x703   :  { %v3212_v24 = vpop.eup %3211  ;;  %v4503_v14 = vadd.f32 1e-05, %v1369_v23  ;;  %v4506_v4 = vadd.f32 %v4113_v46, %v1575_v9 }
 0x704   :  { %v1476_v13 = vmul.f32 %v3208_v1, %v1475_v50  ;;  %v1482_v34 = vmul.f32 %v3212_v24, %v4476_v53  ;;  %v4520_v56 = vpop.eup %3213  ;;  %v2467_v30 = vsel %vm4508_vm14, %v4467_v42, %v2463_v33  ;;  %vm1488_vm4 = vweird.f32 %v3212_v24 }
 0x705   :  { %3215 = vrsqrt.f32 %v4503_v14  ;;  %v1604_v40 = vpack.c.bf16 %v4506_v4, %v4495_v6  ;;  %v2472_v63 = vsel %vm2469_vm3, %v2471_v41, %v2467_v30  ;;  %v2537_v42 = vmul.f32 %v4480_v18, %v2536_v19  ;;  %vm1489_vm1 = vmor %vm1487_vm7, %vm1488_vm4  ;;  %v5269_v19 = vld [vmem:[#allocation11_spill] sm:$0xff] }
 0x706   :  { %v1480_v8 = vsel %vm1479_vm2, %v3208_v1, %v1476_v13  ;;  %v1483_v0 = vmul.f32 %v3212_v24, %v1482_v34  ;;  %v4530_v57 = vmul.f32 %v3437_v31, %v2472_v63  ;;  %v4543_v31 = vld [vmem:[%s5224_s4 + $0x4] ss:$0 sm:$0xff]  ;;  %v2580_v53 = vmul.f32 %v4520_v56, %v4464_v54 }
 0x707   :  { %v1559_v35 = vmul.f32 %v1480_v8, %v4060_v17  ;;  %3016 = vmatmul.msk.bf16.gmra.mxu0 %vm329_vm0, %v1604_v40  ;;  %v2545_v17 = vand.u32 2147483648, %v4455_v29  ;;  %v2538_v5 = vadd.f32 %v4480_v18, %v2537_v42  ;;  %v2590_v40 = vand.u32 2147483648, %v4464_v54 }
 0x708   :  { %v1484_v36 = vmul.f32 0.5, %v1483_v0  ;;  %v1346_v37 = vpop.xlane.xlu2 %1345  ;;  %v2581_v41 = vsub.f32 1.0, %v2580_v53  ;;  %vm2585_vm12 = vweird.f32 %v4520_v56  ;;  %vm1497_vm14 = vweird.f32 %v4503_v14 }
 0x709   :  { %v1370_v1 = vmul.f32 %v1346_v37, %v3936_v52  ;;  %v1655_v28 = vpop.f32.mrf.mxu0  ;;  %v1576_v43 = vmul.f32 %v4090_v22, %v1559_v35  ;;  %v2546_v23 = vor.u32 1.1754944e-38, %v2545_v17  ;;  %v2542_v11 = vsel %vm4551_vm8, %v4480_v18, %v2538_v5  ;;  %vm4589_vm13 = vmor %vm2584_vm11, %vm2585_vm12 }
 0x70a   :  { %v1485_v21 = vsub.f32 1.5, %v1484_v36  ;;  %v1656_v60 = vadd.f32 %v4543_v31, %v1655_v28  ;;  %v2582_v18 = vmul.f32 %v4520_v56, %v2581_v41  ;;  %v2591_v17 = vor.u32 1.1754944e-38, %v2590_v40 }
 0x70b   :  { %v4536_v25 = vpop.eup %3215  ;;  %v4538_v10 = vadd.f32 1e-05, %v1370_v1  ;;  %v4564_v50 = vadd.f32 %v4113_v46, %v1576_v43  ;;  %v2547_v62 = vsel %vm2544_vm9, %v2546_v23, %v2542_v11 }
 0x70c   :  { %v1486_v47 = vmul.f32 %v3212_v24, %v1485_v21  ;;  %v1492_v7 = vmul.f32 %v4536_v25, %v4503_v14  ;;  %vm1498_vm10 = vweird.f32 %v4536_v25  ;;  %v4573_v33 = vmul.f32 %v3427_v26, %v2547_v62 }
 0x70d   :  { %3217 = vrsqrt.f32 %v4538_v10  ;;  %v2588_v26 = vand.u32 2147483647, %v4464_v54  ;;  %v1695_v36 = vmax.f32 %v1656_v60, 0.0  ;;  %v2583_v28 = vadd.f32 %v4520_v56, %v2582_v18  ;;  %vm1499_vm2 = vmor %vm1497_vm14, %vm1498_vm10 }
 0x70e   :  { %v1490_v59 = vsel %vm1489_vm1, %v3212_v24, %v1486_v47  ;;  %v1493_v29 = vmul.f32 %v4536_v25, %v1492_v7  ;;  %vm1507_vm4 = vweird.f32 %v4538_v10 }
 0x70f   :  { %v1560_v9 = vmul.f32 %v1490_v59, %v4094_v32  ;;  %vm2589_vm15 = vcmp.eq.f32.partialorder %v2588_v26, 8.507059e+37  ;;  %v2587_v42 = vsel %vm4589_vm13, %v4520_v56, %v2583_v28  ;;  %v5272_v59 = vld [vmem:[#allocation10_spill] sm:$0xff] }
 0x710   :  { %v1494_v3 = vmul.f32 0.5, %v1493_v29  ;;  %v1349_v24 = vpop.xlane.xlu0 %1348  ;;  %v2592_v51 = vsel %vm2589_vm15, %v2591_v17, %v2587_v42 }
 0x711   :  { %v1371_v13 = vmul.f32 %v1349_v24, %v3936_v52  ;;  %v1657_v34 = vpop.f32.mrf.mxu0  ;;  %v1577_v32 = vmul.f32 %v4090_v22, %v1560_v9  ;;  %v2593_v29 = vmul.f32 %v5272_v59, %v2592_v51  ;;  %v4616_v24 = vld [vmem:[%s5224_s4 + $0x6] ss:$0 sm:$0xff] }
 0x712   :  { %v1495_v8 = vsub.f32 1.5, %v1494_v3  ;;  %v1658_v0 = vadd.f32 %v4543_v31, %v1657_v34 }
 0x713   :  { %v3218_v30 = vpop.eup %3217  ;;  %v4579_v48 = vadd.f32 1e-05, %v1371_v13  ;;  %v4582_v35 = vadd.f32 %v4113_v46, %v1577_v32 }
 0x714   :  { %v1496_v22 = vmul.f32 %v4536_v25, %v1495_v8  ;;  %v1502_v63 = vmul.f32 %v3218_v30, %v4538_v10  ;;  %v1696_v37 = vmax.f32 %v1658_v0, 0.0  ;;  %2626 = vperm.xlu0 %3090, %v5269_v19   ;;  %vm1508_vm3 = vweird.f32 %v3218_v30 }
 0x715   :  { %3219 = vrsqrt.f32 %v4579_v48  ;;  %v1605_v46 = vpack.c.bf16 %v4582_v35, %v4564_v50  ;;  %vm1509_vm5 = vmor %vm1507_vm4, %vm1508_vm3  ;;  %vm1517_vm7 = vweird.f32 %v4579_v48 }
 0x716   :  { %v1503_v54 = vmul.f32 %v3218_v30, %v1502_v63  ;;  %v1711_v21 = vpack.c.bf16 %v1696_v37, %v1695_v36  ;;  %v1500_v43 = vsel %vm1499_vm2, %v4536_v25, %v1496_v22 }
 0x717   :  { %3017 = vmatmul.msk.bf16.gmra.mxu0 %vm329_vm0, %v1605_v46  ;;  %v1561_v53 = vmul.f32 %v1500_v43, %v4142_v55 }
 0x718   :  { %v1504_v61 = vmul.f32 0.5, %v1503_v54  ;;  %3029 = vmatmul.msk.bf16.vlgmr.msra.gmra.mxu1 %vm329_vm0, %v1711_v21  ;;  %v1352_v47 = vpop.xlane.xlu1 %1351 }
 0x719   :  { %v1372_v14 = vmul.f32 %v1352_v47, %v3936_v52  ;;  %v1660_v7 = vpop.f32.mrf.mxu0  ;;  %v1578_v55 = vmul.f32 %v4616_v24, %v1561_v53 }
 0x71a   :  { %v1505_v5 = vsub.f32 1.5, %v1504_v61  ;;  %v1661_v10 = vadd.f32 %v4543_v31, %v1660_v7 }
 0x71b   :  { %v3220_v23 = vpop.eup %3219  ;;  %v1388_v9 = vadd.f32 1e-05, %v1372_v14 }
 0x71c   :  { %v1506_v56 = vmul.f32 %v3218_v30, %v1505_v5  ;;  %v1512_v25 = vmul.f32 %v3220_v23, %v4579_v48  ;;  %2641 = vperm.xlu0 %3090, %v4491_v2   ;;  %vm1518_vm6 = vweird.f32 %v3220_v23 }
 0x71d   :  { %3221 = vrsqrt.f32 %v1388_v9  ;;  %vm1519_vm8 = vmor %vm1517_vm7, %vm1518_vm6  ;;  %vm1527_vm9 = vweird.f32 %v1388_v9 }
 0x71e   :  { %v1510_v60 = vsel %vm1509_vm5, %v3218_v30, %v1506_v56  ;;  %v1513_v11 = vmul.f32 %v3220_v23, %v1512_v25  ;;  %v1697_v30 = vmax.f32 %v1661_v10, 0.0 }
 0x71f   :  { %v1562_v3 = vmul.f32 %v1510_v60, %v4197_v38  ;;  %v4625_v38 = vld [vmem:[%s5224_s4 + $0x7] ss:$0 sm:$0xff] }
 0x720   :  { %v1514_v62 = vmul.f32 0.5, %v1513_v11  ;;  %v4628_v40 = vadd.f32 %v4625_v38, %v1578_v55  ;;  %v1355_v51 = vpop.xlane.xlu2 %1354 }
 0x721   :  { %v1662_v41 = vpop.f32.mrf.mxu0  ;;  %v1579_v13 = vmul.f32 %v4616_v24, %v1562_v3  ;;  %v1373_v5 = vmul.f32 %v1355_v51, %v3936_v52 }
 0x722   :  { %v1515_v2 = vsub.f32 1.5, %v1514_v62  ;;  %v1663_v34 = vadd.f32 %v4543_v31, %v1662_v41 }
 0x723   :  { %v3222_v32 = vpop.eup %3221  ;;  %v4631_v8 = vadd.f32 %v4625_v38, %v1579_v13  ;;  %v1389_v59 = vadd.f32 1e-05, %v1373_v5 }
 0x724   :  { %v1516_v0 = vmul.f32 %v3220_v23, %v1515_v2  ;;  %v1522_v18 = vmul.f32 %v3222_v32, %v1388_v9  ;;  %v1698_v26 = vmax.f32 %v1663_v34, 0.0  ;;  %2651 = vperm.xlu0 %3090, %v4530_v57   ;;  %vm1528_vm1 = vweird.f32 %v3222_v32 }
 0x725   :  { %v1606_v22 = vpack.c.bf16 %v4631_v8, %v4628_v40  ;;  %vm1529_vm10 = vmor %vm1527_vm9, %vm1528_vm1  ;;  %3223 = vrsqrt.f32 %v1389_v59  ;;  %vm1537_vm12 = vweird.f32 %v1389_v59 }
 0x726   :  { %v1523_v63 = vmul.f32 %v3222_v32, %v1522_v18  ;;  %v1712_v36 = vpack.c.bf16 %v1698_v26, %v1697_v30  ;;  %v1520_v37 = vsel %vm1519_vm8, %v3220_v23, %v1516_v0 }
 0x727   :  { %3018 = vmatmul.msk.bf16.gmra.mxu0 %vm329_vm0, %v1606_v22  ;;  %v1563_v28 = vmul.f32 %v1520_v37, %v4224_v20 }
 0x728   :  { %v1524_v19 = vmul.f32 0.5, %v1523_v63  ;;  %3030 = vmatmul.msk.bf16.gmra.mxu1 %vm329_vm0, %v1712_v36 }
 0x729   :  { %v1665_v1 = vpop.f32.mrf.mxu0  ;;  %v1580_v21 = vmul.f32 %v4616_v24, %v1563_v28 }
 0x72a   :  { %v1525_v46 = vsub.f32 1.5, %v1524_v19  ;;  %v1666_v42 = vadd.f32 %v4543_v31, %v1665_v1 }
 0x72b   :  { %v4647_v47 = vadd.f32 %v4625_v38, %v1580_v21  ;;  %v3224_v23 = vpop.eup %3223 }
 0x72c   :  { %v1526_v57 = vmul.f32 %v3222_v32, %v1525_v46  ;;  %2676 = vperm.xlu0 %3090, %v4573_v33   ;;  %v1699_v33 = vmax.f32 %v1666_v42, 0.0  ;;  %v1532_v53 = vmul.f32 %v3224_v23, %v1389_v59  ;;  %vm1538_vm11 = vweird.f32 %v3224_v23 }
 0x72d   :  { %vm1539_vm13 = vmor %vm1537_vm12, %vm1538_vm11 }
 0x72e   :  { %v1530_v48 = vsel %vm1529_vm10, %v3222_v32, %v1526_v57  ;;  %v1533_v9 = vmul.f32 %v3224_v23, %v1532_v53 }
 0x72f   :  { %v1564_v54 = vmul.f32 %v1530_v48, %v4258_v12 }
 0x730   :  { %v1534_v60 = vmul.f32 0.5, %v1533_v9 }
 0x731   :  { %v1667_v17 = vpop.f32.mrf.mxu0  ;;  %v1581_v43 = vmul.f32 %v4616_v24, %v1564_v54 }
 0x732   :  { %v1668_v61 = vadd.f32 %v4543_v31, %v1667_v17  ;;  %v1535_v11 = vsub.f32 1.5, %v1534_v60 }
 0x733   :  { %v4650_v20 = vadd.f32 %v4625_v38, %v1581_v43 }
 0x734   :  { %v1700_v14 = vmax.f32 %v1668_v61, 0.0  ;;  %2691 = vperm.xlu0 %3090, %v2593_v29   ;;  %v1536_v55 = vmul.f32 %v3224_v23, %v1535_v11 }
 0x735   :  { %v1607_v12 = vpack.c.bf16 %v4650_v20, %v4647_v47 }
 0x736   :  { %v1713_v7 = vpack.c.bf16 %v1700_v14, %v1699_v33  ;;  %v1540_v41 = vsel %vm1539_vm13, %v3224_v23, %v1536_v55 }
 0x737   :  { %3019 = vmatmul.msk.bf16.gmra.mxu0 %vm329_vm0, %v1607_v12  ;;  %v1565_v32 = vmul.f32 %v1540_v41, %v4281_v49 }
 0x738   :  { %3031 = vmatmul.msk.bf16.gmra.mxu1 %vm329_vm0, %v1713_v7 }
 0x739   :  { %v1582_v26 = vmul.f32 %v4616_v24, %v1565_v32 }
 0x73b   :  { %v4665_v19 = vadd.f32 %v4625_v38, %v1582_v26 }
 0x773   :  { %v1358_v56 = vpop.xlane.xlu0 %1357 }
 0x774   :  { %v1374_v25 = vmul.f32 %v1358_v56, %v3936_v52 }
 0x776   :  { %v1390_v29 = vadd.f32 1e-05, %v1374_v25 }
 0x778   :  { %3225 = vrsqrt.f32 %v1390_v29  ;;  %vm1547_vm15 = vweird.f32 %v1390_v29 }
 0x77e   :  { %v3226_v3 = vpop.eup %3225 }
 0x77f   :  { %v1542_v62 = vmul.f32 %v3226_v3, %v1390_v29  ;;  %vm1548_vm14 = vweird.f32 %v3226_v3 }
 0x780   :  { %vm1549_vm2 = vmor %vm1547_vm15, %vm1548_vm14 }
 0x781   :  { %v1543_v10 = vmul.f32 %v3226_v3, %v1542_v62 }
 0x783   :  { %v1544_v13 = vmul.f32 0.5, %v1543_v10 }
 0x784   :  { %v1670_v2 = vpop.f32.mrf.mxu0 }
 0x785   :  { %v1545_v34 = vsub.f32 1.5, %v1544_v13  ;;  %v1671_v22 = vadd.f32 %v4543_v31, %v1670_v2 }
 0x787   :  { %v1546_v0 = vmul.f32 %v3226_v3, %v1545_v34  ;;  %v1701_v1 = vmax.f32 %v1671_v22, 0.0 }
 0x789   :  { %v1550_v18 = vsel %vm1549_vm2, %v3226_v3, %v1546_v0 }
 0x78a   :  { %v1566_v30 = vmul.f32 %v1550_v18, %v4474_v44 }
 0x78c   :  { %v1672_v63 = vpop.f32.mrf.mxu0  ;;  %v1583_v36 = vmul.f32 %v4616_v24, %v1566_v30  ;;  %v4676_v24 = vld [vmem:[%s5224_s4 + $0x5] ss:$0 sm:$0xff] }
 0x78d   :  { %v1673_v37 = vadd.f32 %v4543_v31, %v1672_v63 }
 0x78e   :  { %v4668_v49 = vadd.f32 %v4625_v38, %v1583_v36 }
 0x78f   :  { %v1702_v46 = vmax.f32 %v1673_v37, 0.0 }
 0x790   :  { %v1608_v44 = vpack.c.bf16 %v4668_v49, %v4665_v19 }
 0x791   :  { %v1714_v28 = vpack.c.bf16 %v1702_v46, %v1701_v1 }
 0x792   :  { %3020 = vmatmul.msk.bf16.gmra.mxu0 %vm329_vm0, %v1608_v44 }
 0x793   :  { %3032 = vmatmul.msk.bf16.gmra.mxu1 %vm329_vm0, %v1714_v28 }
 0x794   :  { %v1675_v57 = vpop.f32.mrf.mxu0 }
 0x795   :  { %v1765_v48 = vpop.f32.mrf.mxu1  ;;  %v1676_v42 = vadd.f32 %v4543_v31, %v1675_v57 }
 0x796   :  { %v1766_v38 = vadd.f32 %v4676_v24, %v1765_v48 }
 0x797   :  { %v1703_v14 = vmax.f32 %v1676_v42, 0.0 }
 0x798   :  { %v4681_v54 = vadd.f32 %v1766_v38, %v4136_v58 }
 0x79a   :  { %v1821_v21 = vsel %vm329_vm0, %v4681_v54, 0.0 }
 0x79b   :  { %1822 = vadd.xlane.f32.xlu1 %v1821_v21 }
 0x79c   :  { %v1677_v17 = vpop.f32.mrf.mxu0 }
 0x79d   :  { %v1678_v43 = vadd.f32 %v4543_v31, %v1677_v17  ;;  %v1767_v61 = vpop.f32.mrf.mxu1 }
 0x79e   :  { %v1768_v33 = vadd.f32 %v4676_v24, %v1767_v61 }
 0x79f   :  { %v1704_v12 = vmax.f32 %v1678_v43, 0.0 }
 0x7a0   :  { %v4689_v7 = vadd.f32 %v1768_v33, %v4139_v45  ;;  %v4739_v33 = vpop.permute.xlu1 %2631 }
 0x7a1   :  { %v1715_v51 = vpack.c.bf16 %v1704_v12, %v1703_v14 }
 0x7a2   :  { %v1824_v58 = vsel %vm329_vm0, %v4689_v7, 0.0 }
 0x7a3   :  { %1825 = vadd.xlane.f32.xlu2 %v1824_v58  ;;  %3033 = vmatmul.msk.bf16.gmra.mxu1 %vm329_vm0, %v1715_v51 }
 0x7a4   :  { %v1680_v5 = vpop.f32.mrf.mxu0 }
 0x7a5   :  { %v1770_v59 = vpop.f32.mrf.mxu1  ;;  %v1681_v45 = vadd.f32 %v4543_v31, %v1680_v5 }
 0x7a6   :  { %v1771_v23 = vadd.f32 %v4676_v24, %v1770_v59 }
 0x7a7   :  { %v1705_v11 = vmax.f32 %v1681_v45, 0.0 }
 0x7a8   :  { %v4696_v53 = vadd.f32 %v1771_v23, %v4227_v16  ;;  %v4748_v5 = vpop.permute.xlu1 %2646 }
 0x7aa   :  { %v1827_v9 = vsel %vm329_vm0, %v4696_v53, 0.0 }
 0x7ab   :  { %1828 = vadd.xlane.f32.xlu0 %v1827_v9 }
 0x7ac   :  { %v1682_v56 = vpop.f32.mrf.mxu0 }
 0x7ad   :  { %v1683_v25 = vadd.f32 %v4543_v31, %v1682_v56  ;;  %v1772_v29 = vpop.f32.mrf.mxu1 }
 0x7ae   :  { %v1773_v60 = vadd.f32 %v4676_v24, %v1772_v29 }
 0x7af   :  { %v1706_v3 = vmax.f32 %v1683_v25, 0.0 }
 0x7b0   :  { %v4704_v55 = vadd.f32 %v1773_v60, %v4230_v15  ;;  %v4759_v56 = vpop.permute.xlu1 %2671 }
 0x7b1   :  { %v1716_v62 = vpack.c.bf16 %v1706_v3, %v1705_v11 }
 0x7b2   :  { %v1830_v16 = vsel %vm329_vm0, %v4704_v55, 0.0 }
 0x7b3   :  { %1831 = vadd.xlane.f32.xlu1 %v1830_v16  ;;  %3034 = vmatmul.msk.bf16.gmra.mxu1 %vm329_vm0, %v1716_v62 }
 0x7b4   :  { %v1685_v10 = vpop.f32.mrf.mxu0 }
 0x7b5   :  { %v1775_v41 = vpop.f32.mrf.mxu1  ;;  %v1686_v15 = vadd.f32 %v4543_v31, %v1685_v10 }
 0x7b6   :  { %v1776_v13 = vadd.f32 %v4676_v24, %v1775_v41 }
 0x7b7   :  { %v1707_v26 = vmax.f32 %v1686_v15, 0.0 }
 0x7b8   :  { %v4711_v2 = vadd.f32 %v1776_v13, %v4284_v27  ;;  %v4769_v3 = vpop.permute.xlu1 %2686 }
 0x7ba   :  { %v1833_v34 = vsel %vm329_vm0, %v4711_v2, 0.0 }
 0x7bb   :  { %1834 = vadd.xlane.f32.xlu2 %v1833_v34 }
 0x7bc   :  { %v1687_v32 = vpop.f32.mrf.mxu0 }
 0x7bd   :  { %v1688_v0 = vadd.f32 %v4543_v31, %v1687_v32  ;;  %v1777_v18 = vpop.f32.mrf.mxu1 }
 0x7be   :  { %v1778_v30 = vadd.f32 %v4676_v24, %v1777_v18 }
 0x7bf   :  { %v1708_v22 = vmax.f32 %v1688_v0, 0.0 }
 0x7c0   :  { %v4719_v63 = vadd.f32 %v1778_v30, %v4287_v39 }
 0x7c1   :  { %v1717_v36 = vpack.c.bf16 %v1708_v22, %v1707_v26 }
 0x7c2   :  { %v1836_v27 = vsel %vm329_vm0, %v4719_v63, 0.0 }
 0x7c3   :  { %3035 = vmatmul.msk.bf16.gmra.mxu1 %vm329_vm0, %v1717_v36  ;;  %1837 = vadd.xlane.f32.xlu0 %v1836_v27  ;;  %v4797_v36 = vpop.permute.xlu0 %2626  ;;  %v4799_v27 = vpop.permute.xlu2 %2636 }
 0x80e   :  { %v1823_v41 = vpop.xlane.xlu1 %1822 }
 0x80f   :  { %v1690_v37 = vpop.f32.mrf.mxu0 }
 0x810   :  { %v1780_v1 = vpop.f32.mrf.mxu1  ;;  %v1691_v39 = vadd.f32 %v4543_v31, %v1690_v37  ;;  %v4801_v37 = vpop.permute.xlu0 %2641 }
 0x811   :  { %v1781_v46 = vadd.f32 %v4676_v24, %v1780_v1  ;;  %v4803_v1 = vpop.permute.xlu2 %2666 }
 0x812   :  { %v1709_v42 = vmax.f32 %v1691_v39, 0.0 }
 0x813   :  { %v4726_v44 = vadd.f32 %v1781_v46, %v4495_v6 }
 0x815   :  { %v1839_v28 = vsel %vm329_vm0, %v4726_v44, 0.0 }
 0x816   :  { %1840 = vadd.xlane.f32.xlu1 %v1839_v28 }
 0x817   :  { %v1692_v57 = vpop.f32.mrf.mxu0 }
 0x818   :  { %v1693_v48 = vadd.f32 %v4543_v31, %v1692_v57  ;;  %v1782_v38 = vpop.f32.mrf.mxu1  ;;  %v4805_v46 = vpop.permute.xlu0 %2651 }
 0x819   :  { %v1783_v21 = vadd.f32 %v4676_v24, %v1782_v38 }
 0x81a   :  { %v1710_v17 = vmax.f32 %v1693_v48, 0.0 }
 0x81b   :  { %v4734_v43 = vadd.f32 %v1783_v21, %v4506_v4  ;;  %v5273_v21 = vld [vmem:[#allocation9_spill] sm:$0xff] }
 0x81c   :  { %v1718_v61 = vpack.c.bf16 %v1710_v17, %v1709_v42  ;;  %v2306_v42 = vrot.slane %v5273_v21, 4 }
 0x81d   :  { %v1842_v6 = vsel %vm329_vm0, %v4734_v43, 0.0 }
 0x81e   :  { %1843 = vadd.xlane.f32.xlu2 %v1842_v6  ;;  %3036 = vmatmul.msk.bf16.gmra.mxu1 %vm329_vm0, %v1718_v61  ;;  %v2307_v6 = vadd.f32 %v2306_v42, %v5273_v21 }
 0x820   :  { %v1785_v14 = vpop.f32.mrf.mxu1  ;;  %v4815_v38 = vpop.permute.xlu0 %2676 }
 0x821   :  { %v1786_v31 = vadd.f32 %v4676_v24, %v1785_v14  ;;  %v2308_v14 = vrot.slane %v2307_v6, 2 }
 0x823   :  { %v4743_v12 = vadd.f32 %v1786_v31, %v4564_v50 }
 0x825   :  { %v1845_v51 = vsel %vm329_vm0, %v4743_v12, 0.0 }
 0x826   :  { %1846 = vadd.xlane.f32.xlu0 %v1845_v51  ;;  %v1832_v0 = vpop.xlane.xlu1 %1831 }
 0x827   :  { %v1872_v18 = vmul.f32 %v1832_v0, %v3936_v52 }
 0x828   :  { %v1787_v4 = vpop.f32.mrf.mxu1  ;;  %v4822_v31 = vpop.permute.xlu0 %2691 }
 0x829   :  { %v1788_v58 = vadd.f32 %v4676_v24, %v1787_v4  ;;  %v4791_v26 = vsub.f32 %v4704_v55, %v1872_v18  ;;  %v4807_v55 = vpop.permute.xlu2 %2681  ;;  %v2309_v4 = vadd.f32 %v2308_v14, %v2307_v6 }
 0x82b   :  { %v4751_v59 = vadd.f32 %v1788_v58, %v4582_v35 }
 0x82d   :  { %v1848_v23 = vsel %vm329_vm0, %v4751_v59, 0.0 }
 0x82e   :  { %1849 = vadd.xlane.f32.xlu1 %v1848_v23 }
 0x830   :  { %v1790_v9 = vpop.f32.mrf.mxu1 }
 0x831   :  { %v1791_v50 = vadd.f32 %v4676_v24, %v1790_v9  ;;  %v4819_v61 = vpop.permute.xlu2 %2656 }
 0x833   :  { %v4757_v45 = vadd.f32 %v1791_v50, %v4628_v40  ;;  %v2310_v50 = vrot.slane %v2309_v4, 1 }
 0x835   :  { %v1851_v25 = vsel %vm329_vm0, %v4757_v45, 0.0 }
 0x836   :  { %1852 = vadd.xlane.f32.xlu2 %v1851_v25 }
 0x838   :  { %v1792_v29 = vpop.f32.mrf.mxu1 }
 0x839   :  { %v1793_v35 = vadd.f32 %v4676_v24, %v1792_v29  ;;  %v1826_v51 = vpop.xlane.xlu2 %1825 }
 0x83a   :  { %v1870_v23 = vmul.f32 %v1826_v51, %v3936_v52 }
 0x83b   :  { %v4765_v60 = vadd.f32 %v1793_v35, %v4631_v8  ;;  %v1869_v8 = vmul.f32 %v1823_v41, %v3936_v52  ;;  %v1829_v35 = vpop.xlane.xlu0 %1828  ;;  %v2311_v41 = vadd.f32 %v2310_v50, %v2309_v4 }
 0x83c   :  { %v4832_v29 = vsub.f32 %v4689_v7, %v1870_v23 }
 0x83d   :  { %v1854_v11 = vsel %vm329_vm0, %v4765_v60, 0.0  ;;  %v4783_v32 = vsub.f32 %v4681_v54, %v1869_v8  ;;  %v2375_v18 = vmax.f32 %v2311_v41, 1.0 }
 0x83e   :  { %1855 = vadd.xlane.f32.xlu0 %v1854_v11  ;;  %v1902_v7 = vmul.f32 %v4832_v29, %v4832_v29 }
 0x83f   :  { %v1901_v30 = vmul.f32 %v4783_v32, %v4783_v32  ;;  %3227 = vrcp.f32 %v2375_v18  ;;  %vm2494_vm3 = vweird.f32 %v2375_v18 }
 0x840   :  { %v1795_v40 = vpop.f32.mrf.mxu1 }
 0x841   :  { %v1796_v62 = vadd.f32 %v4676_v24, %v1795_v40  ;;  %v1917_v22 = vsel %vm329_vm0, %v1901_v30, 0.0  ;;  %v1835_v40 = vpop.xlane.xlu2 %1834 }
 0x843   :  { %v4773_v16 = vadd.f32 %v1796_v62, %v4647_v47 }
 0x845   :  { %v1857_v10 = vsel %vm329_vm0, %v4773_v16, 0.0  ;;  %v3228_v14 = vpop.eup %3227 }
 0x846   :  { %1858 = vadd.xlane.f32.xlu1 %v1857_v10  ;;  %v2490_v23 = vmul.f32 %v3228_v14, %v2375_v18  ;;  %vm2495_vm4 = vweird.f32 %v3228_v14 }
 0x847   :  { %vm2496_vm5 = vmor %vm2494_vm3, %vm2495_vm4 }
 0x848   :  { %v1797_v13 = vpop.f32.mrf.mxu1 }
 0x849   :  { %v1798_v34 = vadd.f32 %v4676_v24, %v1797_v13  ;;  %v1871_v13 = vmul.f32 %v1829_v35, %v3936_v52 }
 0x84b   :  { %v4780_v15 = vadd.f32 %v1798_v34, %v4650_v20  ;;  %v1904_v20 = vmul.f32 %v4791_v26, %v4791_v26  ;;  %v1873_v34 = vmul.f32 %v1835_v40, %v3936_v52  ;;  %v4849_v30 = vsub.f32 %v4696_v53, %v1871_v13 }
 0x84c   :  { %v2500_v13 = vand.u32 2147483648, %v2375_v18 }
 0x84d   :  { %v1860_v47 = vsel %vm329_vm0, %v4780_v15, 0.0  ;;  %v1926_v54 = vsel %vm329_vm0, %v1904_v20, 0.0  ;;  %v1838_v20 = vpop.xlane.xlu0 %1837  ;;  %v1903_v53 = vmul.f32 %v4849_v30, %v4849_v30 }
 0x84e   :  { %1861 = vadd.xlane.f32.xlu2 %v1860_v47 }
 0x84f   :  { %v1923_v21 = vsel %vm329_vm0, %v1903_v53, 0.0 }
 0x856   :  { %1918 = vadd.xlane.f32.xlu2 %v1917_v22  ;;  %v4855_v22 = vsub.f32 %v4711_v2, %v1873_v34 }
 0x85e   :  { %1927 = vadd.xlane.f32.xlu2 %v1926_v54 }
 0x889   :  { %v1841_v28 = vpop.xlane.xlu1 %1840 }
 0x88a   :  { %v1875_v39 = vmul.f32 %v1841_v28, %v3936_v52  ;;  %v1874_v28 = vmul.f32 %v1838_v20, %v3936_v52 }
 0x88c   :  { %v4811_v57 = vsub.f32 %v4726_v44, %v1875_v39  ;;  %v4865_v2 = vsub.f32 %v4719_v63, %v1874_v28 }
 0x88e   :  { %v1907_v48 = vmul.f32 %v4811_v57, %v4811_v57  ;;  %v1906_v4 = vmul.f32 %v4865_v2, %v4865_v2 }
 0x890   :  { %v1935_v17 = vsel %vm329_vm0, %v1907_v48, 0.0  ;;  %v1905_v48 = vmul.f32 %v4855_v22, %v4855_v22 }
 0x891   :  { %1936 = vadd.xlane.f32.xlu2 %v1935_v17  ;;  %v1844_v54 = vpop.xlane.xlu2 %1843 }
 0x892   :  { %v1876_v39 = vmul.f32 %v1844_v54, %v3936_v52  ;;  %v1929_v6 = vsel %vm329_vm0, %v1905_v48, 0.0 }
 0x894   :  { %v4869_v42 = vsub.f32 %v4734_v43, %v1876_v39  ;;  %v2491_v43 = vsub.f32 1.0, %v2490_v23  ;;  %v5275_v23 = vld [vmem:[#allocation15_spill] sm:$0xff] }
 0x899   :  { %v1847_v17 = vpop.xlane.xlu0 %1846 }
 0x89b   :  { %v1800_v44 = vpop.f32.mrf.mxu1 }
 0x89c   :  { %v1801_v58 = vadd.f32 %v4676_v24, %v1800_v44  ;;  %v1877_v44 = vmul.f32 %v1847_v17, %v3936_v52 }
 0x89e   :  { %v4827_v9 = vadd.f32 %v1801_v58, %v4665_v19  ;;  %v1908_v58 = vmul.f32 %v4869_v42, %v4869_v42  ;;  %v4879_v50 = vsub.f32 %v4743_v12, %v1877_v44  ;;  %v2498_v12 = vand.u32 2147483647, %v2375_v18  ;;  %v5274_v18 = vld [vmem:[#allocation8_spill] sm:$0xff] }
 0x8a0   :  { %v1863_v25 = vsel %vm329_vm0, %v4827_v9, 0.0  ;;  %vm2499_vm6 = vcmp.eq.f32.partialorder %v2498_v12, 8.507059e+37 }
 0x8a1   :  { %v1850_v11 = vpop.xlane.xlu1 %1849  ;;  %1864 = vadd.xlane.f32.xlu0 %v1863_v25  ;;  %v1932_v25 = vsel %vm329_vm0, %v1906_v4, 0.0 }
 0x8a2   :  { %v1878_v62 = vmul.f32 %v1850_v11, %v3936_v52 }
 0x8a3   :  { %v1802_v10 = vpop.f32.mrf.mxu1 }
 0x8a4   :  { %v4837_v19 = vsub.f32 %v4751_v59, %v1878_v62  ;;  %v1803_v8 = vadd.f32 %v4676_v24, %v1802_v10  ;;  %v1938_v62 = vsel %vm329_vm0, %v1908_v58, 0.0  ;;  %v2492_v10 = vmul.f32 %v3228_v14, %v2491_v43 }
 0x8a5   :  { %v2355_v43 = vrot.slane %v5275_v23, 4 }
 0x8a6   :  { %v4844_v47 = vadd.f32 %v1803_v8, %v4668_v49  ;;  %v1910_v0 = vmul.f32 %v4837_v19, %v4837_v19  ;;  %v1920_v49 = vsel %vm329_vm0, %v1902_v7, 0.0  ;;  %v2493_v8 = vadd.f32 %v3228_v14, %v2492_v10 }
 0x8a8   :  { %v1866_v59 = vsel %vm329_vm0, %v4844_v47, 0.0  ;;  %v1944_v24 = vsel %vm329_vm0, %v1910_v0, 0.0  ;;  %v2501_v0 = vor.u32 1.1754944e-38, %v2500_v13 }
 0x8a9   :  { %1867 = vadd.xlane.f32.xlu1 %v1866_v59  ;;  %1945 = vadd.xlane.f32.xlu2 %v1944_v24  ;;  %v1853_v51 = vpop.xlane.xlu2 %1852  ;;  %v2497_v24 = vsel %vm2496_vm5, %v3228_v14, %v2493_v8 }
 0x8aa   :  { %1921 = vadd.xlane.f32.xlu0 %v1920_v49  ;;  %v1879_v63 = vmul.f32 %v1853_v51, %v3936_v52  ;;  %v2502_v49 = vsel %vm2499_vm6, %v2501_v0, %v2497_v24 }
 0x8ab   :  { %v2503_v54 = vmul.f32 %v5274_v18, %v2502_v49 }
 0x8ac   :  { %v4883_v35 = vsub.f32 %v4757_v45, %v1879_v63  ;;  %v1909_v45 = vmul.f32 %v4879_v50, %v4879_v50 }
 0x8ae   :  { %v1911_v59 = vmul.f32 %v4883_v35, %v4883_v35  ;;  %v1941_v53 = vsel %vm329_vm0, %v1909_v45, 0.0 }
 0x8b0   :  { %v1947_v48 = vsel %vm329_vm0, %v1911_v59, 0.0 }
 0x8b1   :  { %1924 = vadd.xlane.f32.xlu1 %v1923_v21  ;;  %v1856_v11 = vpop.xlane.xlu0 %1855 }
 0x8b2   :  { %1930 = vadd.xlane.f32.xlu0 %v1929_v6  ;;  %v1880_v34 = vmul.f32 %v1856_v11, %v3936_v52  ;;  %v2356_v11 = vadd.f32 %v2355_v43, %v5275_v23 }
 0x8b4   :  { %v4899_v28 = vsub.f32 %v4765_v60, %v1880_v34 }
 0x8b6   :  { %v1912_v6 = vmul.f32 %v4899_v28, %v4899_v28 }
 0x8b8   :  { %v1950_v51 = vsel %vm329_vm0, %v1912_v6, 0.0 }
 0x8b9   :  { %v1859_v40 = vpop.xlane.xlu1 %1858  ;;  %1933 = vadd.xlane.f32.xlu1 %v1932_v25 }
 0x8ba   :  { %v1881_v41 = vmul.f32 %v1859_v40, %v3936_v52  ;;  %1939 = vadd.xlane.f32.xlu0 %v1938_v62  ;;  %v5276_v62 = vld [vmem:[#allocation13_spill] sm:$0xff] }
 0x8bb   :  { %v2362_v10 = vrot.slane %v5276_v62, 4 }
 0x8bc   :  { %v4889_v7 = vsub.f32 %v4773_v16, %v1881_v41  ;;  %v2357_v41 = vrot.slane %v2356_v11, 2 }
 0x8bd   :  { %v2363_v12 = vadd.f32 %v2362_v10, %v5276_v62  ;;  %v4933_v62 = vld [vmem:[%s5224_s4 + $0x8] ss:$0 sm:$0xff] }
 0x8be   :  { %v1913_v20 = vmul.f32 %v4889_v7, %v4889_v7  ;;  %v2358_v34 = vadd.f32 %v2357_v41, %v2356_v11 }
 0x8bf   :  { %v2364_v59 = vrot.slane %v2363_v12, 2 }
 0x8c0   :  { %v1953_v16 = vsel %vm329_vm0, %v1913_v20, 0.0  ;;  %v2359_v24 = vrot.slane %v2358_v34, 1 }
 0x8c1   :  { %v1862_v39 = vpop.xlane.xlu2 %1861  ;;  %1954 = vadd.xlane.f32.xlu2 %v1953_v16  ;;  %1942 = vadd.xlane.f32.xlu1 %v1941_v53  ;;  %v2365_v16 = vadd.f32 %v2364_v59, %v2363_v12 }
 0x8c2   :  { %v1882_v21 = vmul.f32 %v1862_v39, %v3936_v52  ;;  %1948 = vadd.xlane.f32.xlu0 %v1947_v48  ;;  %v2360_v53 = vadd.f32 %v2359_v24, %v2358_v34 }
 0x8c3   :  { %v2366_v6 = vrot.slane %v2365_v16, 1 }
 0x8c4   :  { %v4906_v17 = vsub.f32 %v4780_v15, %v1882_v21 }
 0x8c6   :  { %v1914_v60 = vmul.f32 %v4906_v17, %v4906_v17 }
 0x8c8   :  { %v1956_v14 = vsel %vm329_vm0, %v1914_v60, 0.0  ;;  %v4921_v60 = vmax.f32 %v2360_v53, 1.0 }
 0x8c9   :  { %1951 = vadd.xlane.f32.xlu1 %v1950_v51  ;;  %v1919_v44 = vpop.xlane.xlu2 %1918 }
 0x8ca   :  { %1957 = vadd.xlane.f32.xlu0 %v1956_v14  ;;  %v1965_v4 = vmul.f32 %v1919_v44, %v3936_v52  ;;  %vm2599_vm15 = vweird.f32 %v4921_v60 }
 0x8cc   :  { %v1981_v58 = vadd.f32 1e-05, %v1965_v4  ;;  %v2367_v4 = vadd.f32 %v2366_v6, %v2365_v16 }
 0x8ce   :  { %3229 = vrsqrt.f32 %v1981_v58  ;;  %vm2003_vm8 = vweird.f32 %v1981_v58  ;;  %v4928_v11 = vmax.f32 %v2367_v4, 1.0 }
 0x8d0   :  { %vm2614_vm5 = vweird.f32 %v4928_v11 }
 0x8d1   :  { %v1928_v63 = vpop.xlane.xlu2 %1927 }
 0x8d2   :  { %v1968_v15 = vmul.f32 %v1928_v63, %v3936_v52 }
 0x8d4   :  { %v1984_v25 = vadd.f32 1e-05, %v1968_v15  ;;  %v3230_v40 = vpop.eup %3229 }
 0x8d5   :  { %v1998_v13 = vmul.f32 %v3230_v40, %v1981_v58  ;;  %vm2004_vm7 = vweird.f32 %v3230_v40 }
 0x8d6   :  { %3231 = vrsqrt.f32 %v1984_v25  ;;  %vm2005_vm1 = vmor %vm2003_vm8, %vm2004_vm7  ;;  %vm2033_vm10 = vweird.f32 %v1984_v25 }
 0x8d7   :  { %v1999_v45 = vmul.f32 %v3230_v40, %v1998_v13 }
 0x8d9   :  { %v2000_v49 = vmul.f32 0.5, %v1999_v45 }
 0x8db   :  { %v2001_v48 = vsub.f32 1.5, %v2000_v49 }
 0x8dc   :  { %v3232_v8 = vpop.eup %3231 }
 0x8dd   :  { %v2028_v0 = vmul.f32 %v3232_v8, %v1984_v25  ;;  %v2002_v14 = vmul.f32 %v3230_v40, %v2001_v48  ;;  %vm2034_vm9 = vweird.f32 %v3232_v8  ;;  %v4944_v25 = vld [vmem:[%s5224_s4 + $0x9] ss:$0 sm:$0xff]  ;;  %s3333_s4 = smov [#allocation5]  }
 0x8de   :  { %2661 = vperm.xlu0 %3090, %v2503_v54   ;;  %vm2035_vm11 = vmor %vm2033_vm10, %vm2034_vm9  ;;  %s2877_s8 = sshll.u32 %s3333_s4, 4  ;;  %s2878_s8 = int_to_ptr.vmem [resolvable:$true] %s2877_s8 }
 0x8df   :  { %v2029_v18 = vmul.f32 %v3232_v8, %v2028_v0  ;;  %v2006_v15 = vsel %vm2005_vm1, %v3230_v40, %v2002_v14  ;;  %v2605_v14 = vand.u32 2147483648, %v4921_v60 }
 0x8e0   :  { %v2157_v10 = vmul.f32 %v2006_v15, %v4783_v32 }
 0x8e1   :  { %v2030_v21 = vmul.f32 0.5, %v2029_v18 }
 0x8e2   :  { %v2174_v32 = vmul.f32 %v4933_v62, %v2157_v10  ;;  %v2603_v10 = vand.u32 2147483647, %v4921_v60 }
 0x8e3   :  { %v2031_v51 = vsub.f32 1.5, %v2030_v21 }
 0x8e4   :  { %v2191_v49 = vadd.f32 %v4944_v25, %v2174_v32  ;;  %vm2604_vm4 = vcmp.eq.f32.partialorder %v2603_v10, 8.507059e+37 }
 0x8e5   :  { %v2032_v23 = vmul.f32 %v3232_v8, %v2031_v51 }
 0x8e7   :  { %v2036_v12 = vsel %vm2035_vm11, %v3232_v8, %v2032_v23 }
 0x8e8   :  { %v2160_v0 = vmul.f32 %v2036_v12, %v4791_v26  ;;  %v2606_v12 = vor.u32 1.1754944e-38, %v2605_v14 }
 0x8ea   :  { %v2177_v18 = vmul.f32 %v4933_v62, %v2160_v0 }
 0x904   :  { %v1937_v20 = vpop.xlane.xlu2 %1936 }
 0x905   :  { %v1971_v54 = vmul.f32 %v1937_v20, %v3936_v52 }
 0x907   :  { %v1987_v39 = vadd.f32 1e-05, %v1971_v54 }
 0x909   :  { %3233 = vrsqrt.f32 %v1987_v39  ;;  %vm2063_vm13 = vweird.f32 %v1987_v39 }
 0x90a   :  { %3235 = vrcp.f32 %v4921_v60 }
 0x90b   :  { %3237 = vrcp.f32 %v4928_v11 }
 0x90f   :  { %v4923_v44 = vpop.eup %3233 }
 0x910   :  { %v2058_v63 = vmul.f32 %v4923_v44, %v1987_v39  ;;  %v3236_v13 = vpop.eup %3235  ;;  %vm2064_vm12 = vweird.f32 %v4923_v44 }
 0x911   :  { %v2595_v59 = vmul.f32 %v3236_v13, %v4921_v60  ;;  %v4956_v53 = vpop.eup %3237  ;;  %vm4961_vm14 = vmor %vm2063_vm13, %vm2064_vm12  ;;  %vm2600_vm2 = vweird.f32 %v3236_v13 }
 0x912   :  { %v2059_v43 = vmul.f32 %v4923_v44, %v2058_v63  ;;  %vm4975_vm3 = vmor %vm2599_vm15, %vm2600_vm2  ;;  %vm2615_vm6 = vweird.f32 %v4956_v53 }
 0x913   :  { %v2596_v24 = vsub.f32 1.0, %v2595_v59  ;;  %vm5010_vm7 = vmor %vm2614_vm5, %vm2615_vm6 }
 0x914   :  { %v2060_v58 = vmul.f32 0.5, %v2059_v43  ;;  %v1865_v41 = vpop.xlane.xlu0 %1864 }
 0x915   :  { %v1883_v40 = vmul.f32 %v1865_v41, %v3936_v52  ;;  %v2597_v26 = vmul.f32 %v3236_v13, %v2596_v24 }
 0x916   :  { %v2061_v34 = vsub.f32 1.5, %v2060_v58 }
 0x917   :  { %v4939_v45 = vsub.f32 %v4827_v9, %v1883_v40  ;;  %v2598_v63 = vadd.f32 %v3236_v13, %v2597_v26  ;;  %v2704_v40 = vmul.f32 %v4797_v36, %v2191_v49  ;;  %v2620_v36 = vand.u32 2147483648, %v4928_v11 }
 0x918   :  { %v2062_v20 = vmul.f32 %v4923_v44, %v2061_v34  ;;  %v2194_v34 = vadd.f32 %v4944_v25, %v2177_v18 }
 0x919   :  { %v1915_v8 = vmul.f32 %v4939_v45, %v4939_v45  ;;  %v2602_v41 = vsel %vm4975_vm3, %v3236_v13, %v2598_v63  ;;  %v2720_v18 = vsel %vm329_vm0, %v2704_v40, 0.0  ;;  %v2621_v51 = vor.u32 1.1754944e-38, %v2620_v36 }
 0x91a   :  { %v2066_v39 = vsel %vm4961_vm14, %v4923_v44, %v2062_v20  ;;  %v2610_v44 = vmul.f32 %v4956_v53, %v4928_v11  ;;  %v2607_v0 = vsel %vm2604_vm4, %v2606_v12, %v2602_v41 }
 0x91b   :  { %v1959_v9 = vsel %vm329_vm0, %v1915_v8, 0.0  ;;  %v2163_v32 = vmul.f32 %v2066_v39, %v4811_v57  ;;  %v5281_v8 = vld [vmem:[#allocation14_spill] sm:$0xff]  ;;  %v2618_v57 = vand.u32 2147483647, %v4928_v11  ;;  %v2721_v39 = vrot.slane %v2720_v18, 4 }
 0x91c   :  { %v1946_v54 = vpop.xlane.xlu2 %1945  ;;  %v1868_v16 = vpop.xlane.xlu1 %1867  ;;  %1960 = vadd.xlane.f32.xlu1 %v1959_v9  ;;  %v2611_v60 = vsub.f32 1.0, %v2610_v44  ;;  %v4995_v24 = vmul.f32 %v5281_v8, %v2607_v0 }
 0x91d   :  { %v1974_v48 = vmul.f32 %v1946_v54, %v3936_v52  ;;  %v1884_v21 = vmul.f32 %v1868_v16, %v3936_v52  ;;  %v1922_v6 = vpop.xlane.xlu0 %1921  ;;  %vm2619_vm8 = vcmp.eq.f32.partialorder %v2618_v57, 8.507059e+37 }
 0x91e   :  { %v1966_v4 = vmul.f32 %v1922_v6, %v3936_v52  ;;  %v2612_v20 = vmul.f32 %v4956_v53, %v2611_v60 }
 0x91f   :  { %v4970_v15 = vadd.f32 1e-05, %v1974_v48  ;;  %v4973_v23 = vsub.f32 %v4844_v47, %v1884_v21  ;;  %v2707_v48 = vmul.f32 %v4801_v37, %v2194_v34  ;;  %v2180_v21 = vmul.f32 %v4933_v62, %v2163_v32  ;;  %v5284_v34 = vld [vmem:[#allocation12_spill] sm:$0xff] }
 0x920   :  { %v4980_v58 = vadd.f32 1e-05, %v1966_v4  ;;  %v2613_v16 = vadd.f32 %v4956_v53, %v2612_v20 }
 0x921   :  { %3239 = vrsqrt.f32 %v4970_v15  ;;  %v1916_v47 = vmul.f32 %v4973_v23, %v4973_v23  ;;  %v2741_v41 = vsel %vm329_vm0, %v2707_v48, 0.0  ;;  %v2197_v12 = vadd.f32 %v4944_v25, %v2180_v21 }
 0x922   :  { %3241 = vrsqrt.f32 %v4980_v58  ;;  %v2617_v10 = vsel %vm5010_vm7, %v4956_v53, %v2613_v16  ;;  %v2742_v20 = vrot.slane %v2741_v41, 4  ;;  %vm2093_vm10 = vweird.f32 %v4970_v15 }
 0x923   :  { %v1962_v13 = vsel %vm329_vm0, %v1916_v47, 0.0  ;;  %v2622_v47 = vsel %vm2619_vm8, %v2621_v51, %v2617_v10  ;;  %vm2013_vm12 = vweird.f32 %v4980_v58 }
 0x924   :  { %1963 = vadd.xlane.f32.xlu2 %v1962_v13  ;;  %v1925_v59 = vpop.xlane.xlu1 %1924  ;;  %v5026_v32 = vmul.f32 %v5284_v34, %v2622_v47  ;;  %v5028_v13 = vadd.f32 %v2721_v39, %v2720_v18 }
 0x925   :  { %v1967_v9 = vmul.f32 %v1925_v59, %v3936_v52  ;;  %v1931_v49 = vpop.xlane.xlu0 %1930 }
 0x926   :  { %v1969_v54 = vmul.f32 %v1931_v49, %v3936_v52  ;;  %v2710_v49 = vmul.f32 %v4819_v61, %v2197_v12  ;;  %v2723_v10 = vrot.slane %v5028_v13, 2  ;;  %v2743_v12 = vadd.f32 %v2742_v20, %v2741_v41 }
 0x927   :  { %v3240_v26 = vpop.eup %3239  ;;  %v5008_v6 = vadd.f32 1e-05, %v1967_v9 }
 0x928   :  { %v3242_v4 = vpop.eup %3241  ;;  %v2088_v11 = vmul.f32 %v3240_v26, %v4970_v15  ;;  %v5015_v63 = vadd.f32 1e-05, %v1969_v54  ;;  %vm2094_vm1 = vweird.f32 %v3240_v26  ;;  %v2762_v39 = vsel %vm329_vm0, %v2710_v49, 0.0 }
 0x929   :  { %v2008_v43 = vmul.f32 %v3242_v4, %v4980_v58  ;;  %3243 = vrsqrt.f32 %v5008_v6  ;;  %vm2014_vm9 = vweird.f32 %v3242_v4  ;;  %vm2095_vm11 = vmor %vm2093_vm10, %vm2094_vm1  ;;  %vm2023_vm15 = vweird.f32 %v5008_v6 }
 0x92a   :  { %v2089_v37 = vmul.f32 %v3240_v26, %v2088_v11  ;;  %3245 = vrsqrt.f32 %v5015_v63  ;;  %vm2015_vm13 = vmor %vm2013_vm12, %vm2014_vm9  ;;  %vm2043_vm4 = vweird.f32 %v5015_v63 }
 0x92b   :  { %v2009_v44 = vmul.f32 %v3242_v4, %v2008_v43 }
 0x92c   :  { %v2090_v40 = vmul.f32 0.5, %v2089_v37  ;;  %v1934_v60 = vpop.xlane.xlu1 %1933 }
 0x92d   :  { %v2010_v0 = vmul.f32 0.5, %v2009_v44  ;;  %v1970_v59 = vmul.f32 %v1934_v60, %v3936_v52  ;;  %v1940_v8 = vpop.xlane.xlu0 %1939 }
 0x92e   :  { %v2091_v36 = vsub.f32 1.5, %v2090_v40  ;;  %v1972_v53 = vmul.f32 %v1940_v8, %v3936_v52 }
 0x92f   :  { %v3244_v9 = vpop.eup %3243  ;;  %v2011_v57 = vsub.f32 1.5, %v2010_v0  ;;  %v5033_v54 = vadd.f32 1e-05, %v1970_v59 }
 0x930   :  { %v3246_v16 = vpop.eup %3245  ;;  %v2092_v48 = vmul.f32 %v3240_v26, %v2091_v36  ;;  %v2018_v18 = vmul.f32 %v3244_v9, %v5008_v6  ;;  %v5037_v21 = vadd.f32 1e-05, %v1972_v53  ;;  %vm2024_vm14 = vweird.f32 %v3244_v9 }
 0x931   :  { %v2012_v14 = vmul.f32 %v3242_v4, %v2011_v57  ;;  %v2038_v51 = vmul.f32 %v3246_v16, %v5015_v63  ;;  %3247 = vrsqrt.f32 %v5033_v54  ;;  %vm2044_vm2 = vweird.f32 %v3246_v16  ;;  %vm2025_vm3 = vmor %vm2023_vm15, %vm2024_vm14 }
 0x932   :  { %v2096_v61 = vsel %vm2095_vm11, %v3240_v26, %v2092_v48  ;;  %v2019_v11 = vmul.f32 %v3244_v9, %v2018_v18  ;;  %3249 = vrsqrt.f32 %v5037_v21  ;;  %vm2045_vm5 = vmor %vm2043_vm4, %vm2044_vm2  ;;  %vm2053_vm7 = vweird.f32 %v5033_v54 }
 0x933   :  { %v2166_v15 = vmul.f32 %v2096_v61, %v4837_v19  ;;  %v2016_v43 = vsel %vm2015_vm13, %v3242_v4, %v2012_v14  ;;  %v2039_v37 = vmul.f32 %v3246_v16, %v2038_v51  ;;  %v2763_v19 = vrot.slane %v2762_v39, 4 }
 0x934   :  { %v2158_v58 = vmul.f32 %v2016_v43, %v4832_v29  ;;  %v2020_v44 = vmul.f32 0.5, %v2019_v11  ;;  %v1955_v47 = vpop.xlane.xlu2 %1954  ;;  %v1943_v40 = vpop.xlane.xlu1 %1942  ;;  %v5069_v11 = vadd.f32 %v2723_v10, %v5028_v13  ;;  %vm2073_vm13 = vweird.f32 %v5037_v21 }
 0x935   :  { %v2183_v26 = vmul.f32 %v4933_v62, %v2166_v15  ;;  %v2040_v60 = vmul.f32 0.5, %v2039_v37  ;;  %v1977_v34 = vmul.f32 %v1955_v47, %v3936_v52  ;;  %v1973_v0 = vmul.f32 %v1943_v40, %v3936_v52  ;;  %2696 = vperm.xlu1 %3091, %v4995_v24   ;;  %v1949_v18 = vpop.xlane.xlu0 %1948 }
 0x936   :  { %v2175_v4 = vmul.f32 %v4933_v62, %v2158_v58  ;;  %v2021_v59 = vsub.f32 1.5, %v2020_v44  ;;  %v2744_v15 = vrot.slane %v2743_v12, 2 }
 0x937   :  { %v3248_v41 = vpop.eup %3247  ;;  %v2041_v29 = vsub.f32 1.5, %v2040_v60  ;;  %v5053_v8 = vadd.f32 1e-05, %v1977_v34  ;;  %v2200_v36 = vadd.f32 %v4944_v25, %v2183_v26  ;;  %v5063_v48 = vadd.f32 1e-05, %v1973_v0 }
 0x938   :  { %v5055_v20 = vpop.eup %3249  ;;  %v2192_v53 = vadd.f32 %v4944_v25, %v2175_v4  ;;  %v2022_v49 = vmul.f32 %v3244_v9, %v2021_v59  ;;  %v2048_v24 = vmul.f32 %v3248_v41, %v5033_v54  ;;  %vm2054_vm6 = vweird.f32 %v3248_v41 }
 0x939   :  { %v2042_v57 = vmul.f32 %v3246_v16, %v2041_v29  ;;  %v2068_v6 = vmul.f32 %v5055_v20, %v5037_v21  ;;  %3251 = vrsqrt.f32 %v5053_v8  ;;  %v2713_v37 = vmul.f32 %v4759_v56, %v2200_v36  ;;  %vm2055_vm8 = vmor %vm2053_vm7, %vm2054_vm6 }
 0x93a   :  { %v2705_v14 = vmul.f32 %v4739_v33, %v2192_v53  ;;  %v2026_v51 = vsel %vm2025_vm3, %v3244_v9, %v2022_v49  ;;  %v2049_v61 = vmul.f32 %v3248_v41, %v2048_v24  ;;  %v1975_v33 = vmul.f32 %v1949_v18, %v3936_v52 }
 0x93b   :  { %v2159_v63 = vmul.f32 %v2026_v51, %v4849_v30  ;;  %v2046_v43 = vsel %vm2045_vm5, %v3246_v16, %v2042_v57  ;;  %v2764_v9 = vadd.f32 %v2763_v19, %v2762_v39  ;;  %v2069_v13 = vmul.f32 %v5055_v20, %v2068_v6 }
 0x93c   :  { %v2161_v58 = vmul.f32 %v2046_v43, %v4855_v22  ;;  %v2050_v44 = vmul.f32 0.5, %v2049_v61  ;;  %2701 = vperm.xlu2 %3092, %v5026_v32   ;;  %v2727_v10 = vsel %vm329_vm0, %v2705_v14, 0.0  ;;  %3253 = vrsqrt.f32 %v5063_v48 }
 0x93d   :  { %v2176_v47 = vmul.f32 %v4933_v62, %v2159_v63  ;;  %v5081_v56 = vadd.f32 %v2744_v15, %v2743_v12  ;;  %v2783_v39 = vsel %vm329_vm0, %v2713_v37, 0.0  ;;  %v5087_v60 = vadd.f32 1e-05, %v1975_v33 }
 0x93e   :  { %v2178_v30 = vmul.f32 %v4933_v62, %v2161_v58  ;;  %v2051_v16 = vsub.f32 1.5, %v2050_v44  ;;  %v2728_v34 = vrot.slane %v2727_v10, 4  ;;  %v2070_v19 = vmul.f32 0.5, %v2069_v13  ;;  %v1958_v13 = vpop.xlane.xlu0 %1957 }
 0x93f   :  { %v2193_v22 = vadd.f32 %v4944_v25, %v2176_v47  ;;  %v3252_v32 = vpop.eup %3251  ;;  %v2725_v4 = vrot.slane %v5069_v11, 1  ;;  %v2765_v59 = vrot.slane %v2764_v9, 2  ;;  %v2746_v36 = vrot.slane %v5081_v56, 1 }
 0x940   :  { %v2195_v40 = vadd.f32 %v4944_v25, %v2178_v30  ;;  %v2052_v26 = vmul.f32 %v3248_v41, %v2051_v16  ;;  %v2118_v12 = vmul.f32 %v3252_v32, %v5053_v8  ;;  %3255 = vrsqrt.f32 %v5087_v60 }
 0x941   :  { %v2706_v0 = vmul.f32 %v4799_v27, %v2193_v22  ;;  %v2784_v27 = vrot.slane %v2783_v39, 4  ;;  %v2729_v14 = vadd.f32 %v2728_v34, %v2727_v10  ;;  %v2071_v61 = vsub.f32 1.5, %v2070_v19 }
 0x942   :  { %v2708_v54 = vmul.f32 %v4748_v5, %v2195_v40  ;;  %v2056_v29 = vsel %vm2055_vm8, %v3248_v41, %v2052_v26  ;;  %v2119_v24 = vmul.f32 %v3252_v32, %v2118_v12  ;;  %v3254_v57 = vpop.eup %3253  ;;  %v1952_v41 = vpop.xlane.xlu1 %1951  ;;  %v5101_v37 = vadd.f32 %v2765_v59, %v2764_v9 }
 0x943   :  { %v2734_v53 = vsel %vm329_vm0, %v2706_v0, 0.0  ;;  %v2162_v49 = vmul.f32 %v2056_v29, %v4865_v2  ;;  %v2078_v43 = vmul.f32 %v3254_v57, %v5063_v48  ;;  %vm2074_vm1 = vweird.f32 %v5055_v20 }
 0x944   :  { %v2735_v6 = vrot.slane %v2734_v53, 4  ;;  %v2748_v18 = vsel %vm329_vm0, %v2708_v54, 0.0  ;;  %v2120_v5 = vmul.f32 0.5, %v2119_v24  ;;  %vm2124_vm9 = vweird.f32 %v3252_v32  ;;  %vm5120_vm15 = vmor %vm2073_vm13, %vm2074_vm1 }
 0x945   :  { %v2179_v51 = vmul.f32 %v4933_v62, %v2162_v49  ;;  %v2749_v63 = vrot.slane %v2748_v18, 4  ;;  %v2785_v44 = vadd.f32 %v2784_v27, %v2783_v39  ;;  %vm2123_vm10 = vweird.f32 %v5053_v8 }
 0x946   :  { %v2736_v15 = vadd.f32 %v2735_v6, %v2734_v53  ;;  %v2121_v58 = vsub.f32 1.5, %v2120_v5  ;;  %v2079_v33 = vmul.f32 %v3254_v57, %v2078_v43  ;;  %v1976_v47 = vmul.f32 %v1952_v41, %v3936_v52  ;;  %v3256_v22 = vpop.eup %3255  ;;  %vm2125_vm11 = vmor %vm2123_vm10, %vm2124_vm9 }
 0x947   :  { %v2196_v2 = vadd.f32 %v4944_v25, %v2179_v51  ;;  %v2730_v10 = vrot.slane %v2729_v14, 2  ;;  %v2072_v16 = vmul.f32 %v5055_v20, %v2071_v61  ;;  %v2750_v26 = vadd.f32 %v2749_v63, %v2748_v18 }
 0x948   :  { %v2122_v9 = vmul.f32 %v3252_v32, %v2121_v58  ;;  %v2737_v40 = vrot.slane %v2736_v15, 2  ;;  %v2080_v34 = vmul.f32 0.5, %v2079_v33  ;;  %v5109_v0 = vadd.f32 1e-05, %v1976_v47 }
 0x949   :  { %v2709_v30 = vmul.f32 %v4805_v46, %v2196_v2  ;;  %v2098_v19 = vmul.f32 %v3256_v22, %v5087_v60  ;;  %v1978_v12 = vmul.f32 %v1958_v13, %v3936_v52  ;;  %vm2084_vm12 = vweird.f32 %v3254_v57 }
 0x94a   :  { %v2126_v8 = vsel %vm2125_vm11, %v3252_v32, %v2122_v9  ;;  %v2081_v54 = vsub.f32 1.5, %v2080_v34  ;;  %vm2083_vm14 = vweird.f32 %v5063_v48  ;;  %3257 = vrsqrt.f32 %v5109_v0 }
 0x94b   :  { %v2755_v39 = vsel %vm329_vm0, %v2709_v30, 0.0  ;;  %v2169_v46 = vmul.f32 %v2126_v8, %v4889_v7  ;;  %v2099_v29 = vmul.f32 %v3256_v22, %v2098_v19  ;;  %v2731_v53 = vadd.f32 %v2730_v10, %v2729_v14  ;;  %vm2085_vm2 = vmor %vm2083_vm14, %vm2084_vm12 }
 0x94c   :  { %v2756_v59 = vrot.slane %v2755_v39, 4  ;;  %v2751_v49 = vrot.slane %v2750_v26, 2  ;;  %v2082_v7 = vmul.f32 %v3254_v57, %v2081_v54  ;;  %v2786_v27 = vrot.slane %v2785_v44, 2 }
 0x94d   :  { %v2186_v24 = vmul.f32 %v4933_v62, %v2169_v46  ;;  %v2738_v6 = vadd.f32 %v2737_v40, %v2736_v15  ;;  %v2100_v21 = vmul.f32 0.5, %v2099_v29  ;;  %v5125_v18 = vadd.f32 1e-05, %v1978_v12 }
 0x94e   :  { %v2757_v48 = vadd.f32 %v2756_v59, %v2755_v39  ;;  %v2086_v51 = vsel %vm2085_vm2, %v3254_v57, %v2082_v7  ;;  %vm2104_vm3 = vweird.f32 %v3256_v22  ;;  %v2076_v14 = vsel %vm5120_vm15, %v5055_v20, %v2072_v16 }
 0x94f   :  { %v2203_v61 = vadd.f32 %v4944_v25, %v2186_v24  ;;  %v2165_v5 = vmul.f32 %v2086_v51, %v4879_v50  ;;  %v2101_v41 = vsub.f32 1.5, %v2100_v21  ;;  %3259 = vrsqrt.f32 %v5125_v18 }
 0x950   :  { %v2726_v15 = vadd.f32 %v2725_v4, %v5069_v11  ;;  %v2732_v63 = vrot.slane %v2731_v53, 1  ;;  %v5136_v43 = vadd.f32 %v2751_v49, %v2750_v26  ;;  %vm2103_vm4 = vweird.f32 %v5087_v60  ;;  %v3258_v57 = vpop.eup %3257  ;;  %v2662_v46 = vpop.permute.xlu0 %2661 }
 0x951   :  { %v2739_v2 = vrot.slane %v2738_v6, 1  ;;  %v2182_v20 = vmul.f32 %v4933_v62, %v2165_v5  ;;  %v2102_v58 = vmul.f32 %v3256_v22, %v2101_v41  ;;  %v2164_v33 = vmul.f32 %v2076_v14, %v4869_v42  ;;  %vm2105_vm5 = vmor %vm2103_vm4, %vm2104_vm3 }
 0x952   :  { %v5144_v50 = vadd.f32 %v2746_v36, %v5081_v56  ;;  %v5146_v47 = vadd.f32 %v2786_v27, %v2785_v44  ;;  %v2108_v11 = vmul.f32 %v3258_v57, %v5109_v0  ;;  %v2767_v60 = vrot.slane %v5101_v37, 1 }
 0x953   :  { %v2758_v4 = vrot.slane %v2757_v48, 2  ;;  %v2716_v13 = vmul.f32 %v4769_v3, %v2203_v61  ;;  %v2199_v10 = vadd.f32 %v4944_v25, %v2182_v20  ;;  %v2106_v30 = vsel %vm2105_vm5, %v3256_v22, %v2102_v58 }
 0x954   :  { %v2733_v42 = vadd.f32 %v2732_v63, %v2731_v53  ;;  %v2753_v16 = vrot.slane %v5136_v43, 1  ;;  %v2167_v56 = vmul.f32 %v2106_v30, %v4883_v35  ;;  %v2109_v36 = vmul.f32 %v3258_v57, %v2108_v11 }
 0x955   :  { %v3260_v44 = vpop.eup %3259  ;;  %v2740_v9 = vadd.f32 %v2739_v2, %v2738_v6  ;;  %v2712_v40 = vmul.f32 %v4803_v1, %v2199_v10  ;;  %vm2113_vm6 = vweird.f32 %v5109_v0  ;;  %v2181_v26 = vmul.f32 %v4933_v62, %v2164_v33 }
 0x956   :  { %v2184_v34 = vmul.f32 %v4933_v62, %v2167_v56  ;;  %v2110_v3 = vmul.f32 0.5, %v2109_v36  ;;  %v2128_v39 = vmul.f32 %v3260_v44, %v5125_v18  ;;  %vm2848_vm7 = vcmask 1041409  }
 0x957   :  { %v2759_v22 = vadd.f32 %v2758_v4, %v2757_v48  ;;  %v2804_v8 = vsel %vm329_vm0, %v2716_v13, 0.0  ;;  %v2776_v35 = vsel %vm329_vm0, %v2712_v40, 0.0  ;;  %vm2114_vm8 = vweird.f32 %v3258_v57 }
 0x958   :  { %v2777_v19 = vrot.slane %v2776_v35, 4  ;;  %v2201_v12 = vadd.f32 %v4944_v25, %v2184_v34  ;;  %v2111_v1 = vsub.f32 1.5, %v2110_v3  ;;  %v2129_v59 = vmul.f32 %v3260_v44, %v2128_v39  ;;  %vm2115_vm10 = vmor %vm2113_vm6, %vm2114_vm8 }
 0x959   :  { %vm2133_vm1 = vweird.f32 %v5125_v18  ;;  %v2198_v54 = vadd.f32 %v4944_v25, %v2181_v26  ;;  %v2849_v29 = vsel %vm2848_vm7, %v2733_v42, %v2726_v15  ;;  %vm2850_vm9 = vcmask 1042434  }
 0x95a   :  { %v2778_v53 = vadd.f32 %v2777_v19, %v2776_v35  ;;  %v2714_v49 = vmul.f32 %v4815_v38, %v2201_v12  ;;  %v2112_v32 = vmul.f32 %v3258_v57, %v2111_v1  ;;  %v2130_v24 = vmul.f32 0.5, %v2129_v59 }
 0x95b   :  { %v2760_v7 = vrot.slane %v2759_v22, 1  ;;  %v2805_v27 = vrot.slane %v2804_v8, 4  ;;  %vm2134_vm11 = vweird.f32 %v3260_v44  ;;  %v2711_v6 = vmul.f32 %v2662_v46, %v2198_v54 }
 0x95c   :  { %v2779_v21 = vrot.slane %v2778_v53, 2  ;;  %v2790_v48 = vsel %vm329_vm0, %v2714_v49, 0.0  ;;  %v2116_v51 = vsel %vm2115_vm10, %v3258_v57, %v2112_v32  ;;  %v2131_v14 = vsub.f32 1.5, %v2130_v24  ;;  %vm2135_vm13 = vmor %vm2133_vm1, %vm2134_vm11 }
 0x95d   :  { %v2791_v61 = vrot.slane %v2790_v48, 4  ;;  %v2168_v5 = vmul.f32 %v2116_v51, %v4899_v28  ;;  %v2851_v38 = vsel %vm2850_vm9, %v2740_v9, %v2849_v29  ;;  %v2769_v41 = vsel %vm329_vm0, %v2711_v6, 0.0 }
 0x95e   :  { %v2780_v15 = vadd.f32 %v2779_v21, %v2778_v53  ;;  %v2132_v63 = vmul.f32 %v3260_v44, %v2131_v14  ;;  %vm2852_vm12 = vcmask 1043459   ;;  %v2770_v2 = vrot.slane %v2769_v41, 4 }
 0x95f   :  { %v2788_v0 = vrot.slane %v5146_v47, 1  ;;  %v2806_v20 = vadd.f32 %v2805_v27, %v2804_v8  ;;  %v2792_v58 = vadd.f32 %v2791_v61, %v2790_v48  ;;  %v2185_v33 = vmul.f32 %v4933_v62, %v2168_v5 }
 0x960   :  { %v2781_v57 = vrot.slane %v2780_v15, 1  ;;  %v2136_v28 = vsel %vm2135_vm13, %v3260_v44, %v2132_v63  ;;  %vm2854_vm14 = vcmask 1044484   ;;  %v2771_v11 = vadd.f32 %v2770_v2, %v2769_v41 }
 0x961   :  { %v2793_v4 = vrot.slane %v2792_v58, 2  ;;  %v2202_v13 = vadd.f32 %v4944_v25, %v2185_v33  ;;  %v2170_v10 = vmul.f32 %v2136_v28, %v4906_v17  ;;  %v2853_v30 = vsel %vm2852_vm12, %v5144_v50, %v2851_v38 }
 0x962   :  { %v2754_v42 = vadd.f32 %v2753_v16, %v5136_v43  ;;  %v2782_v56 = vadd.f32 %v2781_v57, %v2780_v15  ;;  %v2761_v36 = vadd.f32 %v2760_v7, %v2759_v22  ;;  %v2772_v9 = vrot.slane %v2771_v11, 2 }
 0x963   :  { %v2794_v40 = vadd.f32 %v2793_v4, %v2792_v58  ;;  %v2715_v18 = vmul.f32 %v4807_v55, %v2202_v13  ;;  %v2187_v44 = vmul.f32 %v4933_v62, %v2170_v10  ;;  %vm2856_vm15 = vcmask 1045509  }
 0x964   :  { %v2789_v26 = vadd.f32 %v2788_v0, %v5146_v47  ;;  %v2807_v34 = vrot.slane %v2806_v20, 2  ;;  %v2855_v3 = vsel %vm2854_vm14, %v2754_v42, %v2853_v30  ;;  %v2773_v17 = vadd.f32 %v2772_v9, %v2771_v11 }
 0x965   :  { %v2795_v39 = vrot.slane %v2794_v40, 1  ;;  %v2797_v50 = vsel %vm329_vm0, %v2715_v18, 0.0  ;;  %v2204_v43 = vadd.f32 %v4944_v25, %v2187_v44  ;;  %vm2858_vm2 = vcmask 1046534  }
 0x966   :  { %v2798_v16 = vrot.slane %v2797_v50, 4  ;;  %v2857_v22 = vsel %vm2856_vm15, %v2761_v36, %v2855_v3  ;;  %v2774_v8 = vrot.slane %v2773_v17, 1  ;;  %v2862_v55 = vsel %vm2848_vm7, %v2789_v26, %v2782_v56 }
 0x967   :  { %v2796_v35 = vadd.f32 %v2795_v39, %v2794_v40  ;;  %v2717_v19 = vmul.f32 %v4822_v31, %v2204_v43  ;;  %v2768_v47 = vadd.f32 %v2767_v60, %v5101_v37  ;;  %vm2860_vm3 = vcmask 1047559  }
 0x968   :  { %v2799_v12 = vadd.f32 %v2798_v16, %v2797_v50  ;;  %v2775_v1 = vadd.f32 %v2774_v8, %v2773_v17  ;;  %v2808_v59 = vadd.f32 %v2807_v34, %v2806_v20 }
 0x969   :  { %v2811_v46 = vsel %vm329_vm0, %v2717_v19, 0.0  ;;  %v2859_v54 = vsel %vm2858_vm2, %v2768_v47, %v2857_v22  ;;  %v2863_v29 = vsel %vm2850_vm9, %v2796_v35, %v2862_v55 }
 0x96a   :  { %v2800_v53 = vrot.slane %v2799_v12, 2  ;;  %v2812_v49 = vrot.slane %v2811_v46, 4  ;;  %v2861_v32 = vsel %vm2860_vm3, %v2775_v1, %v2859_v54  ;;  %v2809_v7 = vrot.slane %v2808_v59, 1 }
 0x96b   :  { %2871 = vst.msk [vmem:[#allocation5] sm:$0xff] %vm329_vm0, %v2861_v32 }
 0x96c   :  { %v2801_v31 = vadd.f32 %v2800_v53, %v2799_v12  ;;  %v2813_v24 = vadd.f32 %v2812_v49, %v2811_v46  ;;  %v2810_v21 = vadd.f32 %v2809_v7, %v2808_v59 }
 0x96e   :  { %v2802_v37 = vrot.slane %v2801_v31, 1  ;;  %v2814_v60 = vrot.slane %v2813_v24, 2 }
 0x970   :  { %v2803_v27 = vadd.f32 %v2802_v37, %v2801_v31  ;;  %v2815_v6 = vadd.f32 %v2814_v60, %v2813_v24 }
 0x972   :  { %v2816_v48 = vrot.slane %v2815_v6, 1  ;;  %v2864_v51 = vsel %vm2852_vm12, %v2803_v27, %v2863_v29 }
 0x973   :  { %v2865_v14 = vsel %vm2854_vm14, %v2810_v21, %v2864_v51 }
 0x974   :  { %v2817_v61 = vadd.f32 %v2816_v48, %v2815_v6 }
 0x976   :  { %v2866_v5 = vsel %vm2856_vm15, %v2817_v61, %v2865_v14 }
 0x98f   :  { %v1961_v38 = vpop.xlane.xlu1 %1960 }
 0x990   :  { %v1979_v41 = vmul.f32 %v1961_v38, %v3936_v52 }
 0x992   :  { %v1995_v15 = vadd.f32 1e-05, %v1979_v41 }
 0x994   :  { %3261 = vrsqrt.f32 %v1995_v15  ;;  %vm2143_vm5 = vweird.f32 %v1995_v15 }
 0x997   :  { %v1964_v63 = vpop.xlane.xlu2 %1963 }
 0x998   :  { %v1980_v2 = vmul.f32 %v1964_v63, %v3936_v52 }
 0x99a   :  { %v3262_v0 = vpop.eup %3261  ;;  %v1996_v20 = vadd.f32 1e-05, %v1980_v2 }
 0x99b   :  { %v2138_v58 = vmul.f32 %v3262_v0, %v1995_v15  ;;  %vm2144_vm4 = vweird.f32 %v3262_v0 }
 0x99c   :  { %3263 = vrsqrt.f32 %v1996_v20  ;;  %vm2145_vm6 = vmor %vm2143_vm5, %vm2144_vm4  ;;  %vm2153_vm8 = vweird.f32 %v1996_v20 }
 0x99d   :  { %v2139_v33 = vmul.f32 %v3262_v0, %v2138_v58 }
 0x99f   :  { %v2140_v57 = vmul.f32 0.5, %v2139_v33  ;;  %v2702_v43 = vpop.permute.xlu2 %2701 }
 0x9a1   :  { %v2141_v28 = vsub.f32 1.5, %v2140_v57 }
 0x9a2   :  { %v3264_v11 = vpop.eup %3263 }
 0x9a3   :  { %v2142_v4 = vmul.f32 %v3262_v0, %v2141_v28  ;;  %v2148_v13 = vmul.f32 %v3264_v11, %v1996_v20  ;;  %vm2154_vm7 = vweird.f32 %v3264_v11 }
 0x9a4   :  { %vm2155_vm1 = vmor %vm2153_vm8, %vm2154_vm7 }
 0x9a5   :  { %v2149_v10 = vmul.f32 %v3264_v11, %v2148_v13  ;;  %v2146_v30 = vsel %vm2145_vm6, %v3262_v0, %v2142_v4 }
 0x9a6   :  { %v2171_v42 = vmul.f32 %v2146_v30, %v4939_v45 }
 0x9a7   :  { %v2150_v56 = vmul.f32 0.5, %v2149_v10  ;;  %v2697_v18 = vpop.permute.xlu1 %2696 }
 0x9a8   :  { %v2188_v52 = vmul.f32 %v4933_v62, %v2171_v42 }
 0x9a9   :  { %v2151_v36 = vsub.f32 1.5, %v2150_v56 }
 0x9aa   :  { %v2205_v9 = vadd.f32 %v4944_v25, %v2188_v52 }
 0x9ab   :  { %v2152_v40 = vmul.f32 %v3264_v11, %v2151_v36 }
 0x9ac   :  { %v2718_v44 = vmul.f32 %v2697_v18, %v2205_v9 }
 0x9ad   :  { %v2156_v26 = vsel %vm2155_vm1, %v3264_v11, %v2152_v40 }
 0x9ae   :  { %v2172_v34 = vmul.f32 %v2156_v26, %v4973_v23  ;;  %v2818_v3 = vsel %vm329_vm0, %v2718_v44, 0.0 }
 0x9af   :  { %v2819_v17 = vrot.slane %v2818_v3, 4 }
 0x9b0   :  { %v2189_v45 = vmul.f32 %v4933_v62, %v2172_v34 }
 0x9b1   :  { %v2820_v39 = vadd.f32 %v2819_v17, %v2818_v3 }
 0x9b2   :  { %v2206_v50 = vadd.f32 %v4944_v25, %v2189_v45 }
 0x9b3   :  { %v2821_v16 = vrot.slane %v2820_v39, 2 }
 0x9b4   :  { %v2719_v22 = vmul.f32 %v2702_v43, %v2206_v50 }
 0x9b5   :  { %v2822_v55 = vadd.f32 %v2821_v16, %v2820_v39 }
 0x9b6   :  { %v2825_v8 = vsel %vm329_vm0, %v2719_v22, 0.0 }
 0x9b7   :  { %v2826_v35 = vrot.slane %v2825_v8, 4  ;;  %v2823_v47 = vrot.slane %v2822_v55, 1 }
 0x9b9   :  { %v2827_v19 = vadd.f32 %v2826_v35, %v2825_v8  ;;  %v2824_v23 = vadd.f32 %v2823_v47, %v2822_v55 }
 0x9bb   :  { %v2828_v12 = vrot.slane %v2827_v19, 2  ;;  %v2867_v59 = vsel %vm2858_vm2, %v2824_v23, %v2866_v5 }
 0x9bd   :  { %v2829_v1 = vadd.f32 %v2828_v12, %v2827_v19 }
 0x9bf   :  { %v2830_v62 = vrot.slane %v2829_v1, 1 }
 0x9c1   :  { %v2831_v25 = vadd.f32 %v2830_v62, %v2829_v1 }
 0x9c3   :  { %v2868_v46 = vsel %vm2860_vm3, %v2831_v25, %v2867_v59 }
 0x9c4   :  { %2872 = vst.msk [vmem:[#allocation5 + $0x8] sm:$0xff] %vm329_vm0, %v2868_v46 }
 0x9c5   :  { %2885 = dma.vmem_to_hbm [thread:$0]  %s2878_s8, 256, %s2880_s11, [#allocation4], %s3334_s12, %s3334_s12, %s3335_s13  }
 0x9c6   :  { %3325 = dma.done.wait [#allocation4], 256  }
 0x9c7   :  { %3326 = vsyncadd [#allocation4], 4294967040 }
 0x9c8   :  { %2890 = vsyncpa [#allocation3], 1 }
 0x9c9   :  { %2891 = vsyncpa [#allocation4], 1 }

</bundles_post_ra>
